<compile_context>
chip_gen: v7x
topology: tpu7x:2x2x1
jax: 0.10.0
libtpu: 0.0.40
codegen_flags: <defaults>
</compile_context>

<pallas_src>
import jax
import jax.numpy as jnp
from jax import lax
from jax.experimental import pallas as pl
from jax.experimental.pallas import tpu as pltpu


# ---------------- static problem geometry (what the PyTorch module implies) ----
_H0, _CIN = 32, 3                      # input 32x32x3 (so flatten = 16*5*5 = 400)
_K = 5                                 # conv kernel size
_OC1, _OH1, _PW1 = 6, 28, 14           # conv1: 28x28 out -> 14x14 after pool
_OC2, _OH2, _PW2 = 16, 10, 5           # conv2: 10x10 out -> 5x5 after pool
_LANE = 128                            # lane-dense padding target
_XROWS = 40                            # 32 input rows + 8 zero rows (sublane aligned)
_TB = 4                                # samples per grid step


# ------------------------------- the fused kernel ------------------------------

def _net_kernel(x_ref, r1_ref, b1_ref, r2_ref, b2_ref,
                fc1_ref, fc1b_ref, fc2_ref, fc2b_ref, fc3_ref, fc3b_ref,
                o_ref, scr_ref):
    """Forward pass for TB samples (grid axis = batch blocks).

    x_ref  : (TB, 40, 128)   input wide planes  x[b, h, c*32 + w], rows/lanes zero-padded
    r1_ref : (5, 128, 256)   conv1 banded weights, pool phases fused on N (128 lanes each)
    r2_ref : (5, 128, 256)   conv2 banded weights, same layout
    fc1_ref: (5, 128, 128)   fc1 per-pooled-row chunks, rows (c*5+w), zero padded
    scr_ref: (TB, 40, 128)   VMEM scratch holding the conv1 activation for strided H-pool loads
    """
    f32 = jnp.float32
    tb = x_ref.shape[0]

    # ---- conv1 : 5 phase-fused dots, M = TB*32 ------------------------------
    acc1 = jnp.dot(x_ref[:, pl.ds(0, 32), :].reshape(tb * 32, _LANE),
                   r1_ref[0], preferred_element_type=f32)
    for kh in range(1, _K):
        lhs = x_ref[:, pl.ds(kh, 32), :].reshape(tb * 32, _LANE)
        acc1 = acc1 + jnp.dot(lhs, r1_ref[kh], preferred_element_type=f32)
    # W-pool = max over the two lane-aligned phase halves; bias shared, ReLU monotone.
    wp1 = jnp.maximum(jnp.maximum(acc1[:, :_LANE], acc1[:, _LANE:]) + b1_ref[...], 0.0)
    scr_ref[:, 0:32, :] = wp1.reshape(tb, 32, _LANE)               # one bulk aligned store
    scr_ref[:, 32:_XROWS, :] = jnp.zeros((tb, _XROWS - 32, _LANE), f32)

    # ---- conv1 H-pool via two strided loads, then conv2 ---------------------
    p1 = jnp.maximum(scr_ref[:, pl.ds(0, 20, stride=2), :],
                     scr_ref[:, pl.ds(1, 20, stride=2), :])        # (TB, 20, 128); rows 0..13 valid
    acc2 = jnp.dot(p1[:, 0:16, :].reshape(tb * 16, _LANE),
                   r2_ref[0], preferred_element_type=f32)
    for kh in range(1, _K):
        lhs = p1[:, kh:kh + 16, :].reshape(tb * 16, _LANE)
        acc2 = acc2 + jnp.dot(lhs, r2_ref[kh], preferred_element_type=f32)
    wp2 = jnp.maximum(jnp.maximum(acc2[:, :_LANE], acc2[:, _LANE:]) + b2_ref[...], 0.0)
    wp2 = wp2.reshape(tb, 16, _LANE)                               # rows 0..9, lanes 0..79 valid

    # ---- conv2 H-pool fused into fc1 accumulation, then fc2 / fc3 -----------
    y = jnp.zeros((tb, _LANE), f32)
    for h in range(_PW2):
        row = jnp.maximum(wp2[:, 2 * h, :], wp2[:, 2 * h + 1, :])  # (TB, 128) pooled features
        y = y + jnp.dot(row, fc1_ref[h], preferred_element_type=f32)
    y = jnp.maximum(y + fc1b_ref[...], 0.0)
    y = jnp.maximum(jnp.dot(y, fc2_ref[...], preferred_element_type=f32) + fc2b_ref[...], 0.0)
    y = jnp.dot(y, fc3_ref[...], preferred_element_type=f32) + fc3b_ref[...]
    o_ref[0] = y                                                   # (TB, 128), lanes 0..9 valid


def net_forward(x, kp):
    B = x.shape[0]
    nb = -(-B // _TB)
    bp = nb * _TB
    # per-forward layout glue: NCHW -> (B, H, C*W) wide planes, padded to (40, 128)
    xw = x.transpose(0, 2, 1, 3).reshape(B, _H0, _CIN * _H0)
    xw = jnp.pad(xw, ((0, bp - B), (0, _XROWS - _H0), (0, _LANE - _CIN * _H0)))

    out = pl.pallas_call(
        _net_kernel,
        out_shape=jax.ShapeDtypeStruct((nb, _TB, _LANE), jnp.float32),
        grid=(nb,),
        in_specs=[
            pl.BlockSpec((_TB, _XROWS, _LANE), lambda i: (i, 0, 0)),        # x
            pl.BlockSpec((_K, _LANE, 2 * _LANE), lambda i: (0, 0, 0)),      # conv1 rhs (phase fused)
            pl.BlockSpec((1, _LANE), lambda i: (0, 0)),                     # conv1 bias
            pl.BlockSpec((_K, _LANE, 2 * _LANE), lambda i: (0, 0, 0)),      # conv2 rhs (phase fused)
            pl.BlockSpec((1, _LANE), lambda i: (0, 0)),                     # conv2 bias
            pl.BlockSpec((_PW2, _LANE, _LANE), lambda i: (0, 0, 0)),        # fc1 w (per pooled row)
            pl.BlockSpec((1, _LANE), lambda i: (0, 0)),                     # fc1 b
            pl.BlockSpec((_LANE, _LANE), lambda i: (0, 0)),                 # fc2 w
            pl.BlockSpec((1, _LANE), lambda i: (0, 0)),                     # fc2 b
            pl.BlockSpec((_LANE, _LANE), lambda i: (0, 0)),                 # fc3 w
            pl.BlockSpec((1, _LANE), lambda i: (0, 0)),                     # fc3 b
        ],
        out_specs=pl.BlockSpec((1, _TB, _LANE), lambda i: (i, 0, 0)),
        scratch_shapes=[pltpu.VMEM((_TB, _XROWS, _LANE), jnp.float32)],
        compiler_params=pltpu.CompilerParams(dimension_semantics=("parallel",)),
    )(xw, kp["r1"], kp["b1"], kp["r2"], kp["b2"],
      kp["fc1_w"], kp["fc1_b"], kp["fc2_w"], kp["fc2_b"],
      kp["fc3_w"], kp["fc3_b"])
    return out.reshape(bp, _LANE)[:B, :10]


# ---------------------- one-time parameter re-layout ---------------------------

def prepare_params(p):
    """Re-lay PyTorch-style params into the kernel's matmul-friendly form (run once)."""

    def conv_rhs_fused(w, w_in, pooled_w):
        # w: (OC, IC, KH, KW).  Build R[kh, c*w_in + v, q*128 + oc*pw + jx]
        #   = w[oc, c, kh, v - (2*jx + q)], i.e. banded matrices whose output
        # columns are grouped by horizontal pool phase q (each phase 128-lane padded).
        OC, IC, KH, KW = w.shape
        OW = w_in - KW + 1
        assert OW == 2 * pooled_w
        xs = jnp.arange(OW)[:, None]
        vs = jnp.arange(w_in)[None, :]
        P = jnp.stack([(vs == xs + k).astype(jnp.float32) for k in range(KW)], axis=0)
        S = w.astype(jnp.float32).transpose(2, 1, 3, 0)             # (KH, IC, KW, OC)
        R = jnp.einsum("hikn,kxv->hivnx", S, P)                     # (KH, IC, Win, OC, OW)
        R = R.reshape(KH, IC, w_in, OC, pooled_w, 2)                # x = 2*jx + q
        R = R.transpose(5, 0, 1, 2, 3, 4).reshape(2, KH, IC * w_in, OC * pooled_w)
        kpad, npad = _LANE - IC * w_in, _LANE - OC * pooled_w
        q0 = jnp.pad(R[0], ((0, 0), (0, kpad), (0, npad)))
        q1 = jnp.pad(R[1], ((0, 0), (0, kpad), (0, npad)))
        return jnp.concatenate([q0, q1], axis=-1)                   # (KH, 128, 256)

    def pad_vec(v):
        return jnp.pad(v.astype(jnp.float32), (0, _LANE - v.shape[0])).reshape(1, _LANE)

    def pad_mat(m):
        return jnp.pad(m.astype(jnp.float32),
                       ((0, _LANE - m.shape[0]), (0, _LANE - m.shape[1])))

    # fc1 rows reordered from torch flatten (c, h, w) to per-h chunks of (c, w), padded.
    fc1 = p["fc1_w"].reshape(120, _OC2, _PW2, _PW2).transpose(2, 1, 3, 0)
    fc1 = fc1.reshape(_PW2, _OC2 * _PW2, 120)
    fc1 = jnp.pad(fc1, ((0, 0), (0, _LANE - _OC2 * _PW2), (0, _LANE - 120)))

    return {
        "r1": conv_rhs_fused(p["conv1_w"], _H0, _PW1),              # (5, 128, 256)
        "b1": pad_vec(jnp.repeat(p["conv1_b"], _PW1)),
        "r2": conv_rhs_fused(p["conv2_w"], _PW1, _PW2),             # (5, 128, 256)
        "b2": pad_vec(jnp.repeat(p["conv2_b"], _PW2)),
        "fc1_w": fc1,                                               # (5, 128, 128)
        "fc1_b": pad_vec(p["fc1_b"]),
        "fc2_w": pad_mat(p["fc2_w"].T),                             # (128, 128)
        "fc2_b": pad_vec(p["fc2_b"]),
        "fc3_w": pad_mat(p["fc3_w"].T),                             # (128, 128)
        "fc3_b": pad_vec(p["fc3_b"]),
    }


# ------------------------------ param init (torch-style) -----------------------

def init_params(key):
    """Deterministic init mimicking PyTorch defaults: U(-1/sqrt(fan_in), +)."""
    ks = jax.random.split(key, 10)

    def u(k, shape, fan_in):
        bound = 1.0 / jnp.sqrt(jnp.float32(fan_in))
        return jax.random.uniform(k, shape, jnp.float32, -bound, bound)

    return {
        "conv1_w": u(ks[0], (6, 3, 5, 5), 3 * 5 * 5),
        "conv1_b": u(ks[1], (6,), 3 * 5 * 5),
        "conv2_w": u(ks[2], (16, 6, 5, 5), 6 * 5 * 5),
        "conv2_b": u(ks[3], (16,), 6 * 5 * 5),
        "fc1_w": u(ks[4], (120, 400), 400),
        "fc1_b": u(ks[5], (120,), 400),
        "fc2_w": u(ks[6], (84, 120), 120),
        "fc2_b": u(ks[7], (84,), 120),
        "fc3_w": u(ks[8], (10, 84), 84),
        "fc3_b": u(ks[9], (10,), 84),
    }


# ------------------------------ pure-JAX reference -----------------------------

def reference_forward(x, p):
    dn = ("NCHW", "OIHW", "NCHW")
    y = lax.conv_general_dilated(x, p["conv1_w"], (1, 1), "VALID", dimension_numbers=dn)
    y = jnp.maximum(y + p["conv1_b"][None, :, None, None], 0.0)
    y = lax.reduce_window(y, -jnp.inf, lax.max, (1, 1, 2, 2), (1, 1, 2, 2), "VALID")
    y = lax.conv_general_dilated(y, p["conv2_w"], (1, 1), "VALID", dimension_numbers=dn)
    y = jnp.maximum(y + p["conv2_b"][None, :, None, None], 0.0)
    y = lax.reduce_window(y, -jnp.inf, lax.max, (1, 1, 2, 2), (1, 1, 2, 2), "VALID")
    y = y.reshape(y.shape[0], -1)
    y = jnp.maximum(y @ p["fc1_w"].T + p["fc1_b"], 0.0)
    y = jnp.maximum(y @ p["fc2_w"].T + p["fc2_b"], 0.0)
    return y @ p["fc3_w"].T + p["fc3_b"]


# --------------------------------- main -----------------------------------------

if __name__ == "__main__":
    root = jax.random.PRNGKey(0)
    k_params, k_x = jax.random.split(root)
    params = init_params(k_params)
    kparams = prepare_params(params)         # one-time weight re-layout (not per-forward)
    # Input must be 32x32 so the flattened feature size is 16*5*5 = 400.
    # B=8 with TB=4 gives an even, >=2-step grid (uses both v7x TensorCores).
    x = jax.random.normal(k_x, (8, 3, 32, 32), jnp.float32)

    out = jax.jit(net_forward)(x, kparams)
    out = jax.block_until_ready(out)
    assert out.shape == (8, 10) and out.dtype == jnp.float32

    ref = reference_forward(x, params)
    err = float(jnp.max(jnp.abs(out - ref)))
    assert err < 1e-3, f"kernel/reference mismatch: max abs err {err}"
    print("KERNEL_OK")
</pallas_src>

<mosaic_0001>
module attributes {stable_mosaic.version = 11 : i64} {
  func.func @_net_kernel(%arg0: i32, %arg1: memref<4x40x128xf32, #tpu.memory_space<vmem>>, %arg2: memref<5x128x256xf32, #tpu.memory_space<vmem>>, %arg3: memref<1x128xf32, #tpu.memory_space<vmem>>, %arg4: memref<5x128x256xf32, #tpu.memory_space<vmem>>, %arg5: memref<1x128xf32, #tpu.memory_space<vmem>>, %arg6: memref<5x128x128xf32, #tpu.memory_space<vmem>>, %arg7: memref<1x128xf32, #tpu.memory_space<vmem>>, %arg8: memref<128x128xf32, #tpu.memory_space<vmem>>, %arg9: memref<1x128xf32, #tpu.memory_space<vmem>>, %arg10: memref<128x128xf32, #tpu.memory_space<vmem>>, %arg11: memref<1x128xf32, #tpu.memory_space<vmem>>, %arg12: memref<1x4x128xf32, #tpu.memory_space<vmem>>, %arg13: memref<4x40x128xf32, #tpu.memory_space<vmem>>) attributes {dimension_semantics = [#tpu.dimension_semantics<parallel>], iteration_bounds = array<i64: 2>, scalar_prefetch = 0 : i64, scratch_operands = 1 : i64, tpu.core_type = #tpu.core_type<tc>, window_params = [{transform_indices = @transform_0, window_bounds = array<i64: 4, 40, 128>}, {pipeline_mode = #tpu.pipeline_mode<synchronous>, transform_indices = @transform_1, window_bounds = array<i64: 5, 128, 256>}, {pipeline_mode = #tpu.pipeline_mode<synchronous>, transform_indices = @transform_2, window_bounds = array<i64: 1, 128>}, {pipeline_mode = #tpu.pipeline_mode<synchronous>, transform_indices = @transform_3, window_bounds = array<i64: 5, 128, 256>}, {pipeline_mode = #tpu.pipeline_mode<synchronous>, transform_indices = @transform_4, window_bounds = array<i64: 1, 128>}, {pipeline_mode = #tpu.pipeline_mode<synchronous>, transform_indices = @transform_5, window_bounds = array<i64: 5, 128, 128>}, {pipeline_mode = #tpu.pipeline_mode<synchronous>, transform_indices = @transform_6, window_bounds = array<i64: 1, 128>}, {pipeline_mode = #tpu.pipeline_mode<synchronous>, transform_indices = @transform_7, window_bounds = array<i64: 128, 128>}, {pipeline_mode = #tpu.pipeline_mode<synchronous>, transform_indices = @transform_8, window_bounds = array<i64: 1, 128>}, {pipeline_mode = #tpu.pipeline_mode<synchronous>, transform_indices = @transform_9, window_bounds = array<i64: 128, 128>}, {pipeline_mode = #tpu.pipeline_mode<synchronous>, transform_indices = @transform_10, window_bounds = array<i64: 1, 128>}, {transform_indices = @transform_11, window_bounds = array<i64: 1, 4, 128>}]} {
    %c0 = arith.constant 0 : index
    %c0_0 = arith.constant 0 : index
    %c0_1 = arith.constant 0 : index
    %0 = vector.load %arg1[%c0, %c0_0, %c0_1] : memref<4x40x128xf32, #tpu.memory_space<vmem>>, vector<4x32x128xf32>
    %1 = vector.shape_cast %0 : vector<4x32x128xf32> to vector<128x128xf32>
    %c0_2 = arith.constant 0 : index
    %c0_3 = arith.constant 0 : index
    %c0_4 = arith.constant 0 : index
    %2 = vector.load %arg2[%c0_2, %c0_3, %c0_4] : memref<5x128x256xf32, #tpu.memory_space<vmem>>, vector<1x128x256xf32>
    %3 = vector.shape_cast %2 : vector<1x128x256xf32> to vector<128x256xf32>
    %cst = arith.constant dense<0.000000e+00> : vector<128x256xf32>
    %4 = tpu.matmul %1, %3, %cst {dimension_numbers = #tpu.dot_dimension_numbers<[1], [0], [0], [1], [0, 0, 1, 1], [], []>} : vector<128x128xf32>, vector<128x256xf32>, vector<128x256xf32> -> vector<128x256xf32>
    %c0_5 = arith.constant 0 : index
    %c1 = arith.constant 1 : index
    %c0_6 = arith.constant 0 : index
    %5 = vector.load %arg1[%c0_5, %c1, %c0_6] : memref<4x40x128xf32, #tpu.memory_space<vmem>>, vector<4x32x128xf32>
    %6 = vector.shape_cast %5 : vector<4x32x128xf32> to vector<128x128xf32>
    %c1_7 = arith.constant 1 : index
    %c0_8 = arith.constant 0 : index
    %c0_9 = arith.constant 0 : index
    %7 = vector.load %arg2[%c1_7, %c0_8, %c0_9] : memref<5x128x256xf32, #tpu.memory_space<vmem>>, vector<1x128x256xf32>
    %8 = vector.shape_cast %7 : vector<1x128x256xf32> to vector<128x256xf32>
    %cst_10 = arith.constant dense<0.000000e+00> : vector<128x256xf32>
    %9 = tpu.matmul %6, %8, %cst_10 {dimension_numbers = #tpu.dot_dimension_numbers<[1], [0], [0], [1], [0, 0, 1, 1], [], []>} : vector<128x128xf32>, vector<128x256xf32>, vector<128x256xf32> -> vector<128x256xf32>
    %10 = arith.addf %4, %9 : vector<128x256xf32>
    %c0_11 = arith.constant 0 : index
    %c2 = arith.constant 2 : index
    %c0_12 = arith.constant 0 : index
    %11 = vector.load %arg1[%c0_11, %c2, %c0_12] : memref<4x40x128xf32, #tpu.memory_space<vmem>>, vector<4x32x128xf32>
    %12 = vector.shape_cast %11 : vector<4x32x128xf32> to vector<128x128xf32>
    %c2_13 = arith.constant 2 : index
    %c0_14 = arith.constant 0 : index
    %c0_15 = arith.constant 0 : index
    %13 = vector.load %arg2[%c2_13, %c0_14, %c0_15] : memref<5x128x256xf32, #tpu.memory_space<vmem>>, vector<1x128x256xf32>
    %14 = vector.shape_cast %13 : vector<1x128x256xf32> to vector<128x256xf32>
    %cst_16 = arith.constant dense<0.000000e+00> : vector<128x256xf32>
    %15 = tpu.matmul %12, %14, %cst_16 {dimension_numbers = #tpu.dot_dimension_numbers<[1], [0], [0], [1], [0, 0, 1, 1], [], []>} : vector<128x128xf32>, vector<128x256xf32>, vector<128x256xf32> -> vector<128x256xf32>
    %16 = arith.addf %10, %15 : vector<128x256xf32>
    %c0_17 = arith.constant 0 : index
    %c3 = arith.constant 3 : index
    %c0_18 = arith.constant 0 : index
    %17 = vector.load %arg1[%c0_17, %c3, %c0_18] : memref<4x40x128xf32, #tpu.memory_space<vmem>>, vector<4x32x128xf32>
    %18 = vector.shape_cast %17 : vector<4x32x128xf32> to vector<128x128xf32>
    %c3_19 = arith.constant 3 : index
    %c0_20 = arith.constant 0 : index
    %c0_21 = arith.constant 0 : index
    %19 = vector.load %arg2[%c3_19, %c0_20, %c0_21] : memref<5x128x256xf32, #tpu.memory_space<vmem>>, vector<1x128x256xf32>
    %20 = vector.shape_cast %19 : vector<1x128x256xf32> to vector<128x256xf32>
    %cst_22 = arith.constant dense<0.000000e+00> : vector<128x256xf32>
    %21 = tpu.matmul %18, %20, %cst_22 {dimension_numbers = #tpu.dot_dimension_numbers<[1], [0], [0], [1], [0, 0, 1, 1], [], []>} : vector<128x128xf32>, vector<128x256xf32>, vector<128x256xf32> -> vector<128x256xf32>
    %22 = arith.addf %16, %21 : vector<128x256xf32>
    %c0_23 = arith.constant 0 : index
    %c4 = arith.constant 4 : index
    %c0_24 = arith.constant 0 : index
    %23 = vector.load %arg1[%c0_23, %c4, %c0_24] : memref<4x40x128xf32, #tpu.memory_space<vmem>>, vector<4x32x128xf32>
    %24 = vector.shape_cast %23 : vector<4x32x128xf32> to vector<128x128xf32>
    %c4_25 = arith.constant 4 : index
    %c0_26 = arith.constant 0 : index
    %c0_27 = arith.constant 0 : index
    %25 = vector.load %arg2[%c4_25, %c0_26, %c0_27] : memref<5x128x256xf32, #tpu.memory_space<vmem>>, vector<1x128x256xf32>
    %26 = vector.shape_cast %25 : vector<1x128x256xf32> to vector<128x256xf32>
    %cst_28 = arith.constant dense<0.000000e+00> : vector<128x256xf32>
    %27 = tpu.matmul %24, %26, %cst_28 {dimension_numbers = #tpu.dot_dimension_numbers<[1], [0], [0], [1], [0, 0, 1, 1], [], []>} : vector<128x128xf32>, vector<128x256xf32>, vector<128x256xf32> -> vector<128x256xf32>
    %28 = arith.addf %22, %27 : vector<128x256xf32>
    %29 = vector.extract_strided_slice %28 {offsets = [0, 0], sizes = [128, 128], strides = [1, 1]} : vector<128x256xf32> to vector<128x128xf32>
    %30 = vector.extract_strided_slice %28 {offsets = [0, 128], sizes = [128, 128], strides = [1, 1]} : vector<128x256xf32> to vector<128x128xf32>
    %31 = arith.maximumf %29, %30 : vector<128x128xf32>
    %c0_29 = arith.constant 0 : index
    %c0_30 = arith.constant 0 : index
    %32 = vector.load %arg3[%c0_29, %c0_30] : memref<1x128xf32, #tpu.memory_space<vmem>>, vector<1x128xf32>
    %33 = vector.broadcast %32 : vector<1x128xf32> to vector<128x128xf32>
    %34 = arith.addf %31, %33 : vector<128x128xf32>
    %cst_31 = arith.constant 0.000000e+00 : f32
    %35 = vector.broadcast %cst_31 : f32 to vector<128x128xf32>
    %36 = arith.maximumf %34, %35 : vector<128x128xf32>
    %37 = vector.shape_cast %36 : vector<128x128xf32> to vector<4x32x128xf32>
    %c0_32 = arith.constant 0 : index
    %c0_33 = arith.constant 0 : index
    %c0_34 = arith.constant 0 : index
    %38 = vector.load %arg13[%c0_32, %c0_33, %c0_34] : memref<4x40x128xf32, #tpu.memory_space<vmem>>, vector<4x32x128xf32>
    tpu.vector_store %arg13[%c0_32, %c0_33, %c0_34], %37 {strides = array<i32>} : memref<4x40x128xf32, #tpu.memory_space<vmem>>, vector<4x32x128xf32>,
    %cst_35 = arith.constant 0.000000e+00 : f32
    %39 = vector.broadcast %cst_35 : f32 to vector<4x8x128xf32>
    %c0_36 = arith.constant 0 : index
    %c32 = arith.constant 32 : index
    %c0_37 = arith.constant 0 : index
    %40 = vector.load %arg13[%c0_36, %c32, %c0_37] : memref<4x40x128xf32, #tpu.memory_space<vmem>>, vector<4x8x128xf32>
    tpu.vector_store %arg13[%c0_36, %c32, %c0_37], %39 {strides = array<i32>} : memref<4x40x128xf32, #tpu.memory_space<vmem>>, vector<4x8x128xf32>,
    %c0_38 = arith.constant 0 : index
    %c0_39 = arith.constant 0 : index
    %c0_40 = arith.constant 0 : index
    %41 = tpu.strided_load %arg13[%c0_38, %c0_39, %c0_40] {strides = array<i32: 1, 2, 1>} : memref<4x40x128xf32, #tpu.memory_space<vmem>>, vector<4x20x128xf32>
    %c0_41 = arith.constant 0 : index
    %c1_42 = arith.constant 1 : index
    %c0_43 = arith.constant 0 : index
    %42 = tpu.strided_load %arg13[%c0_41, %c1_42, %c0_43] {strides = array<i32: 1, 2, 1>} : memref<4x40x128xf32, #tpu.memory_space<vmem>>, vector<4x20x128xf32>
    %43 = arith.maximumf %41, %42 : vector<4x20x128xf32>
    %44 = vector.extract_strided_slice %43 {offsets = [0, 0, 0], sizes = [4, 16, 128], strides = [1, 1, 1]} : vector<4x20x128xf32> to vector<4x16x128xf32>
    %45 = vector.shape_cast %44 : vector<4x16x128xf32> to vector<64x128xf32>
    %c0_44 = arith.constant 0 : index
    %c0_45 = arith.constant 0 : index
    %c0_46 = arith.constant 0 : index
    %46 = vector.load %arg4[%c0_44, %c0_45, %c0_46] : memref<5x128x256xf32, #tpu.memory_space<vmem>>, vector<1x128x256xf32>
    %47 = vector.shape_cast %46 : vector<1x128x256xf32> to vector<128x256xf32>
    %cst_47 = arith.constant dense<0.000000e+00> : vector<64x256xf32>
    %48 = tpu.matmul %45, %47, %cst_47 {dimension_numbers = #tpu.dot_dimension_numbers<[1], [0], [0], [1], [0, 0, 1, 1], [], []>} : vector<64x128xf32>, vector<128x256xf32>, vector<64x256xf32> -> vector<64x256xf32>
    %49 = vector.extract_strided_slice %43 {offsets = [0, 1, 0], sizes = [4, 16, 128], strides = [1, 1, 1]} : vector<4x20x128xf32> to vector<4x16x128xf32>
    %50 = vector.shape_cast %49 : vector<4x16x128xf32> to vector<64x128xf32>
    %c1_48 = arith.constant 1 : index
    %c0_49 = arith.constant 0 : index
    %c0_50 = arith.constant 0 : index
    %51 = vector.load %arg4[%c1_48, %c0_49, %c0_50] : memref<5x128x256xf32, #tpu.memory_space<vmem>>, vector<1x128x256xf32>
    %52 = vector.shape_cast %51 : vector<1x128x256xf32> to vector<128x256xf32>
    %cst_51 = arith.constant dense<0.000000e+00> : vector<64x256xf32>
    %53 = tpu.matmul %50, %52, %cst_51 {dimension_numbers = #tpu.dot_dimension_numbers<[1], [0], [0], [1], [0, 0, 1, 1], [], []>} : vector<64x128xf32>, vector<128x256xf32>, vector<64x256xf32> -> vector<64x256xf32>
    %54 = arith.addf %48, %53 : vector<64x256xf32>
    %55 = vector.extract_strided_slice %43 {offsets = [0, 2, 0], sizes = [4, 16, 128], strides = [1, 1, 1]} : vector<4x20x128xf32> to vector<4x16x128xf32>
    %56 = vector.shape_cast %55 : vector<4x16x128xf32> to vector<64x128xf32>
    %c2_52 = arith.constant 2 : index
    %c0_53 = arith.constant 0 : index
    %c0_54 = arith.constant 0 : index
    %57 = vector.load %arg4[%c2_52, %c0_53, %c0_54] : memref<5x128x256xf32, #tpu.memory_space<vmem>>, vector<1x128x256xf32>
    %58 = vector.shape_cast %57 : vector<1x128x256xf32> to vector<128x256xf32>
    %cst_55 = arith.constant dense<0.000000e+00> : vector<64x256xf32>
    %59 = tpu.matmul %56, %58, %cst_55 {dimension_numbers = #tpu.dot_dimension_numbers<[1], [0], [0], [1], [0, 0, 1, 1], [], []>} : vector<64x128xf32>, vector<128x256xf32>, vector<64x256xf32> -> vector<64x256xf32>
    %60 = arith.addf %54, %59 : vector<64x256xf32>
    %61 = vector.extract_strided_slice %43 {offsets = [0, 3, 0], sizes = [4, 16, 128], strides = [1, 1, 1]} : vector<4x20x128xf32> to vector<4x16x128xf32>
    %62 = vector.shape_cast %61 : vector<4x16x128xf32> to vector<64x128xf32>
    %c3_56 = arith.constant 3 : index
    %c0_57 = arith.constant 0 : index
    %c0_58 = arith.constant 0 : index
    %63 = vector.load %arg4[%c3_56, %c0_57, %c0_58] : memref<5x128x256xf32, #tpu.memory_space<vmem>>, vector<1x128x256xf32>
    %64 = vector.shape_cast %63 : vector<1x128x256xf32> to vector<128x256xf32>
    %cst_59 = arith.constant dense<0.000000e+00> : vector<64x256xf32>
    %65 = tpu.matmul %62, %64, %cst_59 {dimension_numbers = #tpu.dot_dimension_numbers<[1], [0], [0], [1], [0, 0, 1, 1], [], []>} : vector<64x128xf32>, vector<128x256xf32>, vector<64x256xf32> -> vector<64x256xf32>
    %66 = arith.addf %60, %65 : vector<64x256xf32>
    %67 = vector.extract_strided_slice %43 {offsets = [0, 4, 0], sizes = [4, 16, 128], strides = [1, 1, 1]} : vector<4x20x128xf32> to vector<4x16x128xf32>
    %68 = vector.shape_cast %67 : vector<4x16x128xf32> to vector<64x128xf32>
    %c4_60 = arith.constant 4 : index
    %c0_61 = arith.constant 0 : index
    %c0_62 = arith.constant 0 : index
    %69 = vector.load %arg4[%c4_60, %c0_61, %c0_62] : memref<5x128x256xf32, #tpu.memory_space<vmem>>, vector<1x128x256xf32>
    %70 = vector.shape_cast %69 : vector<1x128x256xf32> to vector<128x256xf32>
    %cst_63 = arith.constant dense<0.000000e+00> : vector<64x256xf32>
    %71 = tpu.matmul %68, %70, %cst_63 {dimension_numbers = #tpu.dot_dimension_numbers<[1], [0], [0], [1], [0, 0, 1, 1], [], []>} : vector<64x128xf32>, vector<128x256xf32>, vector<64x256xf32> -> vector<64x256xf32>
    %72 = arith.addf %66, %71 : vector<64x256xf32>
    %73 = vector.extract_strided_slice %72 {offsets = [0, 0], sizes = [64, 128], strides = [1, 1]} : vector<64x256xf32> to vector<64x128xf32>
    %74 = vector.extract_strided_slice %72 {offsets = [0, 128], sizes = [64, 128], strides = [1, 1]} : vector<64x256xf32> to vector<64x128xf32>
    %75 = arith.maximumf %73, %74 : vector<64x128xf32>
    %c0_64 = arith.constant 0 : index
    %c0_65 = arith.constant 0 : index
    %76 = vector.load %arg5[%c0_64, %c0_65] : memref<1x128xf32, #tpu.memory_space<vmem>>, vector<1x128xf32>
    %77 = vector.broadcast %76 : vector<1x128xf32> to vector<64x128xf32>
    %78 = arith.addf %75, %77 : vector<64x128xf32>
    %cst_66 = arith.constant 0.000000e+00 : f32
    %79 = vector.broadcast %cst_66 : f32 to vector<64x128xf32>
    %80 = arith.maximumf %78, %79 : vector<64x128xf32>
    %81 = vector.shape_cast %80 : vector<64x128xf32> to vector<4x16x128xf32>
    %cst_67 = arith.constant 0.000000e+00 : f32
    %82 = vector.broadcast %cst_67 : f32 to vector<4x128xf32>
    %83 = vector.extract_strided_slice %81 {offsets = [0, 0, 0], sizes = [4, 1, 128], strides = [1, 1, 1]} : vector<4x16x128xf32> to vector<4x1x128xf32>
    %84 = vector.shape_cast %83 : vector<4x1x128xf32> to vector<4x128xf32>
    %85 = vector.extract_strided_slice %81 {offsets = [0, 1, 0], sizes = [4, 1, 128], strides = [1, 1, 1]} : vector<4x16x128xf32> to vector<4x1x128xf32>
    %86 = vector.shape_cast %85 : vector<4x1x128xf32> to vector<4x128xf32>
    %87 = arith.maximumf %84, %86 : vector<4x128xf32>
    %c0_68 = arith.constant 0 : index
    %c0_69 = arith.constant 0 : index
    %c0_70 = arith.constant 0 : index
    %88 = vector.load %arg6[%c0_68, %c0_69, %c0_70] : memref<5x128x128xf32, #tpu.memory_space<vmem>>, vector<1x128x128xf32>
    %89 = vector.shape_cast %88 : vector<1x128x128xf32> to vector<128x128xf32>
    %cst_71 = arith.constant dense<0.000000e+00> : vector<4x128xf32>
    %90 = tpu.matmul %87, %89, %cst_71 {dimension_numbers = #tpu.dot_dimension_numbers<[1], [0], [0], [1], [0, 0, 1, 1], [], []>} : vector<4x128xf32>, vector<128x128xf32>, vector<4x128xf32> -> vector<4x128xf32>
    %91 = arith.addf %82, %90 : vector<4x128xf32>
    %92 = vector.extract_strided_slice %81 {offsets = [0, 2, 0], sizes = [4, 1, 128], strides = [1, 1, 1]} : vector<4x16x128xf32> to vector<4x1x128xf32>
    %93 = vector.shape_cast %92 : vector<4x1x128xf32> to vector<4x128xf32>
    %94 = vector.extract_strided_slice %81 {offsets = [0, 3, 0], sizes = [4, 1, 128], strides = [1, 1, 1]} : vector<4x16x128xf32> to vector<4x1x128xf32>
    %95 = vector.shape_cast %94 : vector<4x1x128xf32> to vector<4x128xf32>
    %96 = arith.maximumf %93, %95 : vector<4x128xf32>
    %c1_72 = arith.constant 1 : index
    %c0_73 = arith.constant 0 : index
    %c0_74 = arith.constant 0 : index
    %97 = vector.load %arg6[%c1_72, %c0_73, %c0_74] : memref<5x128x128xf32, #tpu.memory_space<vmem>>, vector<1x128x128xf32>
    %98 = vector.shape_cast %97 : vector<1x128x128xf32> to vector<128x128xf32>
    %cst_75 = arith.constant dense<0.000000e+00> : vector<4x128xf32>
    %99 = tpu.matmul %96, %98, %cst_75 {dimension_numbers = #tpu.dot_dimension_numbers<[1], [0], [0], [1], [0, 0, 1, 1], [], []>} : vector<4x128xf32>, vector<128x128xf32>, vector<4x128xf32> -> vector<4x128xf32>
    %100 = arith.addf %91, %99 : vector<4x128xf32>
    %101 = vector.extract_strided_slice %81 {offsets = [0, 4, 0], sizes = [4, 1, 128], strides = [1, 1, 1]} : vector<4x16x128xf32> to vector<4x1x128xf32>
    %102 = vector.shape_cast %101 : vector<4x1x128xf32> to vector<4x128xf32>
    %103 = vector.extract_strided_slice %81 {offsets = [0, 5, 0], sizes = [4, 1, 128], strides = [1, 1, 1]} : vector<4x16x128xf32> to vector<4x1x128xf32>
    %104 = vector.shape_cast %103 : vector<4x1x128xf32> to vector<4x128xf32>
    %105 = arith.maximumf %102, %104 : vector<4x128xf32>
    %c2_76 = arith.constant 2 : index
    %c0_77 = arith.constant 0 : index
    %c0_78 = arith.constant 0 : index
    %106 = vector.load %arg6[%c2_76, %c0_77, %c0_78] : memref<5x128x128xf32, #tpu.memory_space<vmem>>, vector<1x128x128xf32>
    %107 = vector.shape_cast %106 : vector<1x128x128xf32> to vector<128x128xf32>
    %cst_79 = arith.constant dense<0.000000e+00> : vector<4x128xf32>
    %108 = tpu.matmul %105, %107, %cst_79 {dimension_numbers = #tpu.dot_dimension_numbers<[1], [0], [0], [1], [0, 0, 1, 1], [], []>} : vector<4x128xf32>, vector<128x128xf32>, vector<4x128xf32> -> vector<4x128xf32>
    %109 = arith.addf %100, %108 : vector<4x128xf32>
    %110 = vector.extract_strided_slice %81 {offsets = [0, 6, 0], sizes = [4, 1, 128], strides = [1, 1, 1]} : vector<4x16x128xf32> to vector<4x1x128xf32>
    %111 = vector.shape_cast %110 : vector<4x1x128xf32> to vector<4x128xf32>
    %112 = vector.extract_strided_slice %81 {offsets = [0, 7, 0], sizes = [4, 1, 128], strides = [1, 1, 1]} : vector<4x16x128xf32> to vector<4x1x128xf32>
    %113 = vector.shape_cast %112 : vector<4x1x128xf32> to vector<4x128xf32>
    %114 = arith.maximumf %111, %113 : vector<4x128xf32>
    %c3_80 = arith.constant 3 : index
    %c0_81 = arith.constant 0 : index
    %c0_82 = arith.constant 0 : index
    %115 = vector.load %arg6[%c3_80, %c0_81, %c0_82] : memref<5x128x128xf32, #tpu.memory_space<vmem>>, vector<1x128x128xf32>
    %116 = vector.shape_cast %115 : vector<1x128x128xf32> to vector<128x128xf32>
    %cst_83 = arith.constant dense<0.000000e+00> : vector<4x128xf32>
    %117 = tpu.matmul %114, %116, %cst_83 {dimension_numbers = #tpu.dot_dimension_numbers<[1], [0], [0], [1], [0, 0, 1, 1], [], []>} : vector<4x128xf32>, vector<128x128xf32>, vector<4x128xf32> -> vector<4x128xf32>
    %118 = arith.addf %109, %117 : vector<4x128xf32>
    %119 = vector.extract_strided_slice %81 {offsets = [0, 8, 0], sizes = [4, 1, 128], strides = [1, 1, 1]} : vector<4x16x128xf32> to vector<4x1x128xf32>
    %120 = vector.shape_cast %119 : vector<4x1x128xf32> to vector<4x128xf32>
    %121 = vector.extract_strided_slice %81 {offsets = [0, 9, 0], sizes = [4, 1, 128], strides = [1, 1, 1]} : vector<4x16x128xf32> to vector<4x1x128xf32>
    %122 = vector.shape_cast %121 : vector<4x1x128xf32> to vector<4x128xf32>
    %123 = arith.maximumf %120, %122 : vector<4x128xf32>
    %c4_84 = arith.constant 4 : index
    %c0_85 = arith.constant 0 : index
    %c0_86 = arith.constant 0 : index
    %124 = vector.load %arg6[%c4_84, %c0_85, %c0_86] : memref<5x128x128xf32, #tpu.memory_space<vmem>>, vector<1x128x128xf32>
    %125 = vector.shape_cast %124 : vector<1x128x128xf32> to vector<128x128xf32>
    %cst_87 = arith.constant dense<0.000000e+00> : vector<4x128xf32>
    %126 = tpu.matmul %123, %125, %cst_87 {dimension_numbers = #tpu.dot_dimension_numbers<[1], [0], [0], [1], [0, 0, 1, 1], [], []>} : vector<4x128xf32>, vector<128x128xf32>, vector<4x128xf32> -> vector<4x128xf32>
    %127 = arith.addf %118, %126 : vector<4x128xf32>
    %c0_88 = arith.constant 0 : index
    %c0_89 = arith.constant 0 : index
    %128 = vector.load %arg7[%c0_88, %c0_89] : memref<1x128xf32, #tpu.memory_space<vmem>>, vector<1x128xf32>
    %129 = vector.broadcast %128 : vector<1x128xf32> to vector<4x128xf32>
    %130 = arith.addf %127, %129 : vector<4x128xf32>
    %cst_90 = arith.constant 0.000000e+00 : f32
    %131 = vector.broadcast %cst_90 : f32 to vector<4x128xf32>
    %132 = arith.maximumf %130, %131 : vector<4x128xf32>
    %c0_91 = arith.constant 0 : index
    %c0_92 = arith.constant 0 : index
    %133 = vector.load %arg8[%c0_91, %c0_92] : memref<128x128xf32, #tpu.memory_space<vmem>>, vector<128x128xf32>
    %cst_93 = arith.constant dense<0.000000e+00> : vector<4x128xf32>
    %134 = tpu.matmul %132, %133, %cst_93 {dimension_numbers = #tpu.dot_dimension_numbers<[1], [0], [0], [1], [0, 0, 1, 1], [], []>} : vector<4x128xf32>, vector<128x128xf32>, vector<4x128xf32> -> vector<4x128xf32>
    %c0_94 = arith.constant 0 : index
    %c0_95 = arith.constant 0 : index
    %135 = vector.load %arg9[%c0_94, %c0_95] : memref<1x128xf32, #tpu.memory_space<vmem>>, vector<1x128xf32>
    %136 = vector.broadcast %135 : vector<1x128xf32> to vector<4x128xf32>
    %137 = arith.addf %134, %136 : vector<4x128xf32>
    %cst_96 = arith.constant 0.000000e+00 : f32
    %138 = vector.broadcast %cst_96 : f32 to vector<4x128xf32>
    %139 = arith.maximumf %137, %138 : vector<4x128xf32>
    %c0_97 = arith.constant 0 : index
    %c0_98 = arith.constant 0 : index
    %140 = vector.load %arg10[%c0_97, %c0_98] : memref<128x128xf32, #tpu.memory_space<vmem>>, vector<128x128xf32>
    %cst_99 = arith.constant dense<0.000000e+00> : vector<4x128xf32>
    %141 = tpu.matmul %139, %140, %cst_99 {dimension_numbers = #tpu.dot_dimension_numbers<[1], [0], [0], [1], [0, 0, 1, 1], [], []>} : vector<4x128xf32>, vector<128x128xf32>, vector<4x128xf32> -> vector<4x128xf32>
    %c0_100 = arith.constant 0 : index
    %c0_101 = arith.constant 0 : index
    %142 = vector.load %arg11[%c0_100, %c0_101] : memref<1x128xf32, #tpu.memory_space<vmem>>, vector<1x128xf32>
    %143 = vector.broadcast %142 : vector<1x128xf32> to vector<4x128xf32>
    %144 = arith.addf %141, %143 : vector<4x128xf32>
    %c0_102 = arith.constant 0 : index
    %c0_103 = arith.constant 0 : index
    %c0_104 = arith.constant 0 : index
    %145 = vector.load %arg12[%c0_102, %c0_103, %c0_104] : memref<1x4x128xf32, #tpu.memory_space<vmem>>, vector<1x4x128xf32>
    %146 = vector.shape_cast %145 : vector<1x4x128xf32> to vector<4x128xf32>
    %147 = vector.shape_cast %144 : vector<4x128xf32> to vector<1x4x128xf32>
    tpu.vector_store %arg12[%c0_102, %c0_103, %c0_104], %147 {strides = array<i32>} : memref<1x4x128xf32, #tpu.memory_space<vmem>>, vector<1x4x128xf32>,
    return
  }
  func.func @transform_0(%arg0: i32) -> (i32, i32, i32) {
    %c0_i32 = arith.constant 0 : i32
    %c0_i32_0 = arith.constant 0 : i32
    %c0_i32_1 = arith.constant 0 : i32
    return %arg0, %c0_i32, %c0_i32_0 : i32, i32, i32
  }
  func.func @transform_1(%arg0: i32) -> (i32, i32, i32) {
    %c0_i32 = arith.constant 0 : i32
    %c0_i32_0 = arith.constant 0 : i32
    %c0_i32_1 = arith.constant 0 : i32
    %c0_i32_2 = arith.constant 0 : i32
    return %c0_i32, %c0_i32_0, %c0_i32_1 : i32, i32, i32
  }
  func.func @transform_2(%arg0: i32) -> (i32, i32) {
    %c0_i32 = arith.constant 0 : i32
    %c0_i32_0 = arith.constant 0 : i32
    %c0_i32_1 = arith.constant 0 : i32
    return %c0_i32, %c0_i32_0 : i32, i32
  }
  func.func @transform_3(%arg0: i32) -> (i32, i32, i32) {
    %c0_i32 = arith.constant 0 : i32
    %c0_i32_0 = arith.constant 0 : i32
    %c0_i32_1 = arith.constant 0 : i32
    %c0_i32_2 = arith.constant 0 : i32
    return %c0_i32, %c0_i32_0, %c0_i32_1 : i32, i32, i32
  }
  func.func @transform_4(%arg0: i32) -> (i32, i32) {
    %c0_i32 = arith.constant 0 : i32
    %c0_i32_0 = arith.constant 0 : i32
    %c0_i32_1 = arith.constant 0 : i32
    return %c0_i32, %c0_i32_0 : i32, i32
  }
  func.func @transform_5(%arg0: i32) -> (i32, i32, i32) {
    %c0_i32 = arith.constant 0 : i32
    %c0_i32_0 = arith.constant 0 : i32
    %c0_i32_1 = arith.constant 0 : i32
    %c0_i32_2 = arith.constant 0 : i32
    return %c0_i32, %c0_i32_0, %c0_i32_1 : i32, i32, i32
  }
  func.func @transform_6(%arg0: i32) -> (i32, i32) {
    %c0_i32 = arith.constant 0 : i32
    %c0_i32_0 = arith.constant 0 : i32
    %c0_i32_1 = arith.constant 0 : i32
    return %c0_i32, %c0_i32_0 : i32, i32
  }
  func.func @transform_7(%arg0: i32) -> (i32, i32) {
    %c0_i32 = arith.constant 0 : i32
    %c0_i32_0 = arith.constant 0 : i32
    %c0_i32_1 = arith.constant 0 : i32
    return %c0_i32, %c0_i32_0 : i32, i32
  }
  func.func @transform_8(%arg0: i32) -> (i32, i32) {
    %c0_i32 = arith.constant 0 : i32
    %c0_i32_0 = arith.constant 0 : i32
    %c0_i32_1 = arith.constant 0 : i32
    return %c0_i32, %c0_i32_0 : i32, i32
  }
  func.func @transform_9(%arg0: i32) -> (i32, i32) {
    %c0_i32 = arith.constant 0 : i32
    %c0_i32_0 = arith.constant 0 : i32
    %c0_i32_1 = arith.constant 0 : i32
    return %c0_i32, %c0_i32_0 : i32, i32
  }
  func.func @transform_10(%arg0: i32) -> (i32, i32) {
    %c0_i32 = arith.constant 0 : i32
    %c0_i32_0 = arith.constant 0 : i32
    %c0_i32_1 = arith.constant 0 : i32
    return %c0_i32, %c0_i32_0 : i32, i32
  }
  func.func @transform_11(%arg0: i32) -> (i32, i32, i32) {
    %c0_i32 = arith.constant 0 : i32
    %c0_i32_0 = arith.constant 0 : i32
    %c0_i32_1 = arith.constant 0 : i32
    return %arg0, %c0_i32, %c0_i32_0 : i32, i32, i32
  }
}

</mosaic_0001>

<bundles_post_ra>
// kernel: net_forward.1
= control target key start
LH: loop header
LB: loop body
LE: loop exit
PB: predicated region body
PF: predicated region fallthrough
CT: control target
= control target key end

     0   :  { %16 = vsyncpa [#allocation4], 0  ;;  %s6856_s0 = inlined_call_operand.vmem [shape: f32[8,40,128], index: 0, kind: input, shape index: {}]   ;;  %s6857_s1 = inlined_call_operand.vmem [shape: f32[5,128,256], index: 1, kind: input, shape index: {}]   ;;  %s6858_s2 = inlined_call_operand.vmem [shape: f32[1,128], index: 2, kind: input, shape index: {}]   ;;  %s6859_s3 = inlined_call_operand.vmem [shape: f32[5,128,256], index: 3, kind: input, shape index: {}]   ;;  %s6860_s4 = inlined_call_operand.vmem [shape: f32[1,128], index: 4, kind: input, shape index: {}]   ;;  %s6861_s5 = inlined_call_operand.vmem [shape: f32[5,128,128], index: 5, kind: input, shape index: {}]   ;;  %s6862_s6 = inlined_call_operand.vmem [shape: f32[1,128], index: 6, kind: input, shape index: {}]   ;;  %s6863_s7 = inlined_call_operand.vmem [shape: f32[128,128], index: 7, kind: input, shape index: {}]   ;;  %s6864_s8 = inlined_call_operand.vmem [shape: f32[1,128], index: 8, kind: input, shape index: {}]   ;;  %s6865_s9 = inlined_call_operand.vmem [shape: f32[128,128], index: 9, kind: input, shape index: {}]   ;;  %s6866_s10 = inlined_call_operand.vmem [shape: f32[1,128], index: 10, kind: input, shape index: {}]   ;;  %s6867_s11 = inlined_call_operand.hbm [shape: f32[2,4,128], index: 11, kind: output, shape index: {}]  }
   0x1   :  { %18 = vsyncpa [#allocation4 + $0x1], 0  ;;  %s4945_s17 = smov 0   ;;  %s4947_s18 = smov 0  }
   0x2   :  { %s4949_s19 = smov 0   ;;  %s4951_s20 = smov 0  }
   0x3 LB: > { %6869 = sst [smem:[#allocation6_spill]] %s4875_s19  ;;  %s4966_s21 = sadd.s32 4294967295, %s4879_s20   ;;  %s4879_s20 = sphi %s4951_s20, %s6877_s20   ;;  %s4875_s19 = sphi %s4949_s19, %s6874_s19   ;;  %s4871_s18 = sphi %s4947_s18, %s6876_s18   ;;  %s4867_s17 = sphi %s4945_s17, %s6875_s17  }
   0x4   : > { %s3392_s22 = sadd.s32 4294967294, %s4879_s20   ;;  %s4970_s23 = sadd.s32 1, %s4879_s20  }
   0x5   : > { %s267_s24 = sadd.s32 1, %s4875_s19  ;;  %s264_s25 = ssub.s32 %s4879_s20, %s4970_s23 }
   0x6   : > { %p277_p0 = scmp.ne.s32.totalorder %s4875_s19, %s4871_s18  ;;  %p265_p1 = scmp.eq.s32.totalorder %s264_s25, 0 }
   0x7   : > { %p278_p2 = scmp.eq.s32.totalorder %s4966_s21, 1  ;;  %p283_p3 = scmp.ne.s32.totalorder %s4871_s18, %s4867_s17 }
   0x8   : > { %p284_p4 = scmp.eq.s32.totalorder %s3392_s22, 1  ;;  %p3395_p7 = scmp.ge.s32.totalorder %s4879_s20, 1 }
   0x9   : > { %s4981_s26 = scalar_select %p265_p1, %s4875_s19, %s267_s24  }
   0xa   : > { %p4983_p5 = por %p278_p2, %p277_p0  ;;  %p4987_p6 = por %p284_p4, %p283_p3 }
   0xb   : > { %6870 = sst [smem:[#allocation7_spill]] %s4981_s26  ;;  %p342_p8 = scmp.lt.s32.totalorder %s4879_s20, 3 }
   0xd   : > { %p343_p9 = pnand %p3395_p7, %p342_p8 }
   0xe   : > { %v3400_v0 = vld [vmem:[%s6857_s1 + $0x108] sm:$0xff] (!%p343_p9)  ;;  %v3402_v1 = vld [vmem:[%s6857_s1 + $0x118] sm:$0xff] (!%p343_p9)  ;;  %v3399_v2 = vld [vmem:[%s6857_s1 + $0x100] sm:$0xff] (!%p343_p9)  ;;  %v4881_v7 = vmov (!%p343_p9), 0.0   ;;  %s3397_s29 = sshll.u32 (!%p343_p9), %s4966_s21, 2  ;;  %vm1713_vm0 = vcmask (!%p343_p9), 1046528  }
   0xf   : > { %346 = sbr.rel (%p343_p9) target bundleno = 1741 (0x6cd), region = 64  ;;  %v4092_v3 = vpack.c.bf16 (!%p343_p9), %v3402_v1, %v3400_v0  ;;  %v3401_v4 = vld [vmem:[%s6857_s1 + $0x110] sm:$0xff] (!%p343_p9)  ;;  %v3404_v5 = vld [vmem:[%s6857_s1 + $0x128] sm:$0xff] (!%p343_p9)  ;;  %v3406_v6 = vld [vmem:[%s6857_s1 + $0x138] sm:$0xff] (!%p343_p9)  ;;  %551 = vmatprep.mubr.f32.mxu0 (!%p343_p9), %v4881_v7  ;;  %1606 = vst [vmem:[#allocation2 + $0x20] sm:$0xff] (!%p343_p9), %v4881_v7  ;;  %1839 = vmatprep.mubr.f32.mxu1 (!%p343_p9), %v4881_v7  ;;  %p384_p10 = scmp.lt.s32.totalorder (!%p343_p9), %s3397_s29, 7 }
  0x10   : > { %1607 = vst [vmem:[#allocation2 + $0x48] sm:$0xff] (!%p343_p9), %v4881_v7  ;;  %1608 = vst [vmem:[#allocation2 + $0x70] sm:$0xff] (!%p343_p9), %v4881_v7  ;;  %v4094_v8 = vpack.c.bf16 (!%p343_p9), %v3401_v4, %v3399_v2  ;;  %v4096_v9 = vpack.c.bf16 (!%p343_p9), %v3406_v6, %v3404_v5  ;;  %v3403_v10 = vld [vmem:[%s6857_s1 + $0x120] sm:$0xff] (!%p343_p9)  ;;  %v3405_v11 = vld [vmem:[%s6857_s1 + $0x130] sm:$0xff] (!%p343_p9)  ;;  %vm2001_vm1 = vcmask (!%p343_p9), 1045504   ;;  %vm2192_vm2 = vcmask (!%p343_p9), 1044480  }
  0x11   : > { %1609 = vst [vmem:[#allocation2 + $0x98] sm:$0xff] (!%p343_p9), %v4881_v7  ;;  %v3408_v12 = vld [vmem:[%s6857_s1 + $0x148] sm:$0xff] (!%p343_p9)  ;;  %4093 = vmatprep.subr.bf16.mxu0 (!%p343_p9), %v4092_v3  ;;  %v3410_v13 = vld [vmem:[%s6857_s1 + $0x158] sm:$0xff] (!%p343_p9)  ;;  %v4098_v14 = vpack.c.bf16 (!%p343_p9), %v3405_v11, %v3403_v10  ;;  %v3407_v16 = vld [vmem:[%s6857_s1 + $0x140] sm:$0xff] (!%p343_p9)  ;;  %vm2383_vm3 = vcmask (!%p343_p9), 1043456   ;;  %vm4883_vm4 = vmmov (!%p343_p9), 0  }
  0x12   : > { %4095 = vmatpush1.bf16.msra.mxu0 (!%p343_p9), %v4094_v8  ;;  %v4100_v15 = vpack.c.bf16 (!%p343_p9), %v3410_v13, %v3408_v12  ;;  %v3409_v17 = vld [vmem:[%s6857_s1 + $0x150] sm:$0xff] (!%p343_p9)  ;;  %v3412_v18 = vld [vmem:[%s6857_s1 + $0x168] sm:$0xff] (!%p343_p9)  ;;  %v3414_v19 = vld [vmem:[%s6857_s1 + $0x178] sm:$0xff] (!%p343_p9)  ;;  %vm2660_vm5 = vcmask (!%p343_p9), 1041409   ;;  %vm2662_vm6 = vcmask (!%p343_p9), 1042434   ;;  %vm2665_vm7 = vcmask (!%p343_p9), 1043459  }
  0x13   : > { %4097 = vmatprep.subr.bf16.mxu0 (!%p343_p9), %v4096_v9  ;;  %v4102_v20 = vpack.c.bf16 (!%p343_p9), %v3409_v17, %v3407_v16  ;;  %v4104_v21 = vpack.c.bf16 (!%p343_p9), %v3414_v19, %v3412_v18  ;;  %v3411_v22 = vld [vmem:[%s6857_s1 + $0x160] sm:$0xff] (!%p343_p9)  ;;  %v3413_v23 = vld [vmem:[%s6857_s1 + $0x170] sm:$0xff] (!%p343_p9)  ;;  %v3416_v24 = vld [vmem:[%s6857_s1 + $0x188] sm:$0xff] (!%p343_p9)  ;;  %s380_s15 = sand.u32 (!%p343_p9), 1, %s4871_s18   ;;  %s3725_s25 = sshll.u32 (!%p343_p9), %s4966_s21, 6 }
  0x14   : > { %v3418_v25 = vld [vmem:[%s6857_s1 + $0x198] sm:$0xff] (!%p343_p9)  ;;  %v4106_v26 = vpack.c.bf16 (!%p343_p9), %v3413_v23, %v3411_v22  ;;  %v3415_v28 = vld [vmem:[%s6857_s1 + $0x180] sm:$0xff] (!%p343_p9)  ;;  %v3417_v29 = vld [vmem:[%s6857_s1 + $0x190] sm:$0xff] (!%p343_p9)  ;;  %s3396_s22 = sshll.u32 (!%p343_p9), %s380_s15, 2  ;;  %s6814_s14 = scalar_lea.hbm (!%p343_p9), %s6867_s11, %s3725_s25 }
  0x15   : > { %v4108_v27 = vpack.c.bf16 (!%p343_p9), %v3418_v25, %v3416_v24  ;;  %v3420_v30 = vld [vmem:[%s6857_s1 + $0x1a8] sm:$0xff] (!%p343_p9)  ;;  %v3422_v31 = vld [vmem:[%s6857_s1 + $0x1b8] sm:$0xff] (!%p343_p9)  ;;  %v4110_v32 = vpack.c.bf16 (!%p343_p9), %v3417_v29, %v3415_v28  ;;  %v3419_v34 = vld [vmem:[%s6857_s1 + $0x1a0] sm:$0xff] (!%p343_p9)  ;;  %s382_s12 = scalar_lea.vmem (!%p343_p9), [#allocation3], %s3396_s22  ;;  %s3320_s19 = scalar_lea.sflag (!%p343_p9), [#allocation4], %s380_s15 }
  0x16   : > { %4099 = vmatpush1.bf16.msra.mxu0 %v4098_v14  ;;  %v4112_v33 = vpack.c.bf16 %v3422_v31, %v3420_v30  ;;  %v3421_v35 = vld [vmem:[%s6857_s1 + $0x1b0] sm:$0xff]  ;;  %v3424_v36 = vld [vmem:[%s6857_s1 + $0x1c8] sm:$0xff]  ;;  %v3426_v37 = vld [vmem:[%s6857_s1 + $0x1d8] sm:$0xff]  ;;  %s6879_s29 = smov (!%p384_p10, %s3397_s29), 7  ;;  %s3333_s26 = sshll.u32 %s382_s12, 4  ;;  %s6816_s26 = int_to_ptr.vmem [resolvable:$true] %s3333_s26 }
  0x17   : > { %4101 = vmatprep.subr.bf16.mxu0 %v4100_v15  ;;  %v4114_v38 = vpack.c.bf16 %v3421_v35, %v3419_v34  ;;  %v4116_v39 = vpack.c.bf16 %v3426_v37, %v3424_v36  ;;  %v3423_v40 = vld [vmem:[%s6857_s1 + $0x1c0] sm:$0xff]  ;;  %v3425_v41 = vld [vmem:[%s6857_s1 + $0x1d0] sm:$0xff]  ;;  %v3428_v42 = vld [vmem:[%s6857_s1 + $0x1e8] sm:$0xff]  ;;  %s4772_s30 = smul.u32 40, %s6879_s29  ;;  %s4884_s21 = smov [#allocation3]  }
  0x18   : > { %v3430_v43 = vld [vmem:[%s6857_s1 + $0x1f8] sm:$0xff]  ;;  %v4118_v44 = vpack.c.bf16 %v3425_v41, %v3423_v40  ;;  %v3427_v46 = vld [vmem:[%s6857_s1 + $0x1e0] sm:$0xff]  ;;  %v3429_v47 = vld [vmem:[%s6857_s1 + $0x1f0] sm:$0xff]  ;;  %s4821_s22 = sshll.u32 %s4884_s21, 4  ;;  %s4822_s22 = int_to_ptr.vmem [resolvable:$false] %s4821_s22 }
  0x19   : > { %v4120_v45 = vpack.c.bf16 %v3430_v43, %v3428_v42  ;;  %v407_v48 = vld [vmem:[%s6857_s1 + $0x8] sm:$0xff]  ;;  %v409_v49 = vld [vmem:[%s6857_s1 + $0x18] sm:$0xff]  ;;  %v4122_v50 = vpack.c.bf16 %v3429_v47, %v3427_v46  ;;  %s5105_s16 = scalar_lea.vmem %s6856_s0, %s4772_s30  ;;  %v406_v52 = vld [vmem:[%s6857_s1] sm:$0xff]  ;;  %s4817_s30 = scalar_lea.vmem %s6816_s26, 64 }
  0x1a   : > { %4103 = vmatpush1.bf16.msra.mxu0 %v4102_v20  ;;  %v4124_v51 = vpack.c.bf16 %v409_v49, %v407_v48  ;;  %v408_v53 = vld [vmem:[%s6857_s1 + $0x10] sm:$0xff]  ;;  %v411_v54 = vld [vmem:[%s6857_s1 + $0x28] sm:$0xff]  ;;  %v413_v55 = vld [vmem:[%s6857_s1 + $0x38] sm:$0xff]  ;;  %p4818_p11 = scmp.ne.s32.totalorder %s6816_s26, %s4817_s30  ;;  %s4823_s29 = scalar_lea.vmem %s4822_s22, 128 }
  0x1b   : > { %4105 = vmatprep.subr.bf16.mxu0 %v4104_v21  ;;  %v438_v56 = vld [vmem:[%s5105_s16 + $0x1] sm:$0xff]  ;;  %v4126_v57 = vpack.c.bf16 %v408_v53, %v406_v52  ;;  %v4128_v58 = vpack.c.bf16 %v413_v55, %v411_v54  ;;  %v412_v60 = vld [vmem:[%s6857_s1 + $0x30] sm:$0xff]  ;;  %v417_v62 = vld [vmem:[%s6857_s1 + $0x58] sm:$0xff]  ;;  %p4824_p0 = scmp.lt.s32.totalorder %s6816_s26, %s4822_s22  ;;  %p4825_p1 = scmp.lt.s32.totalorder %s4823_s29, %s4817_s30 }
  0x1c   : > { %v410_v59 = vld [vmem:[%s6857_s1 + $0x20] sm:$0xff]  ;;  %v415_v61 = vld [vmem:[%s6857_s1 + $0x48] sm:$0xff]  ;;  %v416_v3 = vld [vmem:[%s6857_s1 + $0x50] sm:$0xff]  ;;  %p4819_p12 = pnand %p4818_p11, %p4983_p5 }
  0x1d   : > { %v439_v63 = vld [vmem:[%s5105_s16 + $0x9] sm:$0xff]  ;;  %v4130_v0 = vpack.c.bf16 %v412_v60, %v410_v59  ;;  %v4132_v1 = vpack.c.bf16 %v417_v62, %v415_v61  ;;  %v414_v2 = vld [vmem:[%s6857_s1 + $0x40] sm:$0xff]  ;;  %v421_v5 = vld [vmem:[%s6857_s1 + $0x78] sm:$0xff]  ;;  %p4826_p2 = por %p4825_p1, %p4824_p0 }
  0x1e   : > { %4107 = vmatpush1.bf16.msra.mxu0 %v4106_v26  ;;  %v419_v4 = vld [vmem:[%s6857_s1 + $0x68] sm:$0xff]  ;;  %v440_v6 = vld [vmem:[%s5105_s16 + $0x11] sm:$0xff]  ;;  %v4134_v8 = vpack.c.bf16 %v416_v3, %v414_v2  ;;  %v418_v10 = vld [vmem:[%s6857_s1 + $0x60] sm:$0xff]  ;;  %p4820_p13 = pneg %p4819_p12 }
  0x1f   : > { %4109 = vmatprep.subr.bf16.mxu0 %v4108_v27  ;;  %v4136_v9 = vpack.c.bf16 %v421_v5, %v419_v4  ;;  %v420_v11 = vld [vmem:[%s6857_s1 + $0x70] sm:$0xff]  ;;  %v423_v12 = vld [vmem:[%s6857_s1 + $0x88] sm:$0xff]  ;;  %v425_v13 = vld [vmem:[%s6857_s1 + $0x98] sm:$0xff] }
  0x20   : > { %v441_v14 = vld [vmem:[%s5105_s16 + $0x19] sm:$0xff]  ;;  %v4138_v15 = vpack.c.bf16 %v420_v11, %v418_v10  ;;  %v4140_v16 = vpack.c.bf16 %v425_v13, %v423_v12  ;;  %v424_v18 = vld [vmem:[%s6857_s1 + $0x90] sm:$0xff]  ;;  %v427_v19 = vld [vmem:[%s6857_s1 + $0xa8] sm:$0xff]  ;;  %p4827_p3 = pnand %p4826_p2, %p4820_p13 }
  0x21   : > { %v422_v17 = vld [vmem:[%s6857_s1 + $0x80] sm:$0xff]  ;;  %v429_v20 = vld [vmem:[%s6857_s1 + $0xb8] sm:$0xff]  ;;  %v442_v21 = vld [vmem:[%s5105_s16 + $0x29] sm:$0xff] }
  0x22   : > { %4111 = vmatpush1.bf16.msra.mxu0 %v4110_v32  ;;  %v4142_v22 = vpack.c.bf16 %v424_v18, %v422_v17  ;;  %v4144_v23 = vpack.c.bf16 %v429_v20, %v427_v19  ;;  %v426_v24 = vld [vmem:[%s6857_s1 + $0xa0] sm:$0xff]  ;;  %v428_v25 = vld [vmem:[%s6857_s1 + $0xb0] sm:$0xff]  ;;  %v431_v26 = vld [vmem:[%s6857_s1 + $0xc8] sm:$0xff] }
  0x23   : > { %4113 = vmatprep.subr.bf16.mxu0 %v4112_v33  ;;  %v433_v27 = vld [vmem:[%s6857_s1 + $0xd8] sm:$0xff]  ;;  %v4146_v29 = vpack.c.bf16 %v428_v25, %v426_v24  ;;  %v430_v31 = vld [vmem:[%s6857_s1 + $0xc0] sm:$0xff]  ;;  %v432_v32 = vld [vmem:[%s6857_s1 + $0xd0] sm:$0xff] }
  0x24   : > { %v443_v28 = vld [vmem:[%s5105_s16 + $0x31] sm:$0xff]  ;;  %v4148_v30 = vpack.c.bf16 %v433_v27, %v431_v26  ;;  %v435_v33 = vld [vmem:[%s6857_s1 + $0xe8] sm:$0xff]  ;;  %v444_v35 = vld [vmem:[%s5105_s16 + $0x39] sm:$0xff]  ;;  %v4150_v36 = vpack.c.bf16 %v432_v32, %v430_v31 }
  0x25   : > { %v437_v34 = vld [vmem:[%s6857_s1 + $0xf8] sm:$0xff]  ;;  %v3432_v40 = vld [vmem:[%s6857_s1 + $0x208] sm:$0xff]  ;;  %v3431_v53 = vld [vmem:[%s6857_s1 + $0x200] sm:$0xff] }
  0x26   : > { %4115 = vmatpush1.bf16.msra.mxu0 %v4114_v38  ;;  %v4152_v37 = vpack.c.bf16 %v437_v34, %v435_v33  ;;  %v434_v38 = vld [vmem:[%s6857_s1 + $0xe0] sm:$0xff]  ;;  %v3434_v41 = vld [vmem:[%s6857_s1 + $0x218] sm:$0xff]  ;;  %v449_v48 = vld [vmem:[%s5105_s16 + $0x69] sm:$0xff] }
  0x27   : > { %4117 = vmatprep.subr.bf16.mxu0 %v4116_v39  ;;  %v436_v39 = vld [vmem:[%s6857_s1 + $0xf0] sm:$0xff]  ;;  %v445_v42 = vld [vmem:[%s5105_s16 + $0x41] sm:$0xff]  ;;  %v447_v46 = vld [vmem:[%s5105_s16 + $0x59] sm:$0xff] }
  0x28   : > { %v4154_v43 = vpack.c.bf16 %v436_v39, %v434_v38  ;;  %v448_v47 = vld [vmem:[%s5105_s16 + $0x61] sm:$0xff]  ;;  %v450_v49 = vld [vmem:[%s5105_s16 + $0x79] sm:$0xff]  ;;  %v453_v52 = vld [vmem:[%s5105_s16 + $0x91] sm:$0xff] }
  0x29   : > { %v3433_v54 = vld [vmem:[%s6857_s1 + $0x210] sm:$0xff]  ;;  %v3436_v55 = vld [vmem:[%s6857_s1 + $0x228] sm:$0xff]  ;;  %v3435_v60 = vld [vmem:[%s6857_s1 + $0x220] sm:$0xff] }
  0x2a   : > { %4119 = vmatpush1.bf16.msra.mxu0 %v4118_v44  ;;  %v4156_v44 = vpack.c.bf16 %v3434_v41, %v3432_v40  ;;  %v3437_v61 = vld [vmem:[%s6857_s1 + $0x230] sm:$0xff]  ;;  %v3440_v62 = vld [vmem:[%s6857_s1 + $0x248] sm:$0xff]  ;;  %v3439_v3 = vld [vmem:[%s6857_s1 + $0x240] sm:$0xff] }
  0x2b   : > { %4121 = vmatprep.subr.bf16.mxu0 %v4120_v45  ;;  %v446_v45 = vld [vmem:[%s5105_s16 + $0x51] sm:$0xff]  ;;  %v3444_v5 = vld [vmem:[%s6857_s1 + $0x268] sm:$0xff]  ;;  %v3443_v11 = vld [vmem:[%s6857_s1 + $0x260] sm:$0xff] }
  0x2c   : > { %v3441_v4 = vld [vmem:[%s6857_s1 + $0x250] sm:$0xff]  ;;  %v3448_v13 = vld [vmem:[%s6857_s1 + $0x288] sm:$0xff]  ;;  %v3447_v18 = vld [vmem:[%s6857_s1 + $0x280] sm:$0xff] }
  0x2d   : > { %v3445_v12 = vld [vmem:[%s6857_s1 + $0x270] sm:$0xff]  ;;  %v3452_v20 = vld [vmem:[%s6857_s1 + $0x2a8] sm:$0xff]  ;;  %v3451_v25 = vld [vmem:[%s6857_s1 + $0x2a0] sm:$0xff] }
  0x2e   : > { %4123 = vmatpush1.bf16.msra.mxu0 %v4122_v50  ;;  %v451_v50 = vld [vmem:[%s5105_s16 + $0x81] sm:$0xff]  ;;  %v3449_v19 = vld [vmem:[%s6857_s1 + $0x290] sm:$0xff] }
  0x2f   : > { %4125 = vmatprep.subr.bf16.mxu0 %v4124_v51  ;;  %v452_v51 = vld [vmem:[%s5105_s16 + $0x89] sm:$0xff]  ;;  %v3455_v32 = vld [vmem:[%s6857_s1 + $0x2c0] sm:$0xff] }
  0x30   : > { %v3453_v26 = vld [vmem:[%s6857_s1 + $0x2b0] sm:$0xff]  ;;  %v3456_v27 = vld [vmem:[%s6857_s1 + $0x2c8] sm:$0xff]  ;;  %v3459_v39 = vld [vmem:[%s6857_s1 + $0x2e0] sm:$0xff] }
  0x31   : > { %552 = vmatmul.mubr.f32.vlgmr.msra.gmra.mrb[0].mxu0 %v438_v56  ;;  %v3438_v56 = vld [vmem:[%s6857_s1 + $0x238] sm:$0xff]  ;;  %v3457_v33 = vld [vmem:[%s6857_s1 + $0x2d0] sm:$0xff]  ;;  %v3460_v34 = vld [vmem:[%s6857_s1 + $0x2e8] sm:$0xff] }
  0x32   : > { %4127 = vmatpush1.bf16.msra.mxu0 %v4126_v57  ;;  %557 = vmatprep.mubr.f32.mxu0 %v4881_v7  ;;  %v390_v57 = vld [vmem:[%s5105_s16] sm:$0xff]  ;;  %v4160_v59 = vpack.c.bf16 %v3438_v56, %v3436_v55  ;;  %v3461_v40 = vld [vmem:[%s6857_s1 + $0x2f0] sm:$0xff]  ;;  %v3464_v41 = vld [vmem:[%s6857_s1 + $0x308] sm:$0xff] }
  0x33   : > { %4129 = vmatprep.subr.bf16.mxu0 %v4128_v58  ;;  %v4158_v58 = vpack.c.bf16 %v3433_v54, %v3431_v53  ;;  %v405_v53 = vld [vmem:[%s5105_s16 + $0x90] sm:$0xff]  ;;  %v3463_v54 = vld [vmem:[%s6857_s1 + $0x300] sm:$0xff]  ;;  %v3468_v56 = vld [vmem:[%s6857_s1 + $0x328] sm:$0xff] }
  0x34   : > { %v3465_v55 = vld [vmem:[%s6857_s1 + $0x310] sm:$0xff] }
  0x35   : > { %558 = vmatmul.mubr.f32.gmra.mrb[2].mxu0 %v439_v63  ;;  %v3442_v63 = vld [vmem:[%s6857_s1 + $0x258] sm:$0xff] }
  0x36   : > { %563 = vmatprep.mubr.f32.mxu0 %v4881_v7  ;;  %4131 = vmatpush1.bf16.msra.mxu0 %v4130_v0  ;;  %v391_v0 = vld [vmem:[%s5105_s16 + $0x8] sm:$0xff]  ;;  %v4164_v2 = vpack.c.bf16 %v3442_v63, %v3440_v62  ;;  %v3469_v62 = vld [vmem:[%s6857_s1 + $0x330] sm:$0xff] }
  0x37   : > { %4133 = vmatprep.subr.bf16.mxu0 %v4132_v1  ;;  %v4162_v1 = vpack.c.bf16 %v3437_v61, %v3435_v60  ;;  %v3467_v61 = vld [vmem:[%s6857_s1 + $0x320] sm:$0xff]  ;;  %v3472_v63 = vld [vmem:[%s6857_s1 + $0x348] sm:$0xff] }
  0x39   : > { %564 = vmatmul.mubr.f32.gmra.mrb[4].mxu0 %v440_v6  ;;  %v3446_v6 = vld [vmem:[%s6857_s1 + $0x278] sm:$0xff] }
  0x3a   : > { %569 = vmatprep.mubr.f32.mxu0 %v4881_v7  ;;  %4135 = vmatpush1.bf16.msra.mxu0 %v4134_v8  ;;  %v392_v8 = vld [vmem:[%s5105_s16 + $0x10] sm:$0xff]  ;;  %v4168_v10 = vpack.c.bf16 %v3446_v6, %v3444_v5  ;;  %v3476_v6 = vld [vmem:[%s6857_s1 + $0x368] sm:$0xff] }
  0x3b   : > { %4137 = vmatprep.subr.bf16.mxu0 %v4136_v9  ;;  %v4166_v9 = vpack.c.bf16 %v3441_v4, %v3439_v3  ;;  %v3471_v4 = vld [vmem:[%s6857_s1 + $0x340] sm:$0xff]  ;;  %v3473_v5 = vld [vmem:[%s6857_s1 + $0x350] sm:$0xff] }
  0x3d   : > { %570 = vmatmul.mubr.f32.gmra.mrb[6].mxu0 %v441_v14  ;;  %v3450_v14 = vld [vmem:[%s6857_s1 + $0x298] sm:$0xff] }
  0x3e   : > { %575 = vmatprep.mubr.f32.mxu0 %v4881_v7  ;;  %4139 = vmatpush1.bf16.msra.mxu0 %v4138_v15  ;;  %v393_v15 = vld [vmem:[%s5105_s16 + $0x18] sm:$0xff]  ;;  %v4172_v17 = vpack.c.bf16 %v3450_v14, %v3448_v13  ;;  %v3477_v13 = vld [vmem:[%s6857_s1 + $0x370] sm:$0xff]  ;;  %v3480_v14 = vld [vmem:[%s6857_s1 + $0x388] sm:$0xff] }
  0x3f   : > { %4141 = vmatprep.subr.bf16.mxu0 %v4140_v16  ;;  %v4170_v16 = vpack.c.bf16 %v3445_v12, %v3443_v11  ;;  %v3475_v12 = vld [vmem:[%s6857_s1 + $0x360] sm:$0xff] }
  0x41   : > { %576 = vmatmul.mubr.f32.gmra.mrb[8].mxu0 %v442_v21  ;;  %v3454_v21 = vld [vmem:[%s6857_s1 + $0x2b8] sm:$0xff] }
  0x42   : > { %581 = vmatprep.mubr.f32.mxu0 %v4881_v7  ;;  %4143 = vmatpush1.bf16.msra.mxu0 %v4142_v22  ;;  %v394_v22 = vld [vmem:[%s5105_s16 + $0x28] sm:$0xff]  ;;  %v4176_v24 = vpack.c.bf16 %v3454_v21, %v3452_v20  ;;  %v3481_v20 = vld [vmem:[%s6857_s1 + $0x390] sm:$0xff] }
  0x43   : > { %4145 = vmatprep.subr.bf16.mxu0 %v4144_v23  ;;  %v4174_v23 = vpack.c.bf16 %v3449_v19, %v3447_v18  ;;  %v3479_v19 = vld [vmem:[%s6857_s1 + $0x380] sm:$0xff]  ;;  %v3484_v21 = vld [vmem:[%s6857_s1 + $0x3a8] sm:$0xff] }
  0x45   : > { %582 = vmatmul.mubr.f32.gmra.mrb[10].mxu0 %v443_v28  ;;  %v3458_v28 = vld [vmem:[%s6857_s1 + $0x2d8] sm:$0xff] }
  0x46   : > { %587 = vmatprep.mubr.f32.mxu0 %v4881_v7  ;;  %4147 = vmatpush1.bf16.msra.mxu0 %v4146_v29  ;;  %v395_v29 = vld [vmem:[%s5105_s16 + $0x30] sm:$0xff]  ;;  %v4180_v31 = vpack.c.bf16 %v3458_v28, %v3456_v27  ;;  %v3488_v28 = vld [vmem:[%s6857_s1 + $0x3c8] sm:$0xff] }
  0x47   : > { %4149 = vmatprep.subr.bf16.mxu0 %v4148_v30  ;;  %v4178_v30 = vpack.c.bf16 %v3453_v26, %v3451_v25  ;;  %v3483_v26 = vld [vmem:[%s6857_s1 + $0x3a0] sm:$0xff]  ;;  %v3485_v27 = vld [vmem:[%s6857_s1 + $0x3b0] sm:$0xff] }
  0x49   : > { %588 = vmatmul.mubr.f32.gmra.mrb[12].mxu0 %v444_v35  ;;  %v3462_v35 = vld [vmem:[%s6857_s1 + $0x2f8] sm:$0xff] }
  0x4a   : > { %593 = vmatprep.mubr.f32.mxu0 %v4881_v7  ;;  %4151 = vmatpush1.bf16.msra.mxu0 %v4150_v36  ;;  %v396_v36 = vld [vmem:[%s5105_s16 + $0x38] sm:$0xff]  ;;  %v4184_v38 = vpack.c.bf16 %v3462_v35, %v3460_v34  ;;  %v3489_v34 = vld [vmem:[%s6857_s1 + $0x3d0] sm:$0xff]  ;;  %v3492_v35 = vld [vmem:[%s6857_s1 + $0x3e8] sm:$0xff] }
  0x4b   : > { %4153 = vmatprep.subr.bf16.mxu0 %v4152_v37  ;;  %v4182_v37 = vpack.c.bf16 %v3457_v33, %v3455_v32  ;;  %v3487_v33 = vld [vmem:[%s6857_s1 + $0x3c0] sm:$0xff] }
  0x4d   : > { %594 = vmatmul.mubr.f32.gmra.mrb[14].mxu0 %v445_v42  ;;  %v3466_v42 = vld [vmem:[%s6857_s1 + $0x318] sm:$0xff] }
  0x4e   : > { %599 = vmatprep.mubr.f32.mxu0 %v4881_v7  ;;  %4155 = vmatpush1.bf16.msra.mxu0 %v4154_v43  ;;  %v397_v43 = vld [vmem:[%s5105_s16 + $0x40] sm:$0xff] }
  0x4f   : > { %4157 = vmatprep.subr.bf16.mxu0 %v4156_v44  ;;  %v4186_v44 = vpack.c.bf16 %v3461_v40, %v3459_v39  ;;  %v3491_v40 = vld [vmem:[%s6857_s1 + $0x3e0] sm:$0xff] }
  0x51   : > { %600 = vmatmul.mubr.f32.gmra.mrb[16].mxu0 %v446_v45  ;;  %v4188_v45 = vpack.c.bf16 %v3466_v42, %v3464_v41  ;;  %v3493_v41 = vld [vmem:[%s6857_s1 + $0x3f0] sm:$0xff]  ;;  %v3496_v42 = vld [vmem:[%s6857_s1 + $0x408] sm:$0xff] }
  0x52   : > { %605 = vmatprep.mubr.f32.mxu0 %v4881_v7 }
  0x55   : > { %606 = vmatmul.mubr.f32.gmra.mrb[18].mxu0 %v447_v46  ;;  %v398_v46 = vld [vmem:[%s5105_s16 + $0x50] sm:$0xff] }
  0x56   : > { %611 = vmatprep.mubr.f32.mxu0 %v4881_v7 }
  0x59   : > { %612 = vmatmul.mubr.f32.gmra.mrb[20].mxu0 %v448_v47  ;;  %v399_v47 = vld [vmem:[%s5105_s16 + $0x58] sm:$0xff] }
  0x5a   : > { %617 = vmatprep.mubr.f32.mxu0 %v4881_v7 }
  0x5d   : > { %618 = vmatmul.mubr.f32.gmra.mrb[22].mxu0 %v449_v48  ;;  %v400_v48 = vld [vmem:[%s5105_s16 + $0x60] sm:$0xff] }
  0x5e   : > { %623 = vmatprep.mubr.f32.mxu0 %v4881_v7 }
  0x61   : > { %624 = vmatmul.mubr.f32.gmra.mrb[24].mxu0 %v450_v49  ;;  %v401_v49 = vld [vmem:[%s5105_s16 + $0x68] sm:$0xff] }
  0x62   : > { %629 = vmatprep.mubr.f32.mxu0 %v4881_v7 }
  0x65   : > { %630 = vmatmul.mubr.f32.gmra.mrb[26].mxu0 %v451_v50  ;;  %v402_v50 = vld [vmem:[%s5105_s16 + $0x78] sm:$0xff] }
  0x66   : > { %635 = vmatprep.mubr.f32.mxu0 %v4881_v7 }
  0x69   : > { %636 = vmatmul.mubr.f32.gmra.mrb[28].mxu0 %v452_v51  ;;  %v403_v51 = vld [vmem:[%s5105_s16 + $0x80] sm:$0xff] }
  0x6a   : > { %641 = vmatprep.mubr.f32.mxu0 %v4881_v7 }
  0x6d   : > { %642 = vmatmul.mubr.f32.gmra.mrb[30].mxu0 %v453_v52  ;;  %v404_v52 = vld [vmem:[%s5105_s16 + $0x88] sm:$0xff] }
  0x6e   : > { %712 = vmatprep.mubr.f32.mxu0 %v4881_v7 }
  0x71   : > { %713 = vmatmul.mubr.f32.vlgmr.msra.gmra.mrb[0].mxu0 %v390_v57  ;;  %v3470_v57 = vld [vmem:[%s6857_s1 + $0x338] sm:$0xff] }
  0x72   : > { %4159 = vmatpush1.bf16.msra.mxu0 %v4158_v58  ;;  %718 = vmatprep.mubr.f32.mxu0 %v4881_v7  ;;  %v809_v58 = vld [vmem:[%s5105_s16 + $0x2] sm:$0xff]  ;;  %v4192_v60 = vpack.c.bf16 %v3470_v57, %v3468_v56  ;;  %v3497_v56 = vld [vmem:[%s6857_s1 + $0x410] sm:$0xff] }
  0x73   : > { %4161 = vmatprep.subr.bf16.mxu0 %v4160_v59  ;;  %v4190_v59 = vpack.c.bf16 %v3465_v55, %v3463_v54  ;;  %v824_v54 = vld [vmem:[%s5105_s16 + $0x92] sm:$0xff]  ;;  %v3495_v55 = vld [vmem:[%s6857_s1 + $0x400] sm:$0xff]  ;;  %v3500_v57 = vld [vmem:[%s6857_s1 + $0x428] sm:$0xff] }
  0x75   : > { %719 = vmatmul.mubr.f32.gmra.mrb[2].mxu0 %v391_v0  ;;  %v3474_v0 = vld [vmem:[%s6857_s1 + $0x358] sm:$0xff] }
  0x76   : > { %724 = vmatprep.mubr.f32.mxu0 %v4881_v7  ;;  %4163 = vmatpush1.bf16.msra.mxu0 %v4162_v1  ;;  %v810_v1 = vld [vmem:[%s5105_s16 + $0xa] sm:$0xff]  ;;  %v4196_v3 = vpack.c.bf16 %v3474_v0, %v3472_v63 }
  0x77   : > { %4165 = vmatprep.subr.bf16.mxu0 %v4164_v2  ;;  %v4194_v2 = vpack.c.bf16 %v3469_v62, %v3467_v61  ;;  %v3499_v62 = vld [vmem:[%s6857_s1 + $0x420] sm:$0xff]  ;;  %v3501_v63 = vld [vmem:[%s6857_s1 + $0x430] sm:$0xff]  ;;  %v3504_v0 = vld [vmem:[%s6857_s1 + $0x448] sm:$0xff] }
  0x79   : > { %725 = vmatmul.mubr.f32.gmra.mrb[4].mxu0 %v392_v8  ;;  %v3478_v8 = vld [vmem:[%s6857_s1 + $0x378] sm:$0xff] }
  0x7a   : > { %730 = vmatprep.mubr.f32.mxu0 %v4881_v7  ;;  %4167 = vmatpush1.bf16.msra.mxu0 %v4166_v9  ;;  %v811_v9 = vld [vmem:[%s5105_s16 + $0x12] sm:$0xff]  ;;  %v4200_v11 = vpack.c.bf16 %v3478_v8, %v3476_v6  ;;  %v3508_v8 = vld [vmem:[%s6857_s1 + $0x468] sm:$0xff] }
  0x7b   : > { %4169 = vmatprep.subr.bf16.mxu0 %v4168_v10  ;;  %v4198_v10 = vpack.c.bf16 %v3473_v5, %v3471_v4  ;;  %v3503_v5 = vld [vmem:[%s6857_s1 + $0x440] sm:$0xff]  ;;  %v3505_v6 = vld [vmem:[%s6857_s1 + $0x450] sm:$0xff] }
  0x7d   : > { %731 = vmatmul.mubr.f32.gmra.mrb[6].mxu0 %v393_v15  ;;  %v3482_v15 = vld [vmem:[%s6857_s1 + $0x398] sm:$0xff] }
  0x7e   : > { %736 = vmatprep.mubr.f32.mxu0 %v4881_v7  ;;  %4171 = vmatpush1.bf16.msra.mxu0 %v4170_v16  ;;  %v812_v16 = vld [vmem:[%s5105_s16 + $0x1a] sm:$0xff]  ;;  %v4204_v18 = vpack.c.bf16 %v3482_v15, %v3480_v14  ;;  %v3509_v14 = vld [vmem:[%s6857_s1 + $0x470] sm:$0xff]  ;;  %v3512_v15 = vld [vmem:[%s6857_s1 + $0x488] sm:$0xff] }
  0x7f   : > { %4173 = vmatprep.subr.bf16.mxu0 %v4172_v17  ;;  %v4202_v17 = vpack.c.bf16 %v3477_v13, %v3475_v12  ;;  %v3507_v13 = vld [vmem:[%s6857_s1 + $0x460] sm:$0xff] }
  0x81   : > { %737 = vmatmul.mubr.f32.gmra.mrb[8].mxu0 %v394_v22  ;;  %v3486_v22 = vld [vmem:[%s6857_s1 + $0x3b8] sm:$0xff] }
  0x82   : > { %742 = vmatprep.mubr.f32.mxu0 %v4881_v7  ;;  %4175 = vmatpush1.bf16.msra.mxu0 %v4174_v23  ;;  %v813_v23 = vld [vmem:[%s5105_s16 + $0x2a] sm:$0xff]  ;;  %v4208_v25 = vpack.c.bf16 %v3486_v22, %v3484_v21 }
  0x83   : > { %4177 = vmatprep.subr.bf16.mxu0 %v4176_v24  ;;  %v4206_v24 = vpack.c.bf16 %v3481_v20, %v3479_v19  ;;  %v3511_v20 = vld [vmem:[%s6857_s1 + $0x480] sm:$0xff]  ;;  %v3513_v21 = vld [vmem:[%s6857_s1 + $0x490] sm:$0xff]  ;;  %v3516_v22 = vld [vmem:[%s6857_s1 + $0x4a8] sm:$0xff] }
  0x85   : > { %743 = vmatmul.mubr.f32.gmra.mrb[10].mxu0 %v395_v29  ;;  %v3490_v29 = vld [vmem:[%s6857_s1 + $0x3d8] sm:$0xff] }
  0x86   : > { %748 = vmatprep.mubr.f32.mxu0 %v4881_v7  ;;  %4179 = vmatpush1.bf16.msra.mxu0 %v4178_v30  ;;  %v814_v30 = vld [vmem:[%s5105_s16 + $0x32] sm:$0xff]  ;;  %v4212_v32 = vpack.c.bf16 %v3490_v29, %v3488_v28  ;;  %v3520_v29 = vld [vmem:[%s6857_s1 + $0x4c8] sm:$0xff] }
  0x87   : > { %4181 = vmatprep.subr.bf16.mxu0 %v4180_v31  ;;  %v4210_v31 = vpack.c.bf16 %v3485_v27, %v3483_v26  ;;  %v3515_v27 = vld [vmem:[%s6857_s1 + $0x4a0] sm:$0xff]  ;;  %v3517_v28 = vld [vmem:[%s6857_s1 + $0x4b0] sm:$0xff] }
  0x89   : > { %749 = vmatmul.mubr.f32.gmra.mrb[12].mxu0 %v396_v36  ;;  %v3494_v36 = vld [vmem:[%s6857_s1 + $0x3f8] sm:$0xff] }
  0x8a   : > { %754 = vmatprep.mubr.f32.mxu0 %v4881_v7  ;;  %4183 = vmatpush1.bf16.msra.mxu0 %v4182_v37  ;;  %v815_v37 = vld [vmem:[%s5105_s16 + $0x3a] sm:$0xff]  ;;  %v4216_v39 = vpack.c.bf16 %v3494_v36, %v3492_v35  ;;  %v3521_v35 = vld [vmem:[%s6857_s1 + $0x4d0] sm:$0xff]  ;;  %v3524_v36 = vld [vmem:[%s6857_s1 + $0x4e8] sm:$0xff] }
  0x8b   : > { %4185 = vmatprep.subr.bf16.mxu0 %v4184_v38  ;;  %v4214_v38 = vpack.c.bf16 %v3489_v34, %v3487_v33  ;;  %v3519_v34 = vld [vmem:[%s6857_s1 + $0x4c0] sm:$0xff] }
  0x8d   : > { %755 = vmatmul.mubr.f32.gmra.mrb[14].mxu0 %v397_v43  ;;  %v3498_v43 = vld [vmem:[%s6857_s1 + $0x418] sm:$0xff] }
  0x8e   : > { %760 = vmatprep.mubr.f32.mxu0 %v4881_v7  ;;  %4187 = vmatpush1.bf16.msra.mxu0 %v4186_v44  ;;  %v816_v44 = vld [vmem:[%s5105_s16 + $0x42] sm:$0xff] }
  0x8f   : > { %4189 = vmatprep.subr.bf16.mxu0 %v4188_v45  ;;  %v4218_v45 = vpack.c.bf16 %v3493_v41, %v3491_v40  ;;  %v3523_v41 = vld [vmem:[%s6857_s1 + $0x4e0] sm:$0xff] }
  0x91   : > { %761 = vmatmul.mubr.f32.gmra.mrb[16].mxu0 %v398_v46  ;;  %v4220_v46 = vpack.c.bf16 %v3498_v43, %v3496_v42  ;;  %v3525_v42 = vld [vmem:[%s6857_s1 + $0x4f0] sm:$0xff]  ;;  %v1058_v43 = vld [vmem:[%s5105_s16 + $0x43] sm:$0xff] }
  0x92   : > { %766 = vmatprep.mubr.f32.mxu0 %v4881_v7 }
  0x95   : > { %767 = vmatmul.mubr.f32.gmra.mrb[18].mxu0 %v399_v47  ;;  %v817_v47 = vld [vmem:[%s5105_s16 + $0x52] sm:$0xff] }
  0x96   : > { %772 = vmatprep.mubr.f32.mxu0 %v4881_v7 }
  0x99   : > { %773 = vmatmul.mubr.f32.gmra.mrb[20].mxu0 %v400_v48  ;;  %v818_v48 = vld [vmem:[%s5105_s16 + $0x5a] sm:$0xff] }
  0x9a   : > { %778 = vmatprep.mubr.f32.mxu0 %v4881_v7 }
  0x9d   : > { %779 = vmatmul.mubr.f32.gmra.mrb[22].mxu0 %v401_v49  ;;  %v819_v49 = vld [vmem:[%s5105_s16 + $0x62] sm:$0xff] }
  0x9e   : > { %784 = vmatprep.mubr.f32.mxu0 %v4881_v7 }
  0xa1   : > { %785 = vmatmul.mubr.f32.gmra.mrb[24].mxu0 %v402_v50  ;;  %v820_v50 = vld [vmem:[%s5105_s16 + $0x6a] sm:$0xff] }
  0xa2   : > { %790 = vmatprep.mubr.f32.mxu0 %v4881_v7 }
  0xa5   : > { %791 = vmatmul.mubr.f32.gmra.mrb[26].mxu0 %v403_v51  ;;  %v821_v51 = vld [vmem:[%s5105_s16 + $0x7a] sm:$0xff] }
  0xa6   : > { %796 = vmatprep.mubr.f32.mxu0 %v4881_v7 }
  0xa9   : > { %797 = vmatmul.mubr.f32.gmra.mrb[28].mxu0 %v404_v52  ;;  %v822_v52 = vld [vmem:[%s5105_s16 + $0x82] sm:$0xff] }
  0xaa   : > { %802 = vmatprep.mubr.f32.mxu0 %v4881_v7 }
  0xad   : > { %803 = vmatmul.mubr.f32.gmra.mrb[30].mxu0 %v405_v53  ;;  %v823_v53 = vld [vmem:[%s5105_s16 + $0x8a] sm:$0xff] }
  0xae   : > { %922 = vmatprep.mubr.f32.mxu0 %v4881_v7 }
  0xb1   : > { %923 = vmatmul.mubr.f32.vlgmr.msra.gmra.mrb[0].mxu0 %v809_v58  ;;  %v3502_v58 = vld [vmem:[%s6857_s1 + $0x438] sm:$0xff] }
  0xb2   : > { %4191 = vmatpush1.bf16.msra.mxu0 %v4190_v59  ;;  %928 = vmatprep.mubr.f32.mxu0 %v4881_v7  ;;  %v1051_v59 = vld [vmem:[%s5105_s16 + $0x3] sm:$0xff]  ;;  %v4224_v61 = vpack.c.bf16 %v3502_v58, %v3500_v57  ;;  %v1297_v57 = vld [vmem:[%s5105_s16 + $0x2c] sm:$0xff]  ;;  %v1298_v58 = vld [vmem:[%s5105_s16 + $0x34] sm:$0xff] }
  0xb3   : > { %4193 = vmatprep.subr.bf16.mxu0 %v4192_v60  ;;  %v4222_v60 = vpack.c.bf16 %v3497_v56, %v3495_v55  ;;  %v1294_v55 = vld [vmem:[%s5105_s16 + $0xc] sm:$0xff]  ;;  %v1295_v56 = vld [vmem:[%s5105_s16 + $0x14] sm:$0xff] }
  0xb5   : > { %929 = vmatmul.mubr.f32.gmra.mrb[2].mxu0 %v810_v1  ;;  %v3506_v1 = vld [vmem:[%s6857_s1 + $0x458] sm:$0xff] }
  0xb6   : > { %934 = vmatprep.mubr.f32.mxu0 %v4881_v7  ;;  %4195 = vmatpush1.bf16.msra.mxu0 %v4194_v2  ;;  %v1052_v2 = vld [vmem:[%s5105_s16 + $0xb] sm:$0xff]  ;;  %v4228_v4 = vpack.c.bf16 %v3506_v1, %v3504_v0  ;;  %v1305_v1 = vld [vmem:[%s5105_s16 + $0x7c] sm:$0xff] }
  0xb7   : > { %4197 = vmatprep.subr.bf16.mxu0 %v4196_v3  ;;  %v4226_v3 = vpack.c.bf16 %v3501_v63, %v3499_v62  ;;  %v1302_v62 = vld [vmem:[%s5105_s16 + $0x5c] sm:$0xff]  ;;  %v1303_v63 = vld [vmem:[%s5105_s16 + $0x64] sm:$0xff]  ;;  %v1304_v0 = vld [vmem:[%s5105_s16 + $0x6c] sm:$0xff] }
  0xb9   : > { %935 = vmatmul.mubr.f32.gmra.mrb[4].mxu0 %v811_v9  ;;  %v3510_v9 = vld [vmem:[%s6857_s1 + $0x478] sm:$0xff] }
  0xba   : > { %940 = vmatprep.mubr.f32.mxu0 %v4881_v7  ;;  %4199 = vmatpush1.bf16.msra.mxu0 %v4198_v10  ;;  %v1053_v10 = vld [vmem:[%s5105_s16 + $0x13] sm:$0xff]  ;;  %v4232_v12 = vpack.c.bf16 %v3510_v9, %v3508_v8  ;;  %v3528_v9 = vld [vmem:[%s6859_s3 + $0x100] sm:$0xff] }
  0xbb   : > { %4201 = vmatprep.subr.bf16.mxu0 %v4200_v11  ;;  %v4230_v11 = vpack.c.bf16 %v3505_v6, %v3503_v5  ;;  %v3529_v5 = vld [vmem:[%s6859_s3 + $0x108] sm:$0xff]  ;;  %v3531_v6 = vld [vmem:[%s6859_s3 + $0x118] sm:$0xff] }
  0xbc   : > { %v4252_v8 = vpack.c.bf16 %v3531_v6, %v3529_v5 }
  0xbd   : > { %941 = vmatmul.mubr.f32.gmra.mrb[6].mxu0 %v812_v16  ;;  %v3514_v16 = vld [vmem:[%s6857_s1 + $0x498] sm:$0xff] }
  0xbe   : > { %946 = vmatprep.mubr.f32.mxu0 %v4881_v7  ;;  %4203 = vmatpush1.bf16.msra.mxu0 %v4202_v17  ;;  %v1054_v17 = vld [vmem:[%s5105_s16 + $0x1b] sm:$0xff]  ;;  %v4236_v19 = vpack.c.bf16 %v3514_v16, %v3512_v15  ;;  %v3534_v16 = vld [vmem:[%s6859_s3 + $0x130] sm:$0xff] }
  0xbf   : > { %4205 = vmatprep.subr.bf16.mxu0 %v4204_v18  ;;  %v4234_v18 = vpack.c.bf16 %v3509_v14, %v3507_v13  ;;  %4253 = vmatprep.subr.bf16.mxu1 %v4252_v8  ;;  %v3535_v13 = vld [vmem:[%s6859_s3 + $0x138] sm:$0xff]  ;;  %v3532_v15 = vld [vmem:[%s6859_s3 + $0x120] sm:$0xff] }
  0xc1   : > { %947 = vmatmul.mubr.f32.gmra.mrb[8].mxu0 %v813_v23  ;;  %v3518_v23 = vld [vmem:[%s6857_s1 + $0x4b8] sm:$0xff] }
  0xc2   : > { %952 = vmatprep.mubr.f32.mxu0 %v4881_v7  ;;  %4207 = vmatpush1.bf16.msra.mxu0 %v4206_v24  ;;  %v1055_v24 = vld [vmem:[%s5105_s16 + $0x2b] sm:$0xff]  ;;  %v4240_v26 = vpack.c.bf16 %v3518_v23, %v3516_v22 }
  0xc3   : > { %4209 = vmatprep.subr.bf16.mxu0 %v4208_v25  ;;  %v4238_v25 = vpack.c.bf16 %v3513_v21, %v3511_v20  ;;  %v3536_v21 = vld [vmem:[%s6859_s3 + $0x140] sm:$0xff]  ;;  %v3538_v22 = vld [vmem:[%s6859_s3 + $0x150] sm:$0xff] }
  0xc4   : > { %v4262_v23 = vpack.c.bf16 %v3538_v22, %v3536_v21  ;;  %v1638_v22 = vld [vmem:[#allocation2 + $0x21] ss:$2 sm:$0xf] }
  0xc5   : > { %953 = vmatmul.mubr.f32.gmra.mrb[10].mxu0 %v814_v30  ;;  %v3522_v30 = vld [vmem:[%s6857_s1 + $0x4d8] sm:$0xff] }
  0xc6   : > { %958 = vmatprep.mubr.f32.mxu0 %v4881_v7  ;;  %4211 = vmatpush1.bf16.msra.mxu0 %v4210_v31  ;;  %v1056_v31 = vld [vmem:[%s5105_s16 + $0x33] sm:$0xff]  ;;  %v4244_v33 = vpack.c.bf16 %v3522_v30, %v3520_v29  ;;  %v3545_v30 = vld [vmem:[%s6859_s3 + $0x188] sm:$0xff] }
  0xc7   : > { %4213 = vmatprep.subr.bf16.mxu0 %v4212_v32  ;;  %v4242_v32 = vpack.c.bf16 %v3517_v28, %v3515_v27  ;;  %v3540_v27 = vld [vmem:[%s6859_s3 + $0x160] sm:$0xff]  ;;  %v3542_v28 = vld [vmem:[%s6859_s3 + $0x170] sm:$0xff] }
  0xc8   : > { %v4266_v29 = vpack.c.bf16 %v3542_v28, %v3540_v27 }
  0xc9   : > { %959 = vmatmul.mubr.f32.gmra.mrb[12].mxu0 %v815_v37  ;;  %v3526_v37 = vld [vmem:[%s6857_s1 + $0x4f8] sm:$0xff] }
  0xca   : > { %964 = vmatprep.mubr.f32.mxu0 %v4881_v7  ;;  %4215 = vmatpush1.bf16.msra.mxu0 %v4214_v38  ;;  %v1057_v38 = vld [vmem:[%s5105_s16 + $0x3b] sm:$0xff]  ;;  %v4248_v40 = vpack.c.bf16 %v3526_v37, %v3524_v36  ;;  %v3549_v36 = vld [vmem:[%s6859_s3 + $0x1a8] sm:$0xff] }
  0xcb   : > { %4217 = vmatprep.subr.bf16.mxu0 %v4216_v39  ;;  %v4246_v39 = vpack.c.bf16 %v3521_v35, %v3519_v34  ;;  %v3546_v34 = vld [vmem:[%s6859_s3 + $0x190] sm:$0xff]  ;;  %v3551_v37 = vld [vmem:[%s6859_s3 + $0x1b8] sm:$0xff] }
  0xcd   : > { %965 = vmatmul.mubr.f32.gmra.mrb[14].mxu0 %v816_v44  ;;  %v4250_v44 = vpack.c.bf16 %v3525_v42, %v3523_v41  ;;  %v3553_v42 = vld [vmem:[%s6859_s3 + $0x1c8] sm:$0xff] }
  0xce   : > { %970 = vmatprep.mubr.f32.mxu0 %v4881_v7  ;;  %4219 = vmatpush1.bf16.msra.mxu0 %v4218_v45  ;;  %v1059_v45 = vld [vmem:[%s5105_s16 + $0x53] sm:$0xff] }
  0xcf   : > { %4221 = vmatprep.subr.bf16.mxu0 %v4220_v46  ;;  %v1060_v46 = vld [vmem:[%s5105_s16 + $0x5b] sm:$0xff] }
  0xd1   : > { %971 = vmatmul.mubr.f32.gmra.mrb[16].mxu0 %v817_v47  ;;  %v1061_v47 = vld [vmem:[%s5105_s16 + $0x63] sm:$0xff] }
  0xd2   : > { %976 = vmatprep.mubr.f32.mxu0 %v4881_v7 }
  0xd5   : > { %977 = vmatmul.mubr.f32.gmra.mrb[18].mxu0 %v818_v48  ;;  %v1062_v48 = vld [vmem:[%s5105_s16 + $0x6b] sm:$0xff] }
  0xd6   : > { %982 = vmatprep.mubr.f32.mxu0 %v4881_v7 }
  0xd9   : > { %983 = vmatmul.mubr.f32.gmra.mrb[20].mxu0 %v819_v49  ;;  %v1063_v49 = vld [vmem:[%s5105_s16 + $0x7b] sm:$0xff] }
  0xda   : > { %988 = vmatprep.mubr.f32.mxu0 %v4881_v7 }
  0xdd   : > { %989 = vmatmul.mubr.f32.gmra.mrb[22].mxu0 %v820_v50  ;;  %v1064_v50 = vld [vmem:[%s5105_s16 + $0x83] sm:$0xff] }
  0xde   : > { %994 = vmatprep.mubr.f32.mxu0 %v4881_v7 }
  0xe1   : > { %995 = vmatmul.mubr.f32.gmra.mrb[24].mxu0 %v821_v51  ;;  %v1065_v51 = vld [vmem:[%s5105_s16 + $0x8b] sm:$0xff] }
  0xe2   : > { %1000 = vmatprep.mubr.f32.mxu0 %v4881_v7 }
  0xe5   : > { %1001 = vmatmul.mubr.f32.gmra.mrb[26].mxu0 %v822_v52  ;;  %v1066_v52 = vld [vmem:[%s5105_s16 + $0x93] sm:$0xff] }
  0xe6   : > { %1006 = vmatprep.mubr.f32.mxu0 %v4881_v7 }
  0xe9   : > { %1007 = vmatmul.mubr.f32.gmra.mrb[28].mxu0 %v823_v53  ;;  %v5612_v53 = vld [vmem:[#allocation2 + $0x20] sm:$0xff] }
  0xea   : > { %1012 = vmatprep.mubr.f32.mxu0 %v4881_v7 }
  0xed   : > { %1013 = vmatmul.mubr.f32.gmra.mrb[30].mxu0 %v824_v54  ;;  %v1293_v54 = vld [vmem:[%s5105_s16 + $0x4] sm:$0xff] }
  0xee   : > { %1164 = vmatprep.mubr.f32.mxu0 %v4881_v7 }
  0xf1   : > { %1165 = vmatmul.mubr.f32.vlgmr.msra.gmra.mrb[0].mxu0 %v1051_v59  ;;  %v1299_v59 = vld [vmem:[%s5105_s16 + $0x3c] sm:$0xff] }
  0xf2   : > { %4223 = vmatpush1.bf16.msra.mxu0 %v4222_v60  ;;  %1170 = vmatprep.mubr.f32.mxu0 %v4881_v7  ;;  %v1300_v60 = vld [vmem:[%s5105_s16 + $0x44] sm:$0xff] }
  0xf3   : > { %4225 = vmatprep.subr.bf16.mxu0 %v4224_v61  ;;  %v1301_v61 = vld [vmem:[%s5105_s16 + $0x54] sm:$0xff] }
  0xf5   : > { %1171 = vmatmul.mubr.f32.gmra.mrb[2].mxu0 %v1052_v2  ;;  %v1306_v2 = vld [vmem:[%s5105_s16 + $0x84] sm:$0xff] }
  0xf6   : > { %1176 = vmatprep.mubr.f32.mxu0 %v4881_v7  ;;  %4227 = vmatpush1.bf16.msra.mxu0 %v4226_v3  ;;  %v1307_v3 = vld [vmem:[%s5105_s16 + $0x8c] sm:$0xff] }
  0xf7   : > { %4229 = vmatprep.subr.bf16.mxu0 %v4228_v4  ;;  %v1308_v4 = vld [vmem:[%s5105_s16 + $0x94] sm:$0xff] }
  0xf9   : > { %1177 = vmatmul.mubr.f32.gmra.mrb[4].mxu0 %v1053_v10  ;;  %v3530_v10 = vld [vmem:[%s6859_s3 + $0x110] sm:$0xff] }
  0xfa   : > { %1182 = vmatprep.mubr.f32.mxu0 %v4881_v7  ;;  %4231 = vmatpush1.bf16.msra.mxu0 %v4230_v11  ;;  %v4254_v11 = vpack.c.bf16 %v3530_v10, %v3528_v9 }
  0xfb   : > { %4233 = vmatprep.subr.bf16.mxu0 %v4232_v12  ;;  %v3533_v12 = vld [vmem:[%s6859_s3 + $0x128] sm:$0xff] }
  0xfc   : > { %4255 = vmatpush1.bf16.msra.mxu1 %v4254_v11  ;;  %v4256_v14 = vpack.c.bf16 %v3535_v13, %v3533_v12 }
  0xfd   : > { %1183 = vmatmul.mubr.f32.gmra.mrb[6].mxu0 %v1054_v17  ;;  %v4258_v17 = vpack.c.bf16 %v3534_v16, %v3532_v15 }
  0xfe   : > { %1188 = vmatprep.mubr.f32.mxu0 %v4881_v7  ;;  %4235 = vmatpush1.bf16.msra.mxu0 %v4234_v18  ;;  %v3537_v18 = vld [vmem:[%s6859_s3 + $0x148] sm:$0xff] }
  0xff   : > { %4237 = vmatprep.subr.bf16.mxu0 %v4236_v19  ;;  %4257 = vmatprep.subr.bf16.mxu1 %v4256_v14  ;;  %v3539_v19 = vld [vmem:[%s6859_s3 + $0x158] sm:$0xff] }
 0x100   : > { %4259 = vmatpush1.bf16.msra.mxu1 %v4258_v17  ;;  %v4260_v20 = vpack.c.bf16 %v3539_v19, %v3537_v18 }
 0x101   : > { %1189 = vmatmul.mubr.f32.gmra.mrb[8].mxu0 %v1055_v24  ;;  %v3541_v24 = vld [vmem:[%s6859_s3 + $0x168] sm:$0xff] }
 0x102   : > { %1194 = vmatprep.mubr.f32.mxu0 %v4881_v7  ;;  %4239 = vmatpush1.bf16.msra.mxu0 %v4238_v25  ;;  %v3543_v25 = vld [vmem:[%s6859_s3 + $0x178] sm:$0xff] }
 0x103   : > { %4241 = vmatprep.subr.bf16.mxu0 %v4240_v26  ;;  %4261 = vmatprep.subr.bf16.mxu1 %v4260_v20  ;;  %v4264_v26 = vpack.c.bf16 %v3543_v25, %v3541_v24  ;;  %v1614_v20 = vld [vmem:[#allocation2 + $0x20] ss:$2 sm:$0xf] }
 0x104   : > { %4263 = vmatpush1.bf16.msra.mxu1 %v4262_v23 }
 0x105   : > { %1195 = vmatmul.mubr.f32.gmra.mrb[10].mxu0 %v1056_v31  ;;  %4265 = vmatprep.subr.bf16.mxu1 %v4264_v26  ;;  %v3547_v31 = vld [vmem:[%s6859_s3 + $0x198] sm:$0xff] }
 0x106   : > { %1200 = vmatprep.mubr.f32.mxu0 %v4881_v7  ;;  %4243 = vmatpush1.bf16.msra.mxu0 %v4242_v32  ;;  %v4268_v32 = vpack.c.bf16 %v3547_v31, %v3545_v30 }
 0x107   : > { %4245 = vmatprep.subr.bf16.mxu0 %v4244_v33  ;;  %v3544_v33 = vld [vmem:[%s6859_s3 + $0x180] sm:$0xff] }
 0x108   : > { %4267 = vmatpush1.bf16.msra.mxu1 %v4266_v29  ;;  %v4270_v35 = vpack.c.bf16 %v3546_v34, %v3544_v33  ;;  %v1659_v29 = vmax.f32 %v1614_v20, %v1638_v22  ;;  %v1669_v34 = vld [vmem:[%s6859_s3] sm:$0xff] }
 0x109   : > { %1201 = vmatmul.mubr.f32.gmra.mrb[12].mxu0 %v1057_v38  ;;  %4269 = vmatprep.subr.bf16.mxu1 %v4268_v32  ;;  %v4272_v38 = vpack.c.bf16 %v3551_v37, %v3549_v36 }
 0x10a   : > { %1206 = vmatprep.mubr.f32.mxu0 %v4881_v7  ;;  %4247 = vmatpush1.bf16.msra.mxu0 %v4246_v39  ;;  %v3548_v39 = vld [vmem:[%s6859_s3 + $0x1a0] sm:$0xff] }
 0x10b   : > { %4249 = vmatprep.subr.bf16.mxu0 %v4248_v40  ;;  %v3550_v40 = vld [vmem:[%s6859_s3 + $0x1b0] sm:$0xff] }
 0x10c   : > { %4271 = vmatpush1.bf16.msra.mxu1 %v4270_v35  ;;  %v4274_v41 = vpack.c.bf16 %v3550_v40, %v3548_v39  ;;  %v1671_v35 = vld [vmem:[%s6859_s3 + $0x10] sm:$0xff] }
 0x10d   : > { %1207 = vmatmul.mubr.f32.gmra.mrb[14].mxu0 %v1058_v43  ;;  %4273 = vmatprep.subr.bf16.mxu1 %v4272_v38  ;;  %v3555_v43 = vld [vmem:[%s6859_s3 + $0x1d8] sm:$0xff] }
 0x10e   : > { %1212 = vmatprep.mubr.f32.mxu0 %v4881_v7  ;;  %4251 = vmatpush1.bf16.msra.mxu0 %v4250_v44  ;;  %v4276_v44 = vpack.c.bf16 %v3555_v43, %v3553_v42  ;;  %v1676_v42 = vld [vmem:[%s6859_s3 + $0x38] sm:$0xff]  ;;  %v2005_v43 = vrot.slane %v1659_v29, 2 }
 0x110   : > { %4275 = vmatpush1.bf16.msra.mxu1 %v4274_v41  ;;  %v1674_v41 = vld [vmem:[%s6859_s3 + $0x28] sm:$0xff] }
 0x111   : > { %1213 = vmatmul.mubr.f32.gmra.mrb[16].mxu0 %v1059_v45  ;;  %v3552_v45 = vld [vmem:[%s6859_s3 + $0x1c0] sm:$0xff]  ;;  %4277 = vmatprep.subr.bf16.mxu1 %v4276_v44 }
 0x112   : > { %1218 = vmatprep.mubr.f32.mxu0 %v4881_v7 }
 0x115   : > { %1219 = vmatmul.mubr.f32.gmra.mrb[18].mxu0 %v1060_v46  ;;  %v3554_v46 = vld [vmem:[%s6859_s3 + $0x1d0] sm:$0xff] }
 0x116   : > { %1224 = vmatprep.mubr.f32.mxu0 %v4881_v7 }
 0x119   : > { %1225 = vmatmul.mubr.f32.gmra.mrb[20].mxu0 %v1061_v47  ;;  %v4278_v47 = vpack.c.bf16 %v3554_v46, %v3552_v45  ;;  %v4286_v46 = vpack.c.bf16 %v1671_v35, %v1669_v34 }
 0x11a   : > { %1230 = vmatprep.mubr.f32.mxu0 %v4881_v7 }
 0x11b   : > { %4279 = vmatpush1.bf16.msra.mxu1 %v4278_v47  ;;  %v2196_v47 = vrot.slane %v1659_v29, 3 }
 0x11d   : > { %1231 = vmatmul.mubr.f32.gmra.mrb[22].mxu0 %v1062_v48  ;;  %v3557_v48 = vld [vmem:[%s6859_s3 + $0x1e8] sm:$0xff] }
 0x11e   : > { %1236 = vmatprep.mubr.f32.mxu0 %v4881_v7 }
 0x121   : > { %1237 = vmatmul.mubr.f32.gmra.mrb[24].mxu0 %v1063_v49  ;;  %v3559_v49 = vld [vmem:[%s6859_s3 + $0x1f8] sm:$0xff] }
 0x122   : > { %1242 = vmatprep.mubr.f32.mxu0 %v4881_v7 }
 0x125   : > { %1243 = vmatmul.mubr.f32.gmra.mrb[26].mxu0 %v1064_v50  ;;  %v4280_v50 = vpack.c.bf16 %v3559_v49, %v3557_v48 }
 0x126   : > { %1248 = vmatprep.mubr.f32.mxu0 %v4881_v7 }
 0x127   : > { %4281 = vmatprep.subr.bf16.mxu1 %v4280_v50 }
 0x129   : > { %1249 = vmatmul.mubr.f32.gmra.mrb[28].mxu0 %v1065_v51  ;;  %v3556_v51 = vld [vmem:[%s6859_s3 + $0x1e0] sm:$0xff] }
 0x12a   : > { %1254 = vmatprep.mubr.f32.mxu0 %v4881_v7  ;;  %v1296_v7 = vld [vmem:[%s5105_s16 + $0x1c] sm:$0xff] }
 0x12d   : > { %1255 = vmatmul.mubr.f32.gmra.mrb[30].mxu0 %v1066_v52  ;;  %v3558_v52 = vld [vmem:[%s6859_s3 + $0x1f0] sm:$0xff] }
 0x12e   : > { %1406 = vmatprep.mubr.f32.mxu0 %v5612_v53 }
 0x131   : > { %1407 = vmatmul.mubr.f32.vlgmr.msra.gmra.mrb[0].mxu0 %v1293_v54  ;;  %v4282_v54 = vpack.c.bf16 %v3558_v52, %v3556_v51  ;;  %v4288_v52 = vpack.c.bf16 %v1676_v42, %v1674_v41  ;;  %v1687_v41 = vld [vmem:[%s6859_s3 + $0x90] sm:$0xff] }
 0x132   : > { %1412 = vmatprep.mubr.f32.mxu0 %v5612_v53 }
 0x133   : > { %4283 = vmatpush1.bf16.msra.mxu1 %v4282_v54  ;;  %v1673_v54 = vld [vmem:[%s6859_s3 + $0x20] sm:$0xff] }
 0x135   : > { %1413 = vmatmul.mubr.f32.gmra.mrb[2].mxu0 %v1294_v55  ;;  %v1670_v55 = vld [vmem:[%s6859_s3 + $0x8] sm:$0xff] }
 0x136   : > { %1418 = vmatprep.mubr.f32.mxu0 %v5612_v53 }
 0x139   : > { %1419 = vmatmul.mubr.f32.gmra.mrb[4].mxu0 %v1295_v56  ;;  %v1672_v56 = vld [vmem:[%s6859_s3 + $0x18] sm:$0xff] }
 0x13a   : > { %1424 = vmatprep.mubr.f32.mxu0 %v5612_v53 }
 0x13d   : > { %1425 = vmatmul.mubr.f32.gmra.mrb[6].mxu0 %v1296_v7  ;;  %v4284_v7 = vpack.c.bf16 %v1672_v56, %v1670_v55  ;;  %v1675_v55 = vld [vmem:[%s6859_s3 + $0x30] sm:$0xff] }
 0x13e   : > { %1430 = vmatprep.mubr.f32.mxu0 %v5612_v53 }
 0x13f   : > { %4285 = vmatprep.subr.bf16.mxu1 %v4284_v7 }
 0x141   : > { %1431 = vmatmul.mubr.f32.gmra.mrb[8].mxu0 %v1297_v57 }
 0x142   : > { %1436 = vmatprep.mubr.f32.mxu0 %v5612_v53 }
 0x145   : > { %1437 = vmatmul.mubr.f32.gmra.mrb[10].mxu0 %v1298_v58 }
 0x146   : > { %1442 = vmatprep.mubr.f32.mxu0 %v5612_v53 }
 0x149   : > { %1443 = vmatmul.mubr.f32.gmra.mrb[12].mxu0 %v1299_v59  ;;  %v5751_v59 = vld [vmem:[%s6858_s2] ss:$0 sm:$0xff] }
 0x14a   : > { %1448 = vmatprep.mubr.f32.mxu0 %v5612_v53 }
 0x14d   : > { %1449 = vmatmul.mubr.f32.gmra.mrb[14].mxu0 %v1300_v60 }
 0x14e   : > { %1454 = vmatprep.mubr.f32.mxu0 %v5612_v53 }
 0x151   : > { %1455 = vmatmul.mubr.f32.gmra.mrb[16].mxu0 %v1301_v61 }
 0x152   : > { %1460 = vmatprep.mubr.f32.mxu0 %v5612_v53 }
 0x155   : > { %1461 = vmatmul.mubr.f32.gmra.mrb[18].mxu0 %v1302_v62 }
 0x156   : > { %1466 = vmatprep.mubr.f32.mxu0 %v5612_v53 }
 0x159   : > { %1467 = vmatmul.mubr.f32.gmra.mrb[20].mxu0 %v1303_v63 }
 0x15a   : > { %1472 = vmatprep.mubr.f32.mxu0 %v5612_v53 }
 0x15d   : > { %1473 = vmatmul.mubr.f32.gmra.mrb[22].mxu0 %v1304_v0 }
 0x15e   : > { %1478 = vmatprep.mubr.f32.mxu0 %v5612_v53 }
 0x161   : > { %1479 = vmatmul.mubr.f32.gmra.mrb[24].mxu0 %v1305_v1 }
 0x162   : > { %1484 = vmatprep.mubr.f32.mxu0 %v5612_v53 }
 0x165   : > { %1485 = vmatmul.mubr.f32.gmra.mrb[26].mxu0 %v1306_v2 }
 0x166   : > { %1490 = vmatprep.mubr.f32.mxu0 %v5612_v53 }
 0x169   : > { %1491 = vmatmul.mubr.f32.gmra.mrb[28].mxu0 %v1307_v3 }
 0x16a   : > { %1496 = vmatprep.mubr.f32.mxu0 %v5612_v53 }
 0x16d   : > { %1497 = vmatmul.mubr.f32.gmra.mrb[30].mxu0 %v1308_v4 }
 0x204   : > { %v1408_v57 = vpop.f32.mrb[0].mxu0 }
 0x205   : > { %v1410_v58 = vpop.f32.mrb[1].mxu0 }
 0x206   : > { %v1535_v60 = vmax.f32 %v1408_v57, %v1410_v58  ;;  %v2387_v57 = vrot.slane %v1659_v29, 4 }
 0x208   : > { %v1558_v61 = vadd.f32 %v5751_v59, %v1535_v60  ;;  %v1414_v62 = vpop.f32.mrb[2].mxu0 }
 0x209   : > { %v1416_v63 = vpop.f32.mrb[3].mxu0 }
 0x20a   : > { %v1574_v0 = vmax.f32 %v1558_v61, 0.0  ;;  %v1536_v1 = vmax.f32 %v1414_v62, %v1416_v63  ;;  %v1717_v62 = vrot.slane %v1659_v29, 1  ;;  %v1678_v63 = vld [vmem:[%s6859_s3 + $0x48] sm:$0xff] }
 0x20c   : > { %1590 = vst [vmem:[#allocation2] sm:$0xff] %v1574_v0  ;;  %v1559_v2 = vadd.f32 %v5751_v59, %v1536_v1  ;;  %v1420_v3 = vpop.f32.mrb[4].mxu0  ;;  %v1680_v0 = vld [vmem:[%s6859_s3 + $0x58] sm:$0xff] }
 0x20d   : > { %v1422_v4 = vpop.f32.mrb[5].mxu0 }
 0x20e   : > { %v1575_v5 = vmax.f32 %v1559_v2, 0.0  ;;  %v1537_v6 = vmax.f32 %v1420_v3, %v1422_v4 }
 0x210   : > { %1591 = vst [vmem:[#allocation2 + $0x8] sm:$0xff] %v1575_v5  ;;  %v1560_v8 = vadd.f32 %v5751_v59, %v1537_v6  ;;  %v1426_v9 = vpop.f32.mrb[6].mxu0  ;;  %v4290_v6 = vpack.c.bf16 %v1675_v55, %v1673_v54 }
 0x211   : > { %v1428_v10 = vpop.f32.mrb[7].mxu0 }
 0x212   : > { %v1576_v11 = vmax.f32 %v1560_v8, 0.0  ;;  %v1538_v12 = vmax.f32 %v1426_v9, %v1428_v10  ;;  %v1620_v8 = vld [vmem:[#allocation2 + $0x48] ss:$2 sm:$0xf]  ;;  %v4292_v9 = vpack.c.bf16 %v1680_v0, %v1678_v63  ;;  %v1677_v10 = vld [vmem:[%s6859_s3 + $0x40] sm:$0xff] }
 0x214   : > { %1592 = vst [vmem:[#allocation2 + $0x10] sm:$0xff] %v1576_v11  ;;  %v1561_v13 = vadd.f32 %v5751_v59, %v1538_v12  ;;  %v1432_v14 = vpop.f32.mrb[8].mxu0  ;;  %v1679_v11 = vld [vmem:[%s6859_s3 + $0x50] sm:$0xff] }
 0x215   : > { %v1434_v15 = vpop.f32.mrb[9].mxu0 }
 0x216   : > { %v1577_v16 = vmax.f32 %v1561_v13, 0.0  ;;  %v1539_v17 = vmax.f32 %v1432_v14, %v1434_v15 }
 0x217   : > { %v1610_v25 = vld [vmem:[#allocation2] ss:$2 sm:$0xff]  ;;  %v1634_v26 = vld [vmem:[#allocation2 + $0x1] ss:$2 sm:$0xff] }
 0x218   : > { %1593 = vst [vmem:[#allocation2 + $0x18] sm:$0xff] %v1577_v16  ;;  %v1562_v18 = vadd.f32 %v5751_v59, %v1539_v17  ;;  %v1438_v19 = vpop.f32.mrb[10].mxu0  ;;  %v5759_v31 = vmax.f32 %v1610_v25, %v1634_v26  ;;  %v1644_v16 = vld [vmem:[#allocation2 + $0x49] ss:$2 sm:$0xf] }
 0x219   : > { %v1440_v21 = vpop.f32.mrb[11].mxu0  ;;  %v1682_v17 = vld [vmem:[%s6859_s3 + $0x68] sm:$0xff]  ;;  %v5826_v25 = vmax.f32 %v1620_v8, %v1644_v16  ;;  %v1696_v16 = vld [vmem:[%s6859_s3 + $0xd8] sm:$0xff] }
 0x21a   : > { %v1578_v23 = vmax.f32 %v1562_v18, 0.0  ;;  %v1540_v24 = vmax.f32 %v1438_v19, %v1440_v21  ;;  %v1714_v45 = vrot.slane %v5759_v31, 1  ;;  %v1684_v18 = vld [vmem:[%s6859_s3 + $0x78] sm:$0xff] }
 0x21b   : > { %v4296_v26 = vpack.c.bf16 %v1684_v18, %v1682_v17  ;;  %v2201_v54 = vrot.slane %v5826_v25, 3 }
 0x21c   : > { %1594 = vst [vmem:[#allocation2 + $0x28] sm:$0xff] %v1578_v23  ;;  %v1563_v27 = vadd.f32 %v5751_v59, %v1540_v24  ;;  %v1444_v28 = vpop.f32.mrb[12].mxu0  ;;  %v4294_v24 = vpack.c.bf16 %v1679_v11, %v1677_v10 }
 0x21d   : > { %v1446_v30 = vpop.f32.mrb[13].mxu0 }
 0x21e   : > { %v1579_v32 = vmax.f32 %v1563_v27, 0.0  ;;  %v1541_v33 = vmax.f32 %v1444_v28, %v1446_v30  ;;  %v1681_v27 = vld [vmem:[%s6859_s3 + $0x60] sm:$0xff]  ;;  %v1683_v28 = vld [vmem:[%s6859_s3 + $0x70] sm:$0xff] }
 0x21f   : > { %v1612_v36 = vld [vmem:[#allocation2 + $0x10] ss:$2 sm:$0xff]  ;;  %v1636_v37 = vld [vmem:[#allocation2 + $0x11] ss:$2 sm:$0xff] }
 0x220   : > { %1595 = vst [vmem:[#allocation2 + $0x30] sm:$0xff] %v1579_v32  ;;  %v1564_v38 = vadd.f32 %v5751_v59, %v1541_v33  ;;  %v1450_v39 = vpop.f32.mrb[14].mxu0  ;;  %v5768_v40 = vmax.f32 %v1612_v36, %v1636_v37  ;;  %v1686_v32 = vld [vmem:[%s6859_s3 + $0x88] sm:$0xff]  ;;  %v1688_v33 = vld [vmem:[%s6859_s3 + $0x98] sm:$0xff] }
 0x221   : > { %v1452_v44 = vpop.f32.mrb[15].mxu0 }
 0x222   : > { %v1580_v48 = vmax.f32 %v1564_v38, 0.0  ;;  %v1542_v49 = vmax.f32 %v1450_v39, %v1452_v44  ;;  %v1715_v50 = vrot.slane %v5768_v40, 1  ;;  %v2003_v51 = vrot.slane %v5768_v40, 2  ;;  %v1685_v39 = vld [vmem:[%s6859_s3 + $0x80] sm:$0xff] }
 0x223   : > { %v2194_v56 = vrot.slane %v5768_v40, 3  ;;  %v2385_v7 = vrot.slane %v5768_v40, 4  ;;  %v4298_v38 = vpack.c.bf16 %v1683_v28, %v1681_v27  ;;  %v1722_v44 = vrot.slane %v5826_v25, 1  ;;  %v1693_v28 = vld [vmem:[%s6859_s3 + $0xc0] sm:$0xff] }
 0x224   : > { %1596 = vst [vmem:[#allocation2 + $0x38] sm:$0xff] %v1580_v48  ;;  %v1565_v58 = vadd.f32 %v5751_v59, %v1542_v49  ;;  %v1456_v60 = vpop.f32.mrb[16].mxu0  ;;  %v1716_v61 = vsel %vm1713_vm0, %v1714_v45, %v1715_v50  ;;  %v5798_v2 = vsel %vm2001_vm1, %v2003_v51, %v2005_v43  ;;  %v1718_v15 = vsel %vm1713_vm0, %v1715_v50, %v1717_v62  ;;  %v1690_v49 = vld [vmem:[%s6859_s3 + $0xa8] sm:$0xff]  ;;  %v1692_v50 = vld [vmem:[%s6859_s3 + $0xb8] sm:$0xff] }
 0x225   : > { %v1458_v1 = vpop.f32.mrb[17].mxu0  ;;  %1840 = vmatmul.mubr.f32.vlgmr.msra.gmra.mrb[0].mxu1 %v1716_v61  ;;  %v5803_v3 = vsel %vm2192_vm2, %v2194_v56, %v2196_v47  ;;  %v5815_v12 = vsel %vm2383_vm3, %v2385_v7, %v2387_v57  ;;  %v4300_v45 = vpack.c.bf16 %v1688_v33, %v1686_v32  ;;  %v2392_v61 = vrot.slane %v5826_v25, 4 }
 0x226   : > { %v1581_v4 = vmax.f32 %v1565_v58, 0.0  ;;  %v1543_v5 = vmax.f32 %v1456_v60, %v1458_v1  ;;  %1845 = vmatprep.mubr.f32.mxu1 %v5612_v53  ;;  %4287 = vmatpush1.bf16.msra.mxu1 %v4286_v46  ;;  %v4302_v58 = vpack.c.bf16 %v1687_v41, %v1685_v39  ;;  %v1650_v41 = vld [vmem:[#allocation2 + $0x71] ss:$2 sm:$0xf] }
 0x227   : > { %4289 = vmatprep.subr.bf16.mxu1 %v4288_v52  ;;  %v1616_v22 = vld [vmem:[#allocation2 + $0x28] ss:$2 sm:$0xff]  ;;  %v1640_v23 = vld [vmem:[#allocation2 + $0x29] ss:$2 sm:$0xff]  ;;  %v2010_v52 = vrot.slane %v5826_v25, 2 }
 0x228   : > { %1597 = vst [vmem:[#allocation2 + $0x40] sm:$0xff] %v1581_v4  ;;  %v1566_v13 = vadd.f32 %v5751_v59, %v1543_v5  ;;  %v1462_v14 = vpop.f32.mrb[18].mxu0  ;;  %v5841_v35 = vmax.f32 %v1616_v22, %v1640_v23  ;;  %v4304_v4 = vpack.c.bf16 %v1692_v50, %v1690_v49  ;;  %v1689_v5 = vld [vmem:[%s6859_s3 + $0xa0] sm:$0xff]  ;;  %v1699_v50 = vld [vmem:[%s6859_s3 + $0xf0] sm:$0xff] }
 0x229   : > { %v1464_v19 = vpop.f32.mrb[19].mxu0  ;;  %1846 = vmatmul.mubr.f32.gmra.mrb[2].mxu1 %v1718_v15  ;;  %v1694_v15 = vld [vmem:[%s6859_s3 + $0xc8] sm:$0xff]  ;;  %v1697_v49 = vld [vmem:[%s6859_s3 + $0xe0] sm:$0xff] }
 0x22a   : > { %v1582_v20 = vmax.f32 %v1566_v13, 0.0  ;;  %v1544_v21 = vmax.f32 %v1462_v14, %v1464_v19  ;;  %1851 = vmatprep.mubr.f32.mxu1 %v5612_v53  ;;  %4291 = vmatpush1.bf16.msra.mxu1 %v4290_v6  ;;  %v1719_v57 = vrot.slane %v5841_v35, 1  ;;  %v2007_v60 = vrot.slane %v5841_v35, 2  ;;  %v1691_v6 = vld [vmem:[%s6859_s3 + $0xb0] sm:$0xff] }
 0x22b   : > { %4293 = vmatprep.subr.bf16.mxu1 %v4292_v9  ;;  %v2198_v8 = vrot.slane %v5841_v35, 3  ;;  %v2389_v18 = vrot.slane %v5841_v35, 4  ;;  %v4306_v25 = vpack.c.bf16 %v1691_v6, %v1689_v5  ;;  %v4308_v27 = vpack.c.bf16 %v1696_v16, %v1694_v15 }
 0x22c   : > { %1598 = vst [vmem:[#allocation2 + $0x50] sm:$0xff] %v1582_v20  ;;  %v1567_v29 = vadd.f32 %v5751_v59, %v1544_v21  ;;  %v1468_v30 = vpop.f32.mrb[20].mxu0 }
 0x22d   : > { %v1470_v34 = vpop.f32.mrb[21].mxu0 }
 0x22e   : > { %v1583_v36 = vmax.f32 %v1567_v29, 0.0  ;;  %v1545_v37 = vmax.f32 %v1468_v30, %v1470_v34  ;;  %4295 = vmatpush1.bf16.msra.mxu1 %v4294_v24  ;;  %v1695_v29 = vld [vmem:[%s6859_s3 + $0xd0] sm:$0xff] }
 0x22f   : > { %v1618_v42 = vld [vmem:[#allocation2 + $0x38] ss:$2 sm:$0xff]  ;;  %v1642_v43 = vld [vmem:[#allocation2 + $0x39] ss:$2 sm:$0xff]  ;;  %4297 = vmatprep.subr.bf16.mxu1 %v4296_v26 }
 0x230   : > { %1599 = vst [vmem:[#allocation2 + $0x58] sm:$0xff] %v1583_v36  ;;  %v1568_v46 = vadd.f32 %v5751_v59, %v1545_v37  ;;  %v1474_v47 = vpop.f32.mrb[22].mxu0  ;;  %v5851_v48 = vmax.f32 %v1618_v42, %v1642_v43  ;;  %v1626_v36 = vld [vmem:[#allocation2 + $0x70] ss:$2 sm:$0xf]  ;;  %v1698_v37 = vld [vmem:[%s6859_s3 + $0xe8] sm:$0xff] }
 0x231   : > { %v1476_v55 = vpop.f32.mrb[23].mxu0 }
 0x232   : > { %v1584_v62 = vmax.f32 %v1568_v46, 0.0  ;;  %v1546_v63 = vmax.f32 %v1474_v47, %v1476_v55  ;;  %v1720_v0 = vrot.slane %v5851_v48, 1  ;;  %4299 = vmatpush1.bf16.msra.mxu1 %v4298_v38  ;;  %v2008_v1 = vrot.slane %v5851_v48, 2  ;;  %v1700_v38 = vld [vmem:[%s6859_s3 + $0xf8] sm:$0xff] }
 0x233   : > { %4301 = vmatprep.subr.bf16.mxu1 %v4300_v45  ;;  %v2199_v9 = vrot.slane %v5851_v48, 3  ;;  %v2390_v10 = vrot.slane %v5851_v48, 4  ;;  %v4312_v47 = vpack.c.bf16 %v1700_v38, %v1698_v37  ;;  %v1665_v55 = vmax.f32 %v1626_v36, %v1650_v41 }
 0x234   : > { %1600 = vst [vmem:[#allocation2 + $0x60] sm:$0xff] %v1584_v62  ;;  %v1569_v11 = vadd.f32 %v5751_v59, %v1546_v63  ;;  %v1480_v13 = vpop.f32.mrb[24].mxu0  ;;  %v1721_v14 = vsel %vm1713_vm0, %v1719_v57, %v1720_v0  ;;  %v5884_v17 = vsel %vm2001_vm1, %v2007_v60, %v2008_v1  ;;  %v5888_v20 = vsel %vm2001_vm1, %v2008_v1, %v2010_v52  ;;  %v3561_v57 = vld [vmem:[%s6859_s3 + $0x208] sm:$0xff] }
 0x235   : > { %v1482_v19 = vpop.f32.mrb[25].mxu0  ;;  %1852 = vmatmul.mubr.f32.gmra.mrb[4].mxu1 %v1721_v14  ;;  %v5891_v21 = vsel %vm2192_vm2, %v2198_v8, %v2199_v9  ;;  %v5894_v22 = vsel %vm2192_vm2, %v2199_v9, %v2201_v54  ;;  %v5898_v26 = vsel %vm2383_vm3, %v2389_v18, %v2390_v10  ;;  %v5907_v30 = vsel %vm2383_vm3, %v2390_v10, %v2392_v61 }
 0x236   : > { %v1585_v23 = vmax.f32 %v1569_v11, 0.0  ;;  %v1547_v24 = vmax.f32 %v1480_v13, %v1482_v19  ;;  %1857 = vmatprep.mubr.f32.mxu1 %v5612_v53  ;;  %4303 = vmatpush1.bf16.msra.mxu1 %v4302_v58  ;;  %v1723_v34 = vsel %vm1713_vm0, %v1720_v0, %v1722_v44  ;;  %v4310_v44 = vpack.c.bf16 %v1695_v29, %v1693_v28  ;;  %v3563_v58 = vld [vmem:[%s6859_s3 + $0x218] sm:$0xff] }
 0x237   : > { %4305 = vmatprep.subr.bf16.mxu1 %v4304_v4  ;;  %v1622_v45 = vld [vmem:[#allocation2 + $0x50] ss:$2 sm:$0xff]  ;;  %v1646_v46 = vld [vmem:[#allocation2 + $0x51] ss:$2 sm:$0xff]  ;;  %v4314_v0 = vpack.c.bf16 %v1699_v50, %v1697_v49  ;;  %v4316_v5 = vpack.c.bf16 %v3563_v58, %v3561_v57  ;;  %v2015_v10 = vrot.slane %v1665_v55, 2  ;;  %v2206_v15 = vrot.slane %v1665_v55, 3 }
 0x238   : > { %1601 = vst [vmem:[#allocation2 + $0x68] sm:$0xff] %v1585_v23  ;;  %v1570_v32 = vadd.f32 %v5751_v59, %v1547_v24  ;;  %v1486_v33 = vpop.f32.mrb[26].mxu0  ;;  %v5931_v61 = vmax.f32 %v1622_v45, %v1646_v46  ;;  %v2397_v16 = vrot.slane %v1665_v55, 4  ;;  %v1632_v45 = vld [vmem:[#allocation2 + $0x98] ss:$2 sm:$0xf] }
 0x239   : > { %v1488_v39 = vpop.f32.mrb[27].mxu0  ;;  %1858 = vmatmul.mubr.f32.gmra.mrb[6].mxu1 %v1723_v34  ;;  %v1727_v34 = vrot.slane %v1665_v55, 1  ;;  %v1656_v46 = vld [vmem:[#allocation2 + $0x99] ss:$2 sm:$0xf] }
 0x23a   : > { %v1586_v42 = vmax.f32 %v1570_v32, 0.0  ;;  %v1548_v43 = vmax.f32 %v1486_v33, %v1488_v39  ;;  %1863 = vmatprep.mubr.f32.mxu1 %v5612_v53  ;;  %4307 = vmatpush1.bf16.msra.mxu1 %v4306_v25  ;;  %v1724_v13 = vrot.slane %v5931_v61, 1  ;;  %v2012_v14 = vrot.slane %v5931_v61, 2 }
 0x23b   : > { %4309 = vmatprep.subr.bf16.mxu1 %v4308_v27  ;;  %v2203_v25 = vrot.slane %v5931_v61, 3  ;;  %v2394_v28 = vrot.slane %v5931_v61, 4  ;;  %v1668_v49 = vmax.f32 %v1632_v45, %v1656_v46 }
 0x23c   : > { %1602 = vst [vmem:[#allocation2 + $0x78] sm:$0xff] %v1586_v42  ;;  %v1571_v52 = vadd.f32 %v5751_v59, %v1548_v43  ;;  %v1492_v54 = vpop.f32.mrb[28].mxu0 }
 0x23d   : > { %v1494_v60 = vpop.f32.mrb[29].mxu0  ;;  %v2020_v57 = vrot.slane %v1668_v49, 2 }
 0x23e   : > { %v1587_v62 = vmax.f32 %v1571_v52, 0.0  ;;  %v1549_v63 = vmax.f32 %v1492_v54, %v1494_v60  ;;  %4311 = vmatpush1.bf16.msra.mxu1 %v4310_v44 }
 0x23f   : > { %v1624_v1 = vld [vmem:[#allocation2 + $0x60] ss:$2 sm:$0xff]  ;;  %v1648_v4 = vld [vmem:[#allocation2 + $0x61] ss:$2 sm:$0xff]  ;;  %4313 = vmatprep.subr.bf16.mxu1 %v4312_v47 }
 0x240   : > { %1603 = vst [vmem:[#allocation2 + $0x80] sm:$0xff] %v1587_v62  ;;  %v1572_v6 = vadd.f32 %v5751_v59, %v1549_v63  ;;  %v1498_v8 = vpop.f32.mrb[30].mxu0  ;;  %v5934_v9 = vmax.f32 %v1624_v1, %v1648_v4  ;;  %v2211_v62 = vrot.slane %v1668_v49, 3  ;;  %v2402_v63 = vrot.slane %v1668_v49, 4 }
 0x241   : > { %v1500_v11 = vpop.f32.mrb[31].mxu0 }
 0x242   : > { %v1588_v18 = vmax.f32 %v1572_v6, 0.0  ;;  %v1550_v19 = vmax.f32 %v1498_v8, %v1500_v11  ;;  %v1725_v23 = vrot.slane %v5934_v9, 1  ;;  %4315 = vmatpush1.bf16.msra.mxu1 %v4314_v0  ;;  %v2013_v24 = vrot.slane %v5934_v9, 2 }
 0x243   : > { %4317 = vmatprep.subr.bf16.mxu1 %v4316_v5  ;;  %v2204_v27 = vrot.slane %v5934_v9, 3  ;;  %v2395_v29 = vrot.slane %v5934_v9, 4  ;;  %v1732_v11 = vrot.slane %v1668_v49, 1  ;;  %v3573_v49 = vld [vmem:[%s6859_s3 + $0x268] sm:$0xff] }
 0x244   : > { %1604 = vst [vmem:[#allocation2 + $0x88] sm:$0xff] %v1588_v18  ;;  %v1573_v32 = vadd.f32 %v5751_v59, %v1550_v19  ;;  %v1726_v33 = vsel %vm1713_vm0, %v1724_v13, %v1725_v23  ;;  %v5947_v36 = vsel %vm2001_vm1, %v2012_v14, %v2013_v24  ;;  %v5950_v37 = vsel %vm2001_vm1, %v2013_v24, %v2015_v10  ;;  %v3562_v24 = vld [vmem:[%s6859_s3 + $0x210] sm:$0xff] }
 0x245   : > { %1864 = vmatmul.mubr.f32.gmra.mrb[8].mxu1 %v1726_v33  ;;  %v5953_v38 = vsel %vm2192_vm2, %v2203_v25, %v2204_v27  ;;  %v5956_v39 = vsel %vm2192_vm2, %v2204_v27, %v2206_v15  ;;  %v5959_v41 = vsel %vm2383_vm3, %v2394_v28, %v2395_v29  ;;  %v5963_v42 = vsel %vm2383_vm3, %v2395_v29, %v2397_v16  ;;  %v3565_v27 = vld [vmem:[%s6859_s3 + $0x228] sm:$0xff]  ;;  %v3567_v28 = vld [vmem:[%s6859_s3 + $0x238] sm:$0xff]  ;;  %v3564_v33 = vld [vmem:[%s6859_s3 + $0x220] sm:$0xff] }
 0x246   : > { %v1589_v59 = vmax.f32 %v1573_v32, 0.0  ;;  %1869 = vmatprep.mubr.f32.mxu1 %v5612_v53  ;;  %v1728_v43 = vsel %vm1713_vm0, %v1725_v23, %v1727_v34  ;;  %v3560_v23 = vld [vmem:[%s6859_s3 + $0x200] sm:$0xff]  ;;  %v4320_v32 = vpack.c.bf16 %v3567_v28, %v3565_v27  ;;  %v3566_v34 = vld [vmem:[%s6859_s3 + $0x230] sm:$0xff] }
 0x247   : > { %v1628_v44 = vld [vmem:[#allocation2 + $0x78] ss:$2 sm:$0xff]  ;;  %v1652_v47 = vld [vmem:[#allocation2 + $0x79] ss:$2 sm:$0xff]  ;;  %v4318_v29 = vpack.c.bf16 %v3562_v24, %v3560_v23  ;;  %v4322_v45 = vpack.c.bf16 %v3566_v34, %v3564_v33  ;;  %v3582_v23 = vld [vmem:[%s6859_s3 + $0x2b0] sm:$0xff] }
 0x248   : > { %1605 = vst [vmem:[#allocation2 + $0x90] sm:$0xff] %v1589_v59  ;;  %v5967_v50 = vmax.f32 %v1628_v44, %v1652_v47  ;;  %v3569_v59 = vld [vmem:[%s6859_s3 + $0x248] sm:$0xff]  ;;  %v3568_v44 = vld [vmem:[%s6859_s3 + $0x240] sm:$0xff]  ;;  %v3570_v47 = vld [vmem:[%s6859_s3 + $0x250] sm:$0xff] }
 0x249   : > { %1870 = vmatmul.mubr.f32.gmra.mrb[10].mxu1 %v1728_v43  ;;  %v3571_v43 = vld [vmem:[%s6859_s3 + $0x258] sm:$0xff]  ;;  %v3585_v24 = vld [vmem:[%s6859_s3 + $0x2c8] sm:$0xff]  ;;  %v3584_v28 = vld [vmem:[%s6859_s3 + $0x2c0] sm:$0xff] }
 0x24a   : > { %1875 = vmatprep.mubr.f32.mxu1 %v5612_v53  ;;  %v1729_v58 = vrot.slane %v5967_v50, 1  ;;  %v2017_v60 = vrot.slane %v5967_v50, 2  ;;  %v2208_v6 = vrot.slane %v5967_v50, 3  ;;  %v2399_v8 = vrot.slane %v5967_v50, 4 }
 0x24b   : > { %v4324_v46 = vpack.c.bf16 %v3571_v43, %v3569_v59  ;;  %v3588_v59 = vld [vmem:[%s6859_s3 + $0x2e0] sm:$0xff]  ;;  %v3590_v43 = vld [vmem:[%s6859_s3 + $0x2f0] sm:$0xff] }
 0x24f   : > { %v1630_v52 = vld [vmem:[#allocation2 + $0x88] ss:$2 sm:$0xff]  ;;  %v1654_v54 = vld [vmem:[#allocation2 + $0x89] ss:$2 sm:$0xff] }
 0x250   : > { %v5969_v55 = vmax.f32 %v1630_v52, %v1654_v54  ;;  %v3575_v52 = vld [vmem:[%s6859_s3 + $0x278] sm:$0xff]  ;;  %v4326_v54 = vpack.c.bf16 %v3570_v47, %v3568_v44  ;;  %v3592_v47 = vld [vmem:[%s6859_s3 + $0x300] sm:$0xff] }
 0x252   : > { %v1730_v0 = vrot.slane %v5969_v55, 1  ;;  %v2018_v1 = vrot.slane %v5969_v55, 2  ;;  %v2209_v4 = vrot.slane %v5969_v55, 3  ;;  %v2400_v5 = vrot.slane %v5969_v55, 4 }
 0x254   : > { %v1731_v10 = vsel %vm1713_vm0, %v1729_v58, %v1730_v0  ;;  %v5981_v13 = vsel %vm2001_vm1, %v2017_v60, %v2018_v1  ;;  %v5984_v14 = vsel %vm2001_vm1, %v2018_v1, %v2020_v57  ;;  %v5987_v15 = vsel %vm2192_vm2, %v2208_v6, %v2209_v4  ;;  %v3572_v58 = vld [vmem:[%s6859_s3 + $0x260] sm:$0xff]  ;;  %v3574_v60 = vld [vmem:[%s6859_s3 + $0x270] sm:$0xff]  ;;  %v3581_v6 = vld [vmem:[%s6859_s3 + $0x2a8] sm:$0xff] }
 0x255   : > { %1876 = vmatmul.mubr.f32.gmra.mrb[12].mxu1 %v1731_v10  ;;  %v5990_v16 = vsel %vm2192_vm2, %v2209_v4, %v2211_v62  ;;  %v5993_v18 = vsel %vm2383_vm3, %v2399_v8, %v2400_v5  ;;  %v5996_v19 = vsel %vm2383_vm3, %v2400_v5, %v2402_v63  ;;  %v1733_v25 = vsel %vm1713_vm0, %v1730_v0, %v1732_v11  ;;  %v3577_v62 = vld [vmem:[%s6859_s3 + $0x288] sm:$0xff]  ;;  %v3579_v63 = vld [vmem:[%s6859_s3 + $0x298] sm:$0xff]  ;;  %v3576_v4 = vld [vmem:[%s6859_s3 + $0x280] sm:$0xff] }
 0x256   : > { %1881 = vmatprep.mubr.f32.mxu1 %v5612_v53  ;;  %v4328_v57 = vpack.c.bf16 %v3575_v52, %v3573_v49  ;;  %v4330_v0 = vpack.c.bf16 %v3574_v60, %v3572_v58  ;;  %v4332_v1 = vpack.c.bf16 %v3579_v63, %v3577_v62  ;;  %v3578_v5 = vld [vmem:[%s6859_s3 + $0x290] sm:$0xff]  ;;  %v3580_v11 = vld [vmem:[%s6859_s3 + $0x2a0] sm:$0xff]  ;;  %v3597_v52 = vld [vmem:[%s6859_s3 + $0x328] sm:$0xff] }
 0x257   : > { %v4334_v8 = vpack.c.bf16 %v3578_v5, %v3576_v4  ;;  %v3594_v49 = vld [vmem:[%s6859_s3 + $0x310] sm:$0xff]  ;;  %v3596_v60 = vld [vmem:[%s6859_s3 + $0x320] sm:$0xff]  ;;  %v3601_v63 = vld [vmem:[%s6859_s3 + $0x348] sm:$0xff] }
 0x258   : > { %v3598_v62 = vld [vmem:[%s6859_s3 + $0x330] sm:$0xff]  ;;  %v3600_v5 = vld [vmem:[%s6859_s3 + $0x340] sm:$0xff] }
 0x259   : > { %1882 = vmatmul.mubr.f32.gmra.mrb[14].mxu1 %v1733_v25  ;;  %v4338_v25 = vpack.c.bf16 %v3582_v23, %v3580_v11  ;;  %v3604_v11 = vld [vmem:[%s6859_s3 + $0x360] sm:$0xff]  ;;  %v3606_v23 = vld [vmem:[%s6859_s3 + $0x370] sm:$0xff] }
 0x25a   : > { %1952 = vmatprep.mubr.f32.mxu1 %v5612_v53 }
 0x25d   : > { %1953 = vmatmul.mubr.f32.vlgmr.msra.gmra.mrb[0].mxu1 %v5759_v31 }
 0x25e   : > { %4319 = vmatpush1.bf16.msra.mxu1 %v4318_v29  ;;  %1958 = vmatprep.mubr.f32.mxu1 %v5612_v53  ;;  %v3586_v29 = vld [vmem:[%s6859_s3 + $0x2d0] sm:$0xff] }
 0x25f   : > { %4321 = vmatprep.subr.bf16.mxu1 %v4320_v32  ;;  %v3589_v32 = vld [vmem:[%s6859_s3 + $0x2e8] sm:$0xff]  ;;  %v4342_v33 = vpack.c.bf16 %v3586_v29, %v3584_v28  ;;  %v3610_v28 = vld [vmem:[%s6859_s3 + $0x390] sm:$0xff]  ;;  %v3615_v29 = vld [vmem:[%s6859_s3 + $0x3b8] sm:$0xff] }
 0x261   : > { %1959 = vmatmul.mubr.f32.gmra.mrb[2].mxu1 %v5768_v40  ;;  %v3658_v40 = vld [vmem:[%s6861_s5 + $0x88] sm:$0xff] }
 0x262   : > { %4323 = vmatpush1.bf16.msra.mxu1 %v4322_v45  ;;  %1964 = vmatprep.mubr.f32.mxu1 %v5612_v53  ;;  %v3593_v45 = vld [vmem:[%s6859_s3 + $0x308] sm:$0xff] }
 0x263   : > { %4325 = vmatprep.subr.bf16.mxu1 %v4324_v46  ;;  %v4346_v46 = vpack.c.bf16 %v3590_v43, %v3588_v59  ;;  %v3617_v59 = vld [vmem:[%s6859_s3 + $0x3c8] sm:$0xff] }
 0x265   : > { %1965 = vmatmul.mubr.f32.gmra.mrb[4].mxu1 %v5841_v35  ;;  %v3583_v35 = vld [vmem:[%s6859_s3 + $0x2b8] sm:$0xff] }
 0x266   : > { %4327 = vmatpush1.bf16.msra.mxu1 %v4326_v54  ;;  %1970 = vmatprep.mubr.f32.mxu1 %v5612_v53  ;;  %v4336_v10 = vpack.c.bf16 %v3583_v35, %v3581_v6  ;;  %v2002_v54 = vrot.slane %v5759_v31, 2  ;;  %v3605_v6 = vld [vmem:[%s6859_s3 + $0x368] sm:$0xff]  ;;  %v3607_v35 = vld [vmem:[%s6859_s3 + $0x378] sm:$0xff] }
 0x267   : > { %4329 = vmatprep.subr.bf16.mxu1 %v4328_v57  ;;  %v4350_v57 = vpack.c.bf16 %v3594_v49, %v3592_v47 }
 0x269   : > { %1971 = vmatmul.mubr.f32.gmra.mrb[6].mxu1 %v5851_v48  ;;  %v3587_v48 = vld [vmem:[%s6859_s3 + $0x2d8] sm:$0xff] }
 0x26a   : > { %4331 = vmatpush1.bf16.msra.mxu1 %v4330_v0  ;;  %1976 = vmatprep.mubr.f32.mxu1 %v5612_v53  ;;  %v4340_v27 = vpack.c.bf16 %v3587_v48, %v3585_v24  ;;  %v3603_v0 = vld [vmem:[%s6859_s3 + $0x358] sm:$0xff]  ;;  %v3609_v24 = vld [vmem:[%s6859_s3 + $0x388] sm:$0xff]  ;;  %v4362_v48 = vpack.c.bf16 %v3606_v23, %v3604_v11 }
 0x26b   : > { %4333 = vmatprep.subr.bf16.mxu1 %v4332_v1  ;;  %v4354_v1 = vpack.c.bf16 %v3598_v62, %v3596_v60  ;;  %v4356_v4 = vpack.c.bf16 %v3603_v0, %v3601_v63  ;;  %v3624_v60 = vld [vmem:[%s6859_s3 + $0x400] sm:$0xff]  ;;  %v3626_v62 = vld [vmem:[%s6859_s3 + $0x410] sm:$0xff]  ;;  %v2193_v63 = vrot.slane %v5759_v31, 3  ;;  %v3637_v11 = vld [vmem:[%s6859_s3 + $0x468] sm:$0xff] }
 0x26c   : > { %v4382_v0 = vpack.c.bf16 %v3626_v62, %v3624_v60  ;;  %v3639_v23 = vld [vmem:[%s6859_s3 + $0x478] sm:$0xff]  ;;  %v3666_v60 = vld [vmem:[%s6861_s5 + $0xc8] sm:$0xff] }
 0x26d   : > { %1977 = vmatmul.mubr.f32.gmra.mrb[8].mxu1 %v5931_v61  ;;  %v3591_v61 = vld [vmem:[%s6859_s3 + $0x2f8] sm:$0xff] }
 0x26e   : > { %4335 = vmatpush1.bf16.msra.mxu1 %v4334_v8  ;;  %1982 = vmatprep.mubr.f32.mxu1 %v5612_v53  ;;  %v4344_v34 = vpack.c.bf16 %v3591_v61, %v3589_v32 }
 0x26f   : > { %4337 = vmatprep.subr.bf16.mxu1 %v4336_v10  ;;  %v4360_v10 = vpack.c.bf16 %v3607_v35, %v3605_v6  ;;  %v3635_v6 = vld [vmem:[%s6859_s3 + $0x458] sm:$0xff] }
 0x271   : > { %1983 = vmatmul.mubr.f32.gmra.mrb[10].mxu1 %v5934_v9  ;;  %v3595_v9 = vld [vmem:[%s6859_s3 + $0x318] sm:$0xff] }
 0x272   : > { %4339 = vmatpush1.bf16.msra.mxu1 %v4338_v25  ;;  %1988 = vmatprep.mubr.f32.mxu1 %v5612_v53  ;;  %v4348_v44 = vpack.c.bf16 %v3595_v9, %v3593_v45  ;;  %v3616_v9 = vld [vmem:[%s6859_s3 + $0x3c0] sm:$0xff] }
 0x273   : > { %4341 = vmatprep.subr.bf16.mxu1 %v4340_v27  ;;  %v3608_v27 = vld [vmem:[%s6859_s3 + $0x380] sm:$0xff] }
 0x274   : > { %v4366_v32 = vpack.c.bf16 %v3610_v28, %v3608_v27  ;;  %v3641_v27 = vld [vmem:[%s6859_s3 + $0x488] sm:$0xff] }
 0x275   : > { %1989 = vmatmul.mubr.f32.gmra.mrb[12].mxu1 %v5967_v50  ;;  %v3599_v50 = vld [vmem:[%s6859_s3 + $0x338] sm:$0xff] }
 0x276   : > { %4343 = vmatpush1.bf16.msra.mxu1 %v4342_v33  ;;  %1994 = vmatprep.mubr.f32.mxu1 %v5612_v53  ;;  %v4352_v58 = vpack.c.bf16 %v3599_v50, %v3597_v52  ;;  %v3612_v33 = vld [vmem:[%s6859_s3 + $0x3a0] sm:$0xff]  ;;  %v3622_v50 = vld [vmem:[%s6859_s3 + $0x3f0] sm:$0xff] }
 0x277   : > { %4345 = vmatprep.subr.bf16.mxu1 %v4344_v34  ;;  %v3614_v34 = vld [vmem:[%s6859_s3 + $0x3b0] sm:$0xff]  ;;  %v3620_v52 = vld [vmem:[%s6859_s3 + $0x3e0] sm:$0xff] }
 0x278   : > { %v4370_v43 = vpack.c.bf16 %v3614_v34, %v3612_v33 }
 0x279   : > { %1995 = vmatmul.mubr.f32.gmra.mrb[14].mxu1 %v5969_v55  ;;  %v2004_v55 = vsel %vm2001_vm1, %v2002_v54, %v2003_v51  ;;  %v3602_v51 = vld [vmem:[%s6859_s3 + $0x350] sm:$0xff]  ;;  %v3625_v54 = vld [vmem:[%s6859_s3 + $0x408] sm:$0xff] }
 0x27a   : > { %4347 = vmatpush1.bf16.msra.mxu1 %v4346_v46  ;;  %2127 = vmatprep.mubr.f32.mxu1 %v5612_v53  ;;  %v4358_v8 = vpack.c.bf16 %v3602_v51, %v3600_v5  ;;  %v3618_v46 = vld [vmem:[%s6859_s3 + $0x3d0] sm:$0xff]  ;;  %v3633_v51 = vld [vmem:[%s6859_s3 + $0x448] sm:$0xff] }
 0x27b   : > { %4349 = vmatprep.subr.bf16.mxu1 %v4348_v44  ;;  %v3621_v44 = vld [vmem:[%s6859_s3 + $0x3e8] sm:$0xff]  ;;  %v4374_v47 = vpack.c.bf16 %v3618_v46, %v3616_v9  ;;  %v3630_v5 = vld [vmem:[%s6859_s3 + $0x430] sm:$0xff]  ;;  %v3648_v46 = vld [vmem:[%s6859_s3 + $0x4c0] sm:$0xff] }
 0x27d   : > { %2128 = vmatmul.mubr.f32.vlgmr.msra.gmra.mrb[0].mxu1 %v2004_v55  ;;  %v3629_v55 = vld [vmem:[%s6859_s3 + $0x428] sm:$0xff] }
 0x27e   : > { %4351 = vmatpush1.bf16.msra.mxu1 %v4350_v57  ;;  %2133 = vmatprep.mubr.f32.mxu1 %v5612_v53  ;;  %v4378_v57 = vpack.c.bf16 %v3622_v50, %v3620_v52  ;;  %v3652_v52 = vld [vmem:[%s6859_s3 + $0x4e0] sm:$0xff]  ;;  %v3654_v50 = vld [vmem:[%s6859_s3 + $0x4f0] sm:$0xff] }
 0x27f   : > { %4353 = vmatprep.subr.bf16.mxu1 %v4352_v58 }
 0x281   : > { %2134 = vmatmul.mubr.f32.gmra.mrb[2].mxu1 %v5798_v2  ;;  %v3611_v2 = vld [vmem:[%s6859_s3 + $0x398] sm:$0xff] }
 0x282   : > { %4355 = vmatpush1.bf16.msra.mxu1 %v4354_v1  ;;  %2139 = vmatprep.mubr.f32.mxu1 %v5612_v53  ;;  %v6169_v53 = vld [vmem:[#allocation2 + $0x20] sm:$0xff]  ;;  %v4364_v25 = vpack.c.bf16 %v3611_v2, %v3609_v24  ;;  %v4392_v2 = vpack.c.bf16 %v3639_v23, %v3637_v11 }
 0x283   : > { %4357 = vmatprep.subr.bf16.mxu1 %v4356_v4  ;;  %v3628_v4 = vld [vmem:[%s6859_s3 + $0x420] sm:$0xff]  ;;  %4054 = vmatprep.mubr.msk.f32.mxu0 %vm4883_vm4, %v6169_v53 }
 0x284   : > { %v4386_v35 = vpack.c.bf16 %v3630_v5, %v3628_v4  ;;  %v3671_v5 = vld [vmem:[%s6861_s5 + $0xf0] sm:$0xff] }
 0x285   : > { %2140 = vmatmul.mubr.f32.gmra.mrb[4].mxu1 %v5884_v17  ;;  %v3613_v17 = vld [vmem:[%s6859_s3 + $0x3a8] sm:$0xff] }
 0x286   : > { %4359 = vmatpush1.bf16.msra.mxu1 %v4358_v8  ;;  %2145 = vmatprep.mubr.f32.mxu1 %v6169_v53  ;;  %v4368_v61 = vpack.c.bf16 %v3615_v29, %v3613_v17  ;;  %v4388_v8 = vpack.c.bf16 %v3635_v6, %v3633_v51  ;;  %v3640_v29 = vld [vmem:[%s6859_s3 + $0x480] sm:$0xff] }
 0x287   : > { %4361 = vmatprep.subr.bf16.mxu1 %v4360_v10  ;;  %v3632_v10 = vld [vmem:[%s6859_s3 + $0x440] sm:$0xff] }
 0x289   : > { %2146 = vmatmul.mubr.f32.gmra.mrb[6].mxu1 %v5888_v20  ;;  %v3619_v20 = vld [vmem:[%s6859_s3 + $0x3d8] sm:$0xff] }
 0x28a   : > { %4363 = vmatpush1.bf16.msra.mxu1 %v4362_v48  ;;  %2151 = vmatprep.mubr.f32.mxu1 %v6169_v53  ;;  %v4372_v45 = vpack.c.bf16 %v3619_v20, %v3617_v59  ;;  %v3636_v48 = vld [vmem:[%s6859_s3 + $0x460] sm:$0xff]  ;;  %v3646_v20 = vld [vmem:[%s6859_s3 + $0x4b0] sm:$0xff] }
 0x28b   : > { %4365 = vmatprep.subr.bf16.mxu1 %v4364_v25  ;;  %v3638_v25 = vld [vmem:[%s6859_s3 + $0x470] sm:$0xff]  ;;  %v3644_v59 = vld [vmem:[%s6859_s3 + $0x4a0] sm:$0xff] }
 0x28c   : > { %v4394_v28 = vpack.c.bf16 %v3638_v25, %v3636_v48 }
 0x28d   : > { %2152 = vmatmul.mubr.f32.gmra.mrb[8].mxu1 %v5947_v36  ;;  %v3623_v36 = vld [vmem:[%s6859_s3 + $0x3f8] sm:$0xff] }
 0x28e   : > { %4367 = vmatpush1.bf16.msra.mxu1 %v4366_v32  ;;  %2157 = vmatprep.mubr.f32.mxu1 %v6169_v53  ;;  %v4376_v49 = vpack.c.bf16 %v3623_v36, %v3621_v44  ;;  %v3642_v32 = vld [vmem:[%s6859_s3 + $0x490] sm:$0xff]  ;;  %v3653_v36 = vld [vmem:[%s6859_s3 + $0x4e8] sm:$0xff] }
 0x28f   : > { %4369 = vmatprep.subr.bf16.mxu1 %v4368_v61  ;;  %v3645_v61 = vld [vmem:[%s6859_s3 + $0x4a8] sm:$0xff]  ;;  %v4398_v33 = vpack.c.bf16 %v3642_v32, %v3640_v29  ;;  %v3650_v44 = vld [vmem:[%s6859_s3 + $0x4d0] sm:$0xff] }
 0x291   : > { %2158 = vmatmul.mubr.f32.gmra.mrb[10].mxu1 %v5950_v37  ;;  %v3627_v37 = vld [vmem:[%s6859_s3 + $0x418] sm:$0xff] }
 0x292   : > { %4371 = vmatpush1.bf16.msra.mxu1 %v4370_v43  ;;  %2163 = vmatprep.mubr.f32.mxu1 %v6169_v53  ;;  %v4380_v58 = vpack.c.bf16 %v3627_v37, %v3625_v54  ;;  %v3649_v43 = vld [vmem:[%s6859_s3 + $0x4c8] sm:$0xff]  ;;  %v2384_v54 = vrot.slane %v5759_v31, 4  ;;  %v3657_v31 = vld [vmem:[%s6861_s5 + $0x80] sm:$0xff] }
 0x293   : > { %4373 = vmatprep.subr.bf16.mxu1 %v4372_v45  ;;  %v4402_v45 = vpack.c.bf16 %v3646_v20, %v3644_v59 }
 0x294   : > { %v2386_v37 = vsel %vm2383_vm3, %v2384_v54, %v2385_v7  ;;  %v4413_v7 = vpack.c.bf16 %v3658_v40, %v3657_v31 }
 0x295   : > { %2164 = vmatmul.mubr.f32.gmra.mrb[12].mxu1 %v5981_v13  ;;  %v3631_v13 = vld [vmem:[%s6859_s3 + $0x438] sm:$0xff] }
 0x296   : > { %4375 = vmatpush1.bf16.msra.mxu1 %v4374_v47  ;;  %2169 = vmatprep.mubr.f32.mxu1 %v6169_v53  ;;  %v4384_v1 = vpack.c.bf16 %v3631_v13, %v3629_v55  ;;  %v4406_v47 = vpack.c.bf16 %v3650_v44, %v3648_v46  ;;  %v3667_v55 = vld [vmem:[%s6861_s5 + $0xd0] sm:$0xff]  ;;  %v3668_v13 = vld [vmem:[%s6861_s5 + $0xd8] sm:$0xff] }
 0x297   : > { %4377 = vmatprep.subr.bf16.mxu1 %v4376_v49 }
 0x299   : > { %2170 = vmatmul.mubr.f32.gmra.mrb[14].mxu1 %v5984_v14  ;;  %v2195_v14 = vsel %vm2192_vm2, %v2193_v63, %v2194_v56  ;;  %v3634_v56 = vld [vmem:[%s6859_s3 + $0x450] sm:$0xff]  ;;  %v4428_v63 = vpack.c.bf16 %v3668_v13, %v3667_v55 }
 0x29a   : > { %4379 = vmatpush1.bf16.msra.mxu1 %v4378_v57  ;;  %2318 = vmatprep.mubr.f32.mxu1 %v6169_v53  ;;  %v4390_v24 = vpack.c.bf16 %v3634_v56, %v3632_v10 }
 0x29b   : > { %4381 = vmatprep.subr.bf16.mxu1 %v4380_v58  ;;  %v3665_v58 = vld [vmem:[%s6861_s5 + $0xc0] sm:$0xff] }
 0x29c   : > { %v4425_v62 = vpack.c.bf16 %v3666_v60, %v3665_v58 }
 0x29d   : > { %2319 = vmatmul.mubr.f32.vlgmr.msra.gmra.mrb[0].mxu1 %v2195_v14  ;;  %v3672_v14 = vld [vmem:[%s6861_s5 + $0xf8] sm:$0xff] }
 0x29e   : > { %4383 = vmatpush1.bf16.msra.mxu1 %v4382_v0  ;;  %2324 = vmatprep.mubr.f32.mxu1 %v6169_v53  ;;  %v3669_v0 = vld [vmem:[%s6861_s5 + $0xe0] sm:$0xff]  ;;  %v4434_v51 = vpack.c.bf16 %v3672_v14, %v3671_v5 }
 0x29f   : > { %4385 = vmatprep.subr.bf16.mxu1 %v4384_v1  ;;  %v3670_v1 = vld [vmem:[%s6861_s5 + $0xe8] sm:$0xff] }
 0x2a0   : > { %v4431_v4 = vpack.c.bf16 %v3670_v1, %v3669_v0 }
 0x2a1   : > { %2325 = vmatmul.mubr.f32.gmra.mrb[2].mxu1 %v5803_v3  ;;  %v3643_v3 = vld [vmem:[%s6859_s3 + $0x498] sm:$0xff] }
 0x2a2   : > { %4387 = vmatpush1.bf16.msra.mxu1 %v4386_v35  ;;  %2330 = vmatprep.mubr.f32.mxu1 %v6169_v53  ;;  %v4396_v17 = vpack.c.bf16 %v3643_v3, %v3641_v27 }
 0x2a3   : > { %4389 = vmatprep.subr.bf16.mxu1 %v4388_v8  ;;  %v6422_v8 = vld [vmem:[%s6860_s4] ss:$0 sm:$0xff] }
 0x2a5   : > { %2331 = vmatmul.mubr.f32.gmra.mrb[4].mxu1 %v5891_v21  ;;  %v3647_v21 = vld [vmem:[%s6859_s3 + $0x4b8] sm:$0xff] }
 0x2a6   : > { %4391 = vmatpush1.bf16.msra.mxu1 %v4390_v24  ;;  %2336 = vmatprep.mubr.f32.mxu1 %v6169_v53  ;;  %v4400_v34 = vpack.c.bf16 %v3647_v21, %v3645_v61 }
 0x2a7   : > { %4393 = vmatprep.subr.bf16.mxu1 %v4392_v2 }
 0x2a9   : > { %2337 = vmatmul.mubr.f32.gmra.mrb[6].mxu1 %v5894_v22  ;;  %v3651_v22 = vld [vmem:[%s6859_s3 + $0x4d8] sm:$0xff] }
 0x2aa   : > { %4395 = vmatpush1.bf16.msra.mxu1 %v4394_v28  ;;  %2342 = vmatprep.mubr.f32.mxu1 %v6169_v53  ;;  %v4404_v9 = vpack.c.bf16 %v3651_v22, %v3649_v43 }
 0x2ab   : > { %4397 = vmatprep.subr.bf16.mxu1 %v4396_v17 }
 0x2ad   : > { %2343 = vmatmul.mubr.f32.gmra.mrb[8].mxu1 %v5953_v38  ;;  %v3655_v38 = vld [vmem:[%s6859_s3 + $0x4f8] sm:$0xff] }
 0x2ae   : > { %4399 = vmatpush1.bf16.msra.mxu1 %v4398_v33  ;;  %2348 = vmatprep.mubr.f32.mxu1 %v6169_v53  ;;  %v4408_v49 = vpack.c.bf16 %v3655_v38, %v3653_v36 }
 0x2af   : > { %4401 = vmatprep.subr.bf16.mxu1 %v4400_v34 }
 0x2b1   : > { %2349 = vmatmul.mubr.f32.gmra.mrb[10].mxu1 %v5956_v39  ;;  %v4410_v39 = vpack.c.bf16 %v3654_v50, %v3652_v52 }
 0x2b2   : > { %4403 = vmatpush1.bf16.msra.mxu1 %v4402_v45  ;;  %2354 = vmatprep.mubr.f32.mxu1 %v6169_v53 }
 0x2b3   : > { %4405 = vmatprep.subr.bf16.mxu1 %v4404_v9 }
 0x2b5   : > { %2355 = vmatmul.mubr.f32.gmra.mrb[12].mxu1 %v5987_v15  ;;  %v3662_v15 = vld [vmem:[%s6861_s5 + $0xa8] sm:$0xff] }
 0x2b6   : > { %4407 = vmatpush1.bf16.msra.mxu1 %v4406_v47  ;;  %2360 = vmatprep.mubr.f32.mxu1 %v6169_v53 }
 0x2b7   : > { %4409 = vmatprep.subr.bf16.mxu1 %v4408_v49 }
 0x2b9   : > { %2361 = vmatmul.mubr.f32.gmra.mrb[14].mxu1 %v5990_v16 }
 0x2ba   : > { %4411 = vmatpush1.bf16.msra.mxu1 %v4410_v39  ;;  %2509 = vmatprep.mubr.f32.mxu1 %v6169_v53 }
 0x2bd   : > { %2510 = vmatmul.mubr.f32.vlgmr.msra.gmra.mrb[0].mxu1 %v2386_v37 }
 0x2be   : > { %2515 = vmatprep.mubr.f32.mxu1 %v6169_v53 }
 0x2c1   : > { %2516 = vmatmul.mubr.f32.gmra.mrb[2].mxu1 %v5815_v12  ;;  %v4882_v12 = vmov 0.0|0.0  }
 0x2c2   : > { %2521 = vmatprep.mubr.f32.mxu1 %v6169_v53  ;;  %4412 = vmatprep.subr.bf16.mxu1 %v4882_v12 }
 0x2c3   : > { %4532 = vmatprep.subr.bf16.mxu0 %v4882_v12  ;;  %4414 = vmatpush3.bf16.msra.mxu1 %v4413_v7 }
 0x2c4   : > { %4415 = vmatprep.subr.bf16.mxu1 %v4882_v12 }
 0x2c5   : > { %2522 = vmatmul.mubr.f32.gmra.mrb[4].mxu1 %v5898_v26  ;;  %v3659_v26 = vld [vmem:[%s6861_s5 + $0x90] sm:$0xff] }
 0x2c6   : > { %2527 = vmatprep.mubr.f32.mxu1 %v6169_v53 }
 0x2c9   : > { %2528 = vmatmul.mubr.f32.gmra.mrb[6].mxu1 %v5907_v30  ;;  %v3660_v30 = vld [vmem:[%s6861_s5 + $0x98] sm:$0xff] }
 0x2ca   : > { %2533 = vmatprep.mubr.f32.mxu1 %v6169_v53 }
 0x2cd   : > { %2534 = vmatmul.mubr.f32.gmra.mrb[8].mxu1 %v5959_v41  ;;  %v4416_v41 = vpack.c.bf16 %v3660_v30, %v3659_v26 }
 0x2ce   : > { %2539 = vmatprep.mubr.f32.mxu1 %v6169_v53 }
 0x2cf   : > { %4417 = vmatpush3.bf16.msra.mxu1 %v4416_v41 }
 0x2d0   : > { %4418 = vmatprep.subr.bf16.mxu1 %v4882_v12 }
 0x2d1   : > { %2540 = vmatmul.mubr.f32.gmra.mrb[10].mxu1 %v5963_v42  ;;  %v3661_v42 = vld [vmem:[%s6861_s5 + $0xa0] sm:$0xff] }
 0x2d2   : > { %2545 = vmatprep.mubr.f32.mxu1 %v6169_v53  ;;  %v4419_v16 = vpack.c.bf16 %v3662_v15, %v3661_v42 }
 0x2d4   : > { %4420 = vmatpush3.bf16.msra.mxu1 %v4419_v16 }
 0x2d5   : > { %2546 = vmatmul.mubr.f32.gmra.mrb[12].mxu1 %v5993_v18  ;;  %4421 = vmatprep.subr.bf16.mxu1 %v4882_v12  ;;  %v3663_v18 = vld [vmem:[%s6861_s5 + $0xb0] sm:$0xff] }
 0x2d6   : > { %2551 = vmatprep.mubr.f32.mxu1 %v6169_v53 }
 0x2d9   : > { %2552 = vmatmul.mubr.f32.gmra.mrb[14].mxu1 %v5996_v19  ;;  %v3664_v19 = vld [vmem:[%s6861_s5 + $0xb8] sm:$0xff] }
 0x2da   : > { %v4422_v57 = vpack.c.bf16 %v3664_v19, %v3663_v18  ;;  %3879 = vmatprep.mubr.msk.f32.mxu1 %vm4883_vm4, %v6169_v53 }
 0x2dc   : > { %4423 = vmatpush3.bf16.msra.mxu1 %v4422_v57 }
 0x2dd   : > { %4424 = vmatprep.subr.bf16.mxu1 %v4882_v12 }
 0x2e0   : > { %4426 = vmatpush3.bf16.msra.mxu1 %v4425_v62 }
 0x2e1   : > { %4427 = vmatprep.subr.bf16.mxu1 %v4882_v12 }
 0x2e4   : > { %4429 = vmatpush3.bf16.msra.mxu1 %v4428_v63 }
 0x2e5   : > { %4430 = vmatprep.subr.bf16.mxu1 %v4882_v12 }
 0x2e8   : > { %4432 = vmatpush3.bf16.msra.mxu1 %v4431_v4 }
 0x2e9   : > { %4433 = vmatprep.subr.bf16.mxu1 %v4882_v12 }
 0x2ec   : > { %4435 = vmatpush3.bf16.msra.mxu1 %v4434_v51 }
 0x2ed   : > { %4436 = vmatprep.subr.bf16.mxu1 %v4882_v12 }
 0x390   : > { %v2511_v6 = vpop.f32.mrb[0].mxu1 }
 0x391   : > { %v2513_v35 = vpop.f32.mrb[1].mxu1 }
 0x392   : > { %v2574_v10 = vmax.f32 %v2511_v6, %v2513_v35 }
 0x394   : > { %v2589_v56 = vadd.f32 %v6422_v8, %v2574_v10  ;;  %v2517_v11 = vpop.f32.mrb[2].mxu1 }
 0x395   : > { %v2519_v23 = vpop.f32.mrb[3].mxu1 }
 0x396   : > { %v2575_v24 = vmax.f32 %v2517_v11, %v2519_v23  ;;  %v2597_v2 = vmax.f32 %v2589_v56, 0.0 }
 0x398   : > { %v2590_v48 = vadd.f32 %v6422_v8, %v2575_v24  ;;  %v2523_v25 = vpop.f32.mrb[4].mxu1  ;;  %v2609_v28 = vrot.slane %v2597_v2, 1 }
 0x399   : > { %v2525_v27 = vpop.f32.mrb[5].mxu1 }
 0x39a   : > { %v2576_v3 = vmax.f32 %v2523_v25, %v2525_v27  ;;  %v2617_v33 = vmax.f32 %v2597_v2, %v2609_v28  ;;  %v2598_v34 = vmax.f32 %v2590_v48, 0.0  ;;  %v2621_v28 = vld [vmem:[%s6861_s5] sm:$0xff] }
 0x39c   : > { %v2591_v17 = vadd.f32 %v6422_v8, %v2576_v3  ;;  %v2529_v29 = vpop.f32.mrb[6].mxu1  ;;  %v2658_v44 = vrot.slane %v2617_v33, 2  ;;  %v3011_v36 = vrot.slane %v2598_v34, 1  ;;  %v2832_v54 = vrot.slane %v2617_v33, 4 }
 0x39d   : > { %v2531_v32 = vpop.f32.mrb[7].mxu1  ;;  %v2928_v31 = vrot.slane %v2617_v33, 6 }
 0x39e   : > { %v2599_v61 = vmax.f32 %v2591_v17, 0.0  ;;  %v2577_v21 = vmax.f32 %v2529_v29, %v2531_v32  ;;  %v3019_v60 = vmax.f32 %v2598_v34, %v3011_v36  ;;  %v2622_v17 = vld [vmem:[%s6861_s5 + $0x8] sm:$0xff] }
 0x3a0   : > { %v2610_v59 = vrot.slane %v2599_v61, 1  ;;  %v2592_v20 = vadd.f32 %v6422_v8, %v2577_v21  ;;  %v2535_v43 = vpop.f32.mrb[8].mxu1  ;;  %v4437_v21 = vpack.c.bf16 %v2622_v17, %v2621_v28  ;;  %v3689_v17 = vld [vmem:[%s6861_s5 + $0x180] sm:$0xff] }
 0x3a1   : > { %v2537_v22 = vpop.f32.mrb[9].mxu1 }
 0x3a2   : > { %v2618_v45 = vmax.f32 %v2599_v61, %v2610_v59  ;;  %v2600_v9 = vmax.f32 %v2592_v20, 0.0  ;;  %v2578_v46 = vmax.f32 %v2535_v43, %v2537_v22  ;;  %v2624_v43 = vld [vmem:[%s6861_s5 + $0x18] sm:$0xff] }
 0x3a4   : > { %v2659_v38 = vrot.slane %v2618_v45, 1  ;;  %v3012_v47 = vrot.slane %v2600_v9, 1  ;;  %v2593_v49 = vadd.f32 %v6422_v8, %v2578_v46  ;;  %v2541_v52 = vpop.f32.mrb[10].mxu1  ;;  %v2738_v50 = vrot.slane %v2618_v45, 7 }
 0x3a5   : > { %v2543_v39 = vpop.f32.mrb[11].mxu1  ;;  %v2833_v37 = vrot.slane %v2618_v45, 3  ;;  %v2929_v40 = vrot.slane %v2618_v45, 5 }
 0x3a6   : > { %v3020_v7 = vmax.f32 %v2600_v9, %v3012_v47  ;;  %v2601_v26 = vmax.f32 %v2593_v49, 0.0  ;;  %v2579_v30 = vmax.f32 %v2541_v52, %v2543_v39  ;;  %v2661_v41 = vsel %vm2660_vm5, %v2659_v38, %v2658_v44  ;;  %v2625_v49 = vld [vmem:[%s6861_s5 + $0x20] sm:$0xff]  ;;  %v2626_v52 = vld [vmem:[%s6861_s5 + $0x28] sm:$0xff] }
 0x3a7   : > { %v2739_v42 = vsel %vm2660_vm5, %v2738_v50, %v2617_v33  ;;  %v2834_v15 = vsel %vm2660_vm5, %v2833_v37, %v2832_v54  ;;  %v2930_v16 = vsel %vm2660_vm5, %v2929_v40, %v2928_v31  ;;  %v4443_v39 = vpack.c.bf16 %v2626_v52, %v2625_v49  ;;  %v2627_v54 = vld [vmem:[%s6861_s5 + $0x30] sm:$0xff]  ;;  %v2628_v37 = vld [vmem:[%s6861_s5 + $0x38] sm:$0xff]  ;;  %v2629_v40 = vld [vmem:[%s6861_s5 + $0x40] sm:$0xff] }
 0x3a8   : > { %v3044_v18 = vrot.slane %v3020_v7, 7  ;;  %v2611_v19 = vrot.slane %v2601_v26, 1  ;;  %v2594_v57 = vadd.f32 %v6422_v8, %v2579_v30  ;;  %v2547_v58 = vpop.f32.mrb[12].mxu1  ;;  %v4446_v31 = vpack.c.bf16 %v2628_v37, %v2627_v54  ;;  %v2630_v7 = vld [vmem:[%s6861_s5 + $0x48] sm:$0xff]  ;;  %v2631_v30 = vld [vmem:[%s6861_s5 + $0x50] sm:$0xff]  ;;  %v3701_v49 = vld [vmem:[%s6861_s5 + $0x1e0] sm:$0xff] }
 0x3a9   : > { %v2549_v62 = vpop.f32.mrb[13].mxu1  ;;  %v3702_v52 = vld [vmem:[%s6861_s5 + $0x1e8] sm:$0xff]  ;;  %v3703_v54 = vld [vmem:[%s6861_s5 + $0x1f0] sm:$0xff]  ;;  %v3704_v37 = vld [vmem:[%s6861_s5 + $0x1f8] sm:$0xff] }
 0x3aa   : > { %v2619_v55 = vmax.f32 %v2601_v26, %v2611_v19  ;;  %v2602_v13 = vmax.f32 %v2594_v57, 0.0  ;;  %v2580_v63 = vmax.f32 %v2547_v58, %v2549_v62  ;;  %v3045_v0 = vsel %vm2660_vm5, %v3044_v18, %v3019_v60  ;;  %v2635_v19 = vld [vmem:[%s6861_s5 + $0x70] sm:$0xff]  ;;  %v2636_v57 = vld [vmem:[%s6861_s5 + $0x78] sm:$0xff]  ;;  %v3673_v60 = vld [vmem:[%s6861_s5 + $0x100] sm:$0xff] }
 0x3ab   : > { %v4449_v26 = vpack.c.bf16 %v2630_v7, %v2629_v40  ;;  %v4458_v58 = vpack.c.bf16 %v2636_v57, %v2635_v19  ;;  %v3674_v62 = vld [vmem:[%s6861_s5 + $0x108] sm:$0xff]  ;;  %v3705_v40 = vld [vmem:[%s6861_s5 + $0x200] sm:$0xff]  ;;  %v3712_v19 = vld [vmem:[%s6861_s5 + $0x238] sm:$0xff] }
 0x3ac   : > { %v3013_v1 = vrot.slane %v2602_v13, 1  ;;  %v2595_v4 = vadd.f32 %v6422_v8, %v2580_v63  ;;  %v2553_v5 = vpop.f32.mrb[14].mxu1  ;;  %v2663_v14 = vsel %vm2662_vm6, %v2619_v55, %v2661_v41  ;;  %v2740_v51 = vrot.slane %v2619_v55, 6  ;;  %v2632_v41 = vld [vmem:[%s6861_s5 + $0x58] sm:$0xff]  ;;  %v3706_v7 = vld [vmem:[%s6861_s5 + $0x208] sm:$0xff] }
 0x3ad   : > { %v2555_v6 = vpop.f32.mrb[15].mxu1  ;;  %v2835_v35 = vrot.slane %v2619_v55, 2  ;;  %v2931_v10 = vrot.slane %v2619_v55, 4  ;;  %v4461_v55 = vpack.c.bf16 %v3674_v62, %v3673_v60  ;;  %v3676_v63 = vld [vmem:[%s6861_s5 + $0x118] sm:$0xff]  ;;  %v3714_v60 = vld [vmem:[%s6861_s5 + $0x248] sm:$0xff] }
 0x3ae   : > { %v3021_v56 = vmax.f32 %v2602_v13, %v3013_v1  ;;  %v2603_v11 = vmax.f32 %v2595_v4, 0.0  ;;  %v2581_v23 = vmax.f32 %v2553_v5, %v2555_v6  ;;  %v2741_v24 = vsel %vm2662_vm6, %v2740_v51, %v2739_v42  ;;  %v3675_v13 = vld [vmem:[%s6861_s5 + $0x110] sm:$0xff]  ;;  %v3677_v1 = vld [vmem:[%s6861_s5 + $0x120] sm:$0xff]  ;;  %v3678_v4 = vld [vmem:[%s6861_s5 + $0x128] sm:$0xff] }
 0x3af   : > { %v2836_v2 = vsel %vm2662_vm6, %v2835_v35, %v2834_v15  ;;  %v2932_v48 = vsel %vm2662_vm6, %v2931_v10, %v2930_v16  ;;  %v4452_v42 = vpack.c.bf16 %v2632_v41, %v2631_v30  ;;  %v2633_v15 = vld [vmem:[%s6861_s5 + $0x60] sm:$0xff]  ;;  %v2634_v16 = vld [vmem:[%s6861_s5 + $0x68] sm:$0xff]  ;;  %v4467_v5 = vpack.c.bf16 %v3678_v4, %v3677_v1  ;;  %v3680_v51 = vld [vmem:[%s6861_s5 + $0x138] sm:$0xff] }
 0x3b0   : > { %v3046_v25 = vrot.slane %v3021_v56, 6  ;;  %v2612_v27 = vrot.slane %v2603_v11, 1  ;;  %v2596_v3 = vadd.f32 %v6422_v8, %v2581_v23  ;;  %v2623_v8 = vld [vmem:[%s6861_s5 + $0x10] sm:$0xff]  ;;  %v4455_v18 = vpack.c.bf16 %v2634_v16, %v2633_v15  ;;  %v3681_v35 = vld [vmem:[%s6861_s5 + $0x140] sm:$0xff]  ;;  %v3682_v10 = vld [vmem:[%s6861_s5 + $0x148] sm:$0xff] }
 0x3b1   : > { %v4440_v47 = vpack.c.bf16 %v2624_v43, %v2623_v8  ;;  %v4473_v56 = vpack.c.bf16 %v3682_v10, %v3681_v35  ;;  %v3684_v23 = vld [vmem:[%s6861_s5 + $0x158] sm:$0xff]  ;;  %v3695_v8 = vld [vmem:[%s6861_s5 + $0x1b0] sm:$0xff]  ;;  %v3709_v15 = vld [vmem:[%s6861_s5 + $0x220] sm:$0xff] }
 0x3b2   : > { %v2620_v29 = vmax.f32 %v2603_v11, %v2612_v27  ;;  %v2604_v32 = vmax.f32 %v2596_v3, 0.0  ;;  %v3047_v61 = vsel %vm2662_vm6, %v3046_v25, %v3045_v0  ;;  %v4464_v0 = vpack.c.bf16 %v3676_v63, %v3675_v13  ;;  %v3683_v11 = vld [vmem:[%s6861_s5 + $0x150] sm:$0xff]  ;;  %v3688_v3 = vld [vmem:[%s6861_s5 + $0x178] sm:$0xff]  ;;  %v3710_v16 = vld [vmem:[%s6861_s5 + $0x228] sm:$0xff] }
 0x3b3   : > { %v3687_v27 = vld [vmem:[%s6861_s5 + $0x170] sm:$0xff]  ;;  %v3696_v43 = vld [vmem:[%s6861_s5 + $0x1b8] sm:$0xff]  ;;  %v3718_v1 = vld [vmem:[%s6861_s5 + $0x268] sm:$0xff] }
 0x3b4   : > { %v3014_v33 = vrot.slane %v2604_v32, 1  ;;  %v2664_v34 = vrot.slane %v2620_v29, 7  ;;  %v2742_v59 = vrot.slane %v2620_v29, 5  ;;  %v2837_v20 = vrot.slane %v2620_v29, 1  ;;  %v3707_v30 = vld [vmem:[%s6861_s5 + $0x210] sm:$0xff]  ;;  %v3708_v41 = vld [vmem:[%s6861_s5 + $0x218] sm:$0xff] }
 0x3b5   : > { %v2933_v22 = vrot.slane %v2620_v29, 3  ;;  %v4482_v28 = vpack.c.bf16 %v3688_v3, %v3687_v27  ;;  %v3690_v29 = vld [vmem:[%s6861_s5 + $0x188] sm:$0xff]  ;;  %v3716_v13 = vld [vmem:[%s6861_s5 + $0x258] sm:$0xff]  ;;  %v3133_v10 = vld [vmem:[%s6863_s7 + $0x10] sm:$0xff] }
 0x3b6   : > { %v3022_v45 = vmax.f32 %v2604_v32, %v3014_v33  ;;  %v2666_v9 = vsel %vm2665_vm7, %v2664_v34, %v2663_v14  ;;  %v2743_v46 = vsel %vm2665_vm7, %v2742_v59, %v2741_v24  ;;  %v6457_v44 = vsel %vm2665_vm7, %v2837_v20, %v2836_v2  ;;  %v3679_v14 = vld [vmem:[%s6861_s5 + $0x130] sm:$0xff]  ;;  %v3685_v2 = vld [vmem:[%s6861_s5 + $0x160] sm:$0xff]  ;;  %v3694_v59 = vld [vmem:[%s6861_s5 + $0x1a8] sm:$0xff] }
 0x3b7   : > { %3880 = vmatmul.mubr.f32.vlgmr.msra.gmra.mrb[16].mxu1 %v2666_v9  ;;  %v6460_v36 = vsel %vm2665_vm7, %v2933_v22, %v2932_v48  ;;  %v4470_v6 = vpack.c.bf16 %v3680_v51, %v3679_v14  ;;  %v4476_v24 = vpack.c.bf16 %v3684_v23, %v3683_v11  ;;  %v3686_v48 = vld [vmem:[%s6861_s5 + $0x168] sm:$0xff]  ;;  %v4485_v32 = vpack.c.bf16 %v3690_v29, %v3689_v17  ;;  %v3693_v34 = vld [vmem:[%s6861_s5 + $0x1a0] sm:$0xff]  ;;  %v3720_v14 = vld [vmem:[%s6861_s5 + $0x278] sm:$0xff] }
 0x3b8   : > { %v3048_v38 = vrot.slane %v3022_v45, 5  ;;  %4438 = vmatpush3.bf16.msra.mxu1 %v4437_v21  ;;  %3914 = vmatprep.mubr.msk.f32.mxu1 %vm4883_vm4, %v6169_v53  ;;  %v4479_v25 = vpack.c.bf16 %v3686_v48, %v3685_v2  ;;  %v3692_v21 = vld [vmem:[%s6861_s5 + $0x198] sm:$0xff]  ;;  %v4491_v20 = vpack.c.bf16 %v3694_v59, %v3693_v34  ;;  %v4494_v22 = vpack.c.bf16 %v3696_v43, %v3695_v8  ;;  %v3697_v45 = vld [vmem:[%s6861_s5 + $0x1c0] sm:$0xff]  ;;  %v3698_v9 = vld [vmem:[%s6861_s5 + $0x1c8] sm:$0xff] }
 0x3b9   : > { %4439 = vmatprep.subr.bf16.mxu1 %v4882_v12  ;;  %v3132_v35 = vld [vmem:[%s6863_s7 + $0x8] sm:$0xff]  ;;  %v3137_v2 = vld [vmem:[%s6863_s7 + $0x30] sm:$0xff]  ;;  %v3138_v48 = vld [vmem:[%s6863_s7 + $0x38] sm:$0xff] }
 0x3ba   : > { %v6472_v50 = vsel %vm2665_vm7, %v3048_v38, %v3047_v61  ;;  %v3691_v61 = vld [vmem:[%s6861_s5 + $0x190] sm:$0xff]  ;;  %v3700_v38 = vld [vmem:[%s6861_s5 + $0x1d8] sm:$0xff]  ;;  %v3136_v23 = vld [vmem:[%s6863_s7 + $0x28] sm:$0xff]  ;;  %v4542_v27 = vpack.c.bf16 %v3138_v48, %v3137_v2 }
 0x3bb   : > { %v4488_v33 = vpack.c.bf16 %v3692_v21, %v3691_v61  ;;  %v3140_v3 = vld [vmem:[%s6863_s7 + $0x48] sm:$0xff]  ;;  %v3141_v17 = vld [vmem:[%s6863_s7 + $0x50] sm:$0xff]  ;;  %v3142_v29 = vld [vmem:[%s6863_s7 + $0x58] sm:$0xff] }
 0x3bc   : > { %4441 = vmatpush3.bf16.msra.mxu1 %v4440_v47  ;;  %v3143_v61 = vld [vmem:[%s6863_s7 + $0x60] sm:$0xff]  ;;  %v3144_v21 = vld [vmem:[%s6863_s7 + $0x68] sm:$0xff]  ;;  %v3146_v8 = vld [vmem:[%s6863_s7 + $0x78] sm:$0xff] }
 0x3bd   : > { %4442 = vmatprep.subr.bf16.mxu1 %v4882_v12 }
 0x3c0   : > { %4444 = vmatpush3.bf16.msra.mxu1 %v4443_v39  ;;  %v4503_v39 = vpack.c.bf16 %v3702_v52, %v3701_v49  ;;  %v3230_v49 = vld [vmem:[%s6865_s9 + $0x28] sm:$0xff] }
 0x3c1   : > { %4445 = vmatprep.subr.bf16.mxu1 %v4882_v12 }
 0x3c4   : > { %4447 = vmatpush3.bf16.msra.mxu1 %v4446_v31  ;;  %v4506_v31 = vpack.c.bf16 %v3704_v37, %v3703_v54  ;;  %v3232_v54 = vld [vmem:[%s6865_s9 + $0x38] sm:$0xff] }
 0x3c5   : > { %4448 = vmatprep.subr.bf16.mxu1 %v4882_v12 }
 0x3c8   : > { %4450 = vmatpush3.bf16.msra.mxu1 %v4449_v26  ;;  %v4509_v26 = vpack.c.bf16 %v3706_v7, %v3705_v40  ;;  %v3234_v40 = vld [vmem:[%s6865_s9 + $0x48] sm:$0xff] }
 0x3c9   : > { %4451 = vmatprep.subr.bf16.mxu1 %v4882_v12 }
 0x3cc   : > { %4453 = vmatpush3.bf16.msra.mxu1 %v4452_v42  ;;  %v4512_v42 = vpack.c.bf16 %v3708_v41, %v3707_v30  ;;  %v3236_v30 = vld [vmem:[%s6865_s9 + $0x58] sm:$0xff] }
 0x3cd   : > { %4454 = vmatprep.subr.bf16.mxu1 %v4882_v12 }
 0x3d0   : > { %4456 = vmatpush3.bf16.msra.mxu1 %v4455_v18  ;;  %v4515_v18 = vpack.c.bf16 %v3710_v16, %v3709_v15  ;;  %v3238_v15 = vld [vmem:[%s6865_s9 + $0x68] sm:$0xff] }
 0x3d1   : > { %4457 = vmatprep.subr.bf16.mxu1 %v4882_v12 }
 0x3d4   : > { %4459 = vmatpush3.bf16.msra.mxu1 %v4458_v58  ;;  %v3713_v58 = vld [vmem:[%s6861_s5 + $0x240] sm:$0xff] }
 0x3d5   : > { %4460 = vmatprep.subr.bf16.mxu1 %v4882_v12  ;;  %v4521_v62 = vpack.c.bf16 %v3714_v60, %v3713_v58 }
 0x3d7   : > { %3915 = vmatmul.mubr.f32.vlgmr.msra.gmra.mrb[18].mxu1 %v2743_v46  ;;  %v4497_v46 = vpack.c.bf16 %v3698_v9, %v3697_v45  ;;  %v3226_v45 = vld [vmem:[%s6865_s9 + $0x8] sm:$0xff]  ;;  %v3227_v9 = vld [vmem:[%s6865_s9 + $0x10] sm:$0xff] }
 0x3d8   : > { %4462 = vmatpush3.bf16.msra.mxu1 %v4461_v55  ;;  %3949 = vmatprep.mubr.msk.f32.mxu1 %vm4883_vm4, %v6169_v53  ;;  %v3715_v55 = vld [vmem:[%s6861_s5 + $0x250] sm:$0xff] }
 0x3d9   : > { %4463 = vmatprep.subr.bf16.mxu1 %v4882_v12  ;;  %v4524_v63 = vpack.c.bf16 %v3716_v13, %v3715_v55 }
 0x3dc   : > { %4465 = vmatpush3.bf16.msra.mxu1 %v4464_v0  ;;  %v3717_v0 = vld [vmem:[%s6861_s5 + $0x260] sm:$0xff] }
 0x3dd   : > { %4466 = vmatprep.subr.bf16.mxu1 %v4882_v12  ;;  %v4527_v4 = vpack.c.bf16 %v3718_v1, %v3717_v0  ;;  %v3721_v0 = vld [vmem:[%s6862_s6] ss:$0 sm:$0xff] }
 0x3e0   : > { %4468 = vmatpush3.bf16.msra.mxu1 %v4467_v5  ;;  %v3719_v5 = vld [vmem:[%s6861_s5 + $0x270] sm:$0xff] }
 0x3e1   : > { %4469 = vmatprep.subr.bf16.mxu1 %v4882_v12  ;;  %v4530_v51 = vpack.c.bf16 %v3720_v14, %v3719_v5 }
 0x3e4   : > { %4471 = vmatpush3.bf16.msra.mxu1 %v4470_v6  ;;  %v3131_v6 = vld [vmem:[%s6863_s7] sm:$0xff] }
 0x3e5   : > { %4472 = vmatprep.subr.bf16.mxu1 %v4882_v12 }
 0x3e8   : > { %4474 = vmatpush3.bf16.msra.mxu1 %v4473_v56  ;;  %v4533_v56 = vpack.c.bf16 %v3132_v35, %v3131_v6  ;;  %v3722_v35 = vld [vmem:[%s6864_s8] ss:$0 sm:$0xff] }
 0x3e9   : > { %4475 = vmatprep.subr.bf16.mxu1 %v4882_v12 }
 0x3ea   : > { %4534 = vmatpush3.bf16.msra.mxu0 %v4533_v56 }
 0x3eb   : > { %4535 = vmatprep.subr.bf16.mxu0 %v4882_v12 }
 0x3ec   : > { %4477 = vmatpush3.bf16.msra.mxu1 %v4476_v24 }
 0x3ed   : > { %4478 = vmatprep.subr.bf16.mxu1 %v4882_v12 }
 0x3f0   : > { %4480 = vmatpush3.bf16.msra.mxu1 %v4479_v25  ;;  %v3139_v25 = vld [vmem:[%s6863_s7 + $0x40] sm:$0xff] }
 0x3f1   : > { %4481 = vmatprep.subr.bf16.mxu1 %v4882_v12 }
 0x3f4   : > { %4483 = vmatpush3.bf16.msra.mxu1 %v4482_v28  ;;  %v4545_v28 = vpack.c.bf16 %v3140_v3, %v3139_v25 }
 0x3f5   : > { %4484 = vmatprep.subr.bf16.mxu1 %v4882_v12 }
 0x3f7   : > { %3950 = vmatmul.mubr.f32.vlgmr.msra.gmra.mrb[20].mxu1 %v6457_v44  ;;  %v3699_v44 = vld [vmem:[%s6861_s5 + $0x1d0] sm:$0xff] }
 0x3f8   : > { %4486 = vmatpush3.bf16.msra.mxu1 %v4485_v32  ;;  %3984 = vmatprep.mubr.msk.f32.mxu1 %vm4883_vm4, %v6169_v53  ;;  %v4500_v47 = vpack.c.bf16 %v3700_v38, %v3699_v44  ;;  %v4548_v32 = vpack.c.bf16 %v3142_v29, %v3141_v17  ;;  %v3228_v44 = vld [vmem:[%s6865_s9 + $0x18] sm:$0xff] }
 0x3f9   : > { %4487 = vmatprep.subr.bf16.mxu1 %v4882_v12  ;;  %v4560_v38 = vpack.c.bf16 %v3228_v44, %v3227_v9 }
 0x3fc   : > { %4489 = vmatpush3.bf16.msra.mxu1 %v4488_v33  ;;  %v4551_v33 = vpack.c.bf16 %v3144_v21, %v3143_v61 }
 0x3fd   : > { %4490 = vmatprep.subr.bf16.mxu1 %v4882_v12 }
 0x400   : > { %4492 = vmatpush3.bf16.msra.mxu1 %v4491_v20  ;;  %v3145_v20 = vld [vmem:[%s6863_s7 + $0x70] sm:$0xff] }
 0x401   : > { %4493 = vmatprep.subr.bf16.mxu1 %v4882_v12  ;;  %v4554_v43 = vpack.c.bf16 %v3146_v8, %v3145_v20 }
 0x404   : > { %4495 = vmatpush3.bf16.msra.mxu1 %v4494_v22  ;;  %v3225_v22 = vld [vmem:[%s6865_s9] sm:$0xff] }
 0x405   : > { %4496 = vmatprep.subr.bf16.mxu1 %v4882_v12 }
 0x408   : > { %4498 = vmatpush3.bf16.msra.mxu1 %v4497_v46  ;;  %v4557_v46 = vpack.c.bf16 %v3226_v45, %v3225_v22 }
 0x409   : > { %4499 = vmatprep.subr.bf16.mxu1 %v4882_v12 }
 0x40c   : > { %4501 = vmatpush3.bf16.msra.mxu1 %v4500_v47  ;;  %v3229_v47 = vld [vmem:[%s6865_s9 + $0x20] sm:$0xff] }
 0x40d   : > { %4502 = vmatprep.subr.bf16.mxu1 %v4882_v12  ;;  %v4563_v52 = vpack.c.bf16 %v3230_v49, %v3229_v47 }
 0x410   : > { %4504 = vmatpush3.bf16.msra.mxu1 %v4503_v39  ;;  %v3231_v39 = vld [vmem:[%s6865_s9 + $0x30] sm:$0xff] }
 0x411   : > { %4505 = vmatprep.subr.bf16.mxu1 %v4882_v12  ;;  %v4566_v37 = vpack.c.bf16 %v3232_v54, %v3231_v39 }
 0x414   : > { %4507 = vmatpush3.bf16.msra.mxu1 %v4506_v31  ;;  %v3233_v31 = vld [vmem:[%s6865_s9 + $0x40] sm:$0xff] }
 0x415   : > { %4508 = vmatprep.subr.bf16.mxu1 %v4882_v12  ;;  %v4569_v7 = vpack.c.bf16 %v3234_v40, %v3233_v31 }
 0x417   : > { %3985 = vmatmul.mubr.f32.vlgmr.msra.gmra.mrb[22].mxu1 %v6460_v36  ;;  %v3711_v36 = vld [vmem:[%s6861_s5 + $0x230] sm:$0xff] }
 0x418   : > { %4510 = vmatpush3.bf16.msra.mxu1 %v4509_v26  ;;  %4019 = vmatprep.mubr.msk.f32.mxu1 %vm4883_vm4, %v6169_v53  ;;  %v4518_v57 = vpack.c.bf16 %v3712_v19, %v3711_v36  ;;  %v3235_v26 = vld [vmem:[%s6865_s9 + $0x50] sm:$0xff] }
 0x419   : > { %4511 = vmatprep.subr.bf16.mxu1 %v4882_v12  ;;  %v4572_v41 = vpack.c.bf16 %v3236_v30, %v3235_v26 }
 0x41c   : > { %4513 = vmatpush3.bf16.msra.mxu1 %v4512_v42  ;;  %v3237_v42 = vld [vmem:[%s6865_s9 + $0x60] sm:$0xff] }
 0x41d   : > { %4514 = vmatprep.subr.bf16.mxu1 %v4882_v12  ;;  %v4575_v16 = vpack.c.bf16 %v3238_v15, %v3237_v42 }
 0x420   : > { %4516 = vmatpush3.bf16.msra.mxu1 %v4515_v18 }
 0x421   : > { %4517 = vmatprep.subr.bf16.mxu1 %v4882_v12 }
 0x424   : > { %4519 = vmatpush3.bf16.msra.mxu1 %v4518_v57 }
 0x425   : > { %4520 = vmatprep.subr.bf16.mxu1 %v4882_v12 }
 0x428   : > { %4522 = vmatpush3.bf16.msra.mxu1 %v4521_v62 }
 0x429   : > { %4523 = vmatprep.subr.bf16.mxu1 %v4882_v12 }
 0x42c   : > { %4525 = vmatpush3.bf16.msra.mxu1 %v4524_v63 }
 0x42d   : > { %4526 = vmatprep.subr.bf16.mxu1 %v4882_v12 }
 0x430   : > { %4528 = vmatpush3.bf16.msra.mxu1 %v4527_v4 }
 0x431   : > { %4529 = vmatprep.subr.bf16.mxu1 %v4882_v12 }
 0x434   : > { %4531 = vmatpush3.bf16.msra.mxu1 %v4530_v51  ;;  %v3240_v51 = vld [vmem:[%s6865_s9 + $0x78] sm:$0xff] }
 0x435   : > { %4556 = vmatprep.subr.bf16.mxu1 %v4882_v12 }
 0x437   : > { %4020 = vmatmul.mubr.f32.vlgmr.msra.gmra.mrb[24].mxu1 %v6472_v50  ;;  %v3134_v50 = vld [vmem:[%s6863_s7 + $0x18] sm:$0xff] }
 0x438   : > { %4089 = vmatprep.mubr.msk.f32.mxu1 %vm4883_vm4, %v6169_v53  ;;  %v4536_v11 = vpack.c.bf16 %v3134_v50, %v3133_v10  ;;  %v3135_v53 = vld [vmem:[%s6863_s7 + $0x20] sm:$0xff]  ;;  %4558 = vmatpush3.bf16.msra.mxu1 %v4557_v46 }
 0x439   : > { %v4539_v24 = vpack.c.bf16 %v3136_v23, %v3135_v53  ;;  %4559 = vmatprep.subr.bf16.mxu1 %v4882_v12  ;;  %v3723_v53 = vld [vmem:[%s6866_s10] ss:$0 sm:$0xff] }
 0x43a   : > { %4537 = vmatpush3.bf16.msra.mxu0 %v4536_v11 }
 0x43b   : > { %4538 = vmatprep.subr.bf16.mxu0 %v4882_v12 }
 0x43c   : > { %4561 = vmatpush3.bf16.msra.mxu1 %v4560_v38 }
 0x43d   : > { %4562 = vmatprep.subr.bf16.mxu1 %v4882_v12 }
 0x43e   : > { %4540 = vmatpush3.bf16.msra.mxu0 %v4539_v24 }
 0x43f   : > { %4541 = vmatprep.subr.bf16.mxu0 %v4882_v12 }
 0x440   : > { %4564 = vmatpush3.bf16.msra.mxu1 %v4563_v52 }
 0x441   : > { %4565 = vmatprep.subr.bf16.mxu1 %v4882_v12 }
 0x442   : > { %4543 = vmatpush3.bf16.msra.mxu0 %v4542_v27 }
 0x443   : > { %4544 = vmatprep.subr.bf16.mxu0 %v4882_v12 }
 0x444   : > { %4567 = vmatpush3.bf16.msra.mxu1 %v4566_v37 }
 0x445   : > { %4568 = vmatprep.subr.bf16.mxu1 %v4882_v12 }
 0x446   : > { %4546 = vmatpush3.bf16.msra.mxu0 %v4545_v28 }
 0x447   : > { %4547 = vmatprep.subr.bf16.mxu0 %v4882_v12 }
 0x448   : > { %4570 = vmatpush3.bf16.msra.mxu1 %v4569_v7 }
 0x449   : > { %4571 = vmatprep.subr.bf16.mxu1 %v4882_v12 }
 0x44a   : > { %4549 = vmatpush3.bf16.msra.mxu0 %v4548_v32 }
 0x44b   : > { %4550 = vmatprep.subr.bf16.mxu0 %v4882_v12 }
 0x44c   : > { %4573 = vmatpush3.bf16.msra.mxu1 %v4572_v41 }
 0x44d   : > { %4574 = vmatprep.subr.bf16.mxu1 %v4882_v12 }
 0x44e   : > { %4552 = vmatpush3.bf16.msra.mxu0 %v4551_v33 }
 0x44f   : > { %4553 = vmatprep.subr.bf16.mxu0 %v4882_v12 }
 0x450   : > { %4576 = vmatpush3.bf16.msra.mxu1 %v4575_v16 }
 0x451   : > { %4577 = vmatprep.subr.bf16.mxu1 %v4882_v12  ;;  %v3239_v12 = vld [vmem:[%s6865_s9 + $0x70] sm:$0xff] }
 0x452   : > { %4555 = vmatpush3.bf16.msra.mxu0 %v4554_v43  ;;  %v4578_v6 = vpack.c.bf16 %v3240_v51, %v3239_v12 }
 0x454   : > { %4579 = vmatpush3.bf16.msra.mxu1 %v4578_v6 }
 0x48a   : > { %v2734_v34 = vpop.f32.mrb[16].mxu1 }
 0x48b   : > { %v3881_v59 = vpop.f32.mrb[17].mxu1 }
 0x4aa   : > { %v2811_v18 = vpop.f32.mrb[18].mxu1 }
 0x4ab   : > { %v2812_v36 = vadd.f32 %v2811_v18, %v2734_v34  ;;  %v3916_v19 = vpop.f32.mrb[19].mxu1 }
 0x4ca   : > { %v2906_v57 = vpop.f32.mrb[20].mxu1 }
 0x4cb   : > { %v2910_v58 = vadd.f32 %v2906_v57, %v2812_v36  ;;  %v3951_v60 = vpop.f32.mrb[21].mxu1 }
 0x4ea   : > { %v3002_v62 = vpop.f32.mrb[22].mxu1 }
 0x4eb   : > { %v3006_v55 = vadd.f32 %v3002_v62, %v2910_v58  ;;  %v3986_v13 = vpop.f32.mrb[23].mxu1 }
 0x50a   : > { %v3117_v63 = vpop.f32.mrb[24].mxu1 }
 0x50b   : > { %v3121_v1 = vadd.f32 %v3117_v63, %v3006_v55  ;;  %v4021_v4 = vpop.f32.mrb[25].mxu1 }
 0x50d   : > { %v3129_v5 = vadd.f32 %v3721_v0, %v3121_v1 }
 0x50f   : > { %v3130_v14 = vmax.f32 %v3129_v5, 0.0 }
 0x511   : > { %4055 = vmatmul.mubr.f32.vlgmr.msra.gmra.mrb[32].mxu0 %v3130_v14 }
 0x5e4   : > { %v3220_v10 = vpop.f32.mrb[32].mxu0 }
 0x5e5   : > { %v3221_v56 = vadd.f32 %v3722_v35, %v3220_v10  ;;  %v4056_v50 = vpop.f32.mrb[33].mxu0 }
 0x5e7   : > { %v3224_v11 = vmax.f32 %v3221_v56, 0.0 }
 0x5e9   : > { %4090 = vmatmul.mubr.f32.vlgmr.msra.gmra.mrb[26].mxu1 %v3224_v11 }
 0x6bc   : > { %v3314_v23 = vpop.f32.mrb[26].mxu1 }
 0x6bd   : > { %v3315_v24 = vadd.f32 %v3723_v53, %v3314_v23  ;;  %v4091_v2 = vpop.f32.mrb[27].mxu1 }
 0x6bf   : > { %3318 = vst [vmem:[%s382_s12] sm:$0xf] %v3315_v24 }
 0x6c0   : > { %4830 = shalt.err (!%p4827_p3)
}
 0x6c1   : > { %s4831_s15 = scalar_lea.hbm %s6814_s14, 64  ;;  %s4835_s12 = scalar_lea.hbm %s6867_s11, 128 }
 0x6c2   : > { %p4832_p4 = scmp.ne.s32.totalorder %s6814_s14, %s4831_s15  ;;  %p4836_p9 = scmp.lt.u32.totalorder %s6814_s14, %s6867_s11 }
 0x6c3   : > { %p4837_p10 = scmp.lt.u32.totalorder %s4835_s12, %s4831_s15  ;;  %p4839_p12 = scmp.lt.u32.totalorder %s4831_s15, %s6814_s14 }
 0x6c4   : > { %p4833_p7 = pnand %p4832_p4, %p4983_p5 }
 0x6c5   : > { %p4838_p11 = por %p4837_p10, %p4836_p9 }
 0x6c6   : > { %p4834_p8 = pneg %p4833_p7 }
 0x6c7   : > { %p4840_p13 = por %p4839_p12, %p4838_p11 }
 0x6c9   : > { %p4841_p0 = pnand %p4840_p13, %p4834_p8 }
 0x6cb   : > { %4844 = shalt.err (!%p4841_p0)
}
 0x6cc   : > { %4773 = dma.vmem_to_hbm [thread:$0]  (%p4983_p5), %s6816_s26, 64, %s6814_s14, %s3320_s19  }
 0x6cd PF: > { %p4779_p1 = scmp.ge.s32.totalorder %s4879_s20, 2  ;;  %s3345_s30 = sand.u32 1, %s4867_s17  }
 0x6ce   : > { %s3346_s21 = scalar_lea.sflag [#allocation4], %s3345_s30 }
 0x6cf   : > { %p4776_p2 = pnand %p4779_p1, %p4987_p6 }
 0x6d1   : > { %4862 = dma.done.wait (!%p4776_p2), %s3346_s21, 64  }
 0x6d2   : > { %4864 = vsyncadd (!%p4776_p2), %s3346_s21, 4294967232  ;;  %s6873_s22 = sld [smem:[#allocation6_spill]]  ;;  %s6874_s19 = sld [smem:[#allocation7_spill]] }
 0x6d3   : > { %p21_p3 = scmp.ge.s32.totalorder %s4970_s23, 4   ;;  %s6875_s17 = smov %s4871_s18 }
 0x6d4   : > { %s6877_s20 = smov %s4970_s23 }
 0x6d5   :  { %23 = sbr.rel (!%p21_p3) target bundleno = 3 (0x3), region = 134 }
 0x6d8   : > { %s6876_s18 = smov %s6873_s22 }
 0x6dc   :  { %3351 = vsyncpa [#allocation4], 1 }
 0x6dd   :  { %3353 = vsyncpa [#allocation4 + $0x1], 1 }

</bundles_post_ra>
